<compile_context>
chip_gen: v6e
topology: v6e:2x2x1
jax: 0.10.0
libtpu: 0.0.40
codegen_flags: <defaults>
</compile_context>

<pallas_src>
import functools

import jax
import jax.numpy as jnp
from jax import lax
from jax.experimental import pallas as pl
from jax.experimental.pallas import tpu as pltpu


def _round_up(x, m):
    return ((x + m - 1) // m) * m


def _vmem_limit(nbytes):
    # Generous headroom, but capped below v7x's 64 MiB physical VMEM.
    return int(min(max(2 * nbytes, 16 * 1024 * 1024), 48 * 1024 * 1024))


# ----------------------------------------------------------------------------
# Tiled matmul + bias (MXU) kernel -- used for the final Linear.
# ----------------------------------------------------------------------------

def _matmul_bias_kernel(a_ref, w_ref, b_ref, o_ref, acc_ref):
    @pl.when(pl.program_id(2) == 0)
    def _():
        acc_ref[...] = jnp.zeros_like(acc_ref)

    acc_ref[...] += jnp.dot(a_ref[...], w_ref[...],
                            preferred_element_type=jnp.float32)

    @pl.when(pl.program_id(2) == pl.num_programs(2) - 1)
    def _():
        o_ref[...] = (acc_ref[...] + b_ref[...]).astype(o_ref.dtype)


def matmul_bias(a, w, b, *, out_dtype=jnp.float32, mxu_dtype=jnp.bfloat16,
                tm=256, tn=256, tk=512):
    """(M,K) @ (K,N) + b, bf16 MXU operands, f32 accumulate."""
    M, K = a.shape
    Kw, N = w.shape
    assert K == Kw
    # Shrink tiles to the real shapes so pads / slices are no-ops when possible.
    tm = min(tm, _round_up(M, 8))
    tn = min(tn, _round_up(N, 128))
    tk = min(tk, _round_up(K, 128))
    Mp, Kp, Np = _round_up(M, tm), _round_up(K, tk), _round_up(N, tn)

    a_p = a.astype(mxu_dtype)
    w_p = w.astype(mxu_dtype)
    if (Mp, Kp) != (M, K):
        a_p = jnp.pad(a_p, ((0, Mp - M), (0, Kp - K)))
    if (Kp, Np) != (K, N):
        w_p = jnp.pad(w_p, ((0, Kp - K), (0, Np - N)))
    b_p = b.astype(jnp.float32)
    if Np != N:
        b_p = jnp.pad(b_p, (0, Np - N))
    b_p = b_p.reshape(1, Np)

    need = 2 * (tm * tk * 2 + tk * tn * 2 + tn * 4 + tm * tn * 4) + tm * tn * 4
    out = pl.pallas_call(
        _matmul_bias_kernel,
        out_shape=jax.ShapeDtypeStruct((Mp, Np), out_dtype),
        grid=(Mp // tm, Np // tn, Kp // tk),
        in_specs=[
            pl.BlockSpec((tm, tk), lambda i, j, k: (i, k)),
            pl.BlockSpec((tk, tn), lambda i, j, k: (k, j)),
            pl.BlockSpec((1, tn), lambda i, j, k: (0, j)),
        ],
        out_specs=pl.BlockSpec((tm, tn), lambda i, j, k: (i, j)),
        scratch_shapes=[pltpu.VMEM((tm, tn), jnp.float32)],
        compiler_params=pltpu.CompilerParams(
            dimension_semantics=("parallel", "parallel", "arbitrary"),
            vmem_limit_bytes=_vmem_limit(need)),
    )(a_p, w_p, b_p)
    if (Mp, Np) != (M, N):
        out = out[:M, :N]
    return out


# ----------------------------------------------------------------------------
# Fused (input-projection + recurrence) bidirectional LSTM layer kernel
# ----------------------------------------------------------------------------

def _lstm_layer_kernel(x_ref, wih_ref, whh_ref, b_ref, h0_ref, c0_ref,
                       y_ref, hN_ref, cN_ref,
                       h_scr, c_scr, g_scr, y_scr,
                       *, chunk, hidden, batch, t_valid, y_slab):
    d = pl.program_id(0)                 # direction: 0 = forward, 1 = backward
    n = pl.program_id(1)                 # chunk step (in processing order)
    nc = pl.num_programs(1)
    rev = d == 1

    @pl.when(n == 0)
    def _():
        h_scr[...] = h0_ref[0]
        c_scr[...] = c0_ref[0]

    # Fused input projection for the whole chunk: ONE bf16 MXU matmul,
    # f32 accumulate, bias folded in.  Result stays in VMEM (never hits HBM).
    g_scr[...] = (jnp.dot(x_ref[...], wih_ref[0],
                          preferred_element_type=jnp.float32) + b_ref[0])

    whh = whh_ref[0]                      # (H, 4H) bf16, resident in VMEM
    c_blk = d * (nc - 1 - 2 * n) + n      # chunk index in original time order

    def step(s, carry):
        t = jnp.where(rev, chunk - 1 - s, s)      # in-chunk time index
        r = pl.multiple_of(t * batch, 8)          # aligned row offset in slab
        h = h_scr[...]
        c = c_scr[...]
        # Only the unavoidable recurrent matmul sits on the serial h->h path;
        # bf16 MXU operands, f32 state / gate math.
        gates = g_scr[pl.ds(r, batch), :] + jnp.dot(
            h.astype(whh.dtype), whh, preferred_element_type=jnp.float32)
        i = jax.nn.sigmoid(gates[:, 0 * hidden:1 * hidden])
        f = jax.nn.sigmoid(gates[:, 1 * hidden:2 * hidden])
        g = jnp.tanh(gates[:, 2 * hidden:3 * hidden])
        o = jax.nn.sigmoid(gates[:, 3 * hidden:4 * hidden])
        c_new = f * c + i * g
        h_new = o * jnp.tanh(c_new)
        if t_valid is not None:                   # only compiled when T % chunk != 0
            valid = (c_blk * chunk + t) < t_valid
            c_new = jnp.where(valid, c_new, c)
            h_new = jnp.where(valid, h_new, h)
        h_scr[...] = h_new
        c_scr[...] = c_new
        y_scr[pl.ds(r, batch), :] = h_new         # aligned f32 staging store
        return carry

    lax.fori_loop(0, chunk, step, 0, unroll=min(8, chunk))

    # One dense (chunk*B, H) store of the whole chunk's outputs (bf16 downcast
    # happens here in a single vectorized pass).
    if y_slab:
        y_ref[...] = y_scr[...].astype(y_ref.dtype)
    else:
        y_ref[0] = y_scr[...].astype(y_ref.dtype)

    @pl.when(n == nc - 1)
    def _():
        hN_ref[0] = h_scr[...]
        cN_ref[0] = c_scr[...]


def _lstm_layer(x2d, w_ih, w_hh, b, h0, c0, *, Tp, Bp, H, chunk, num_dir,
                t_valid, out_dtype):
    """One LSTM layer (both directions) over the flattened (Tp*Bp, Cin) input.

    Returns (y (Tp*Bp, num_dir*H), h_n (num_dir, Bp, H), c_n (num_dir, Bp, H)).
    """
    cin = x2d.shape[-1]
    G = 4 * H
    NC = Tp // chunk
    rows = chunk * Bp
    y_slab = (num_dir == 1) or (H % 128 == 0)

    def n_eff(d, n):                      # chunk index in original time order
        return d * (NC - 1 - 2 * n) + n   # == n (fwd) / NC-1-n (bwd)

    in_specs = [
        pl.BlockSpec((rows, cin), lambda d, n: (n_eff(d, n), 0)),   # x chunk
        pl.BlockSpec((1, cin, G), lambda d, n: (d, 0, 0)),          # W_ih (resident)
        pl.BlockSpec((1, H, G), lambda d, n: (d, 0, 0)),            # W_hh (resident)
        pl.BlockSpec((1, 1, G), lambda d, n: (d, 0, 0)),            # bias
        pl.BlockSpec((1, Bp, H), lambda d, n: (d, 0, 0)),           # h0
        pl.BlockSpec((1, Bp, H), lambda d, n: (d, 0, 0)),           # c0
    ]
    if y_slab:
        # Each direction writes its own H-wide lane block of the (T*B, 2H)
        # output -> no host-side concat / reverse copies.
        y_shape = jax.ShapeDtypeStruct((Tp * Bp, num_dir * H), out_dtype)
        y_spec = pl.BlockSpec((rows, H), lambda d, n: (n_eff(d, n), d))
    else:
        # TODO(synk): H not a multiple of 128 -> per-direction outputs + host concat.
        y_shape = jax.ShapeDtypeStruct((num_dir, Tp * Bp, H), out_dtype)
        y_spec = pl.BlockSpec((1, rows, H), lambda d, n: (d, n_eff(d, n), 0))

    out_shape = (y_shape,
                 jax.ShapeDtypeStruct((num_dir, Bp, H), jnp.float32),
                 jax.ShapeDtypeStruct((num_dir, Bp, H), jnp.float32))
    out_specs = (y_spec,
                 pl.BlockSpec((1, Bp, H), lambda d, n: (d, 0, 0)),
                 pl.BlockSpec((1, Bp, H), lambda d, n: (d, 0, 0)))

    y_bytes = jnp.dtype(out_dtype).itemsize
    need = 2 * (rows * cin * 2 + cin * G * 2 + H * G * 2 + G * 4
                + 2 * Bp * H * 4 + rows * H * y_bytes + 2 * Bp * H * 4)
    need += (2 * Bp * H + rows * G + rows * H) * 4   # scratch

    y, h_n, c_n = pl.pallas_call(
        functools.partial(_lstm_layer_kernel, chunk=chunk, hidden=H, batch=Bp,
                          t_valid=t_valid, y_slab=y_slab),
        out_shape=out_shape,
        grid=(num_dir, NC),
        in_specs=in_specs,
        out_specs=out_specs,
        scratch_shapes=[
            pltpu.VMEM((Bp, H), jnp.float32),        # h state
            pltpu.VMEM((Bp, H), jnp.float32),        # c state
            pltpu.VMEM((rows, G), jnp.float32),      # chunk gate pre-activations
            pltpu.VMEM((rows, H), jnp.float32),      # chunk output staging
        ],
        compiler_params=pltpu.CompilerParams(
            # direction axis is independent (2 TCs on v7x); time is sequential
            dimension_semantics=("parallel", "arbitrary"),
            vmem_limit_bytes=_vmem_limit(need)),
    )(x2d, w_ih, w_hh, b, h0, c0)

    if not y_slab:
        y = jnp.concatenate([y[dd] for dd in range(num_dir)], axis=-1)
    return y, h_n, c_n


# ----------------------------------------------------------------------------
# RNN module: bidirectional multi-layer LSTM + Linear
# ----------------------------------------------------------------------------

def init_rnn(key, dim, layers=2, bi=True):
    num_dir = 2 if bi else 1
    scale = 1.0 / (dim ** 0.5)
    keys = jax.random.split(key, layers * num_dir * 4 + 2)
    kit = iter(keys)

    def uni(shape):
        return jax.random.uniform(next(kit), shape, jnp.float32, -scale, scale)

    lstm = []
    for l in range(layers):
        cin = dim if l == 0 else dim * num_dir
        w_ih, w_hh, b = [], [], []
        for _ in range(num_dir):
            w_ih.append(uni((4 * dim, cin)).T)                 # stored (Cin, 4H)
            w_hh.append(uni((4 * dim, dim)).T)                 # stored (H, 4H)
            b.append(uni((4 * dim,)) + uni((4 * dim,)))        # b_ih + b_hh folded
        lstm.append(dict(
            w_ih=jnp.stack(w_ih).astype(jnp.bfloat16),         # (num_dir, Cin, 4H)
            w_hh=jnp.stack(w_hh).astype(jnp.bfloat16),         # (num_dir, H, 4H)
            b=jnp.stack(b)[:, None, :].astype(jnp.float32),    # (num_dir, 1, 4H)
        ))
    params = dict(lstm=lstm)
    if bi:
        params["linear"] = dict(
            w=uni((dim, 2 * dim)).T,                           # stored (2H, H)
            b=uni((dim,)),
        )
    return params


def rnn_forward(params, x, hidden=None, *, dim, layers, bi, chunk=32):
    """Matches torch RNN(dim, layers, bi).forward: returns (y, (h_n, c_n))."""
    T, B, _ = x.shape
    num_dir = 2 if bi else 1
    H = dim
    Bp = _round_up(B, 8)                 # full 8-sublane occupancy in the kernel
    chunk = max(1, min(chunk, T))
    Tp = _round_up(T, chunk)
    t_valid = T if Tp != T else None

    if hidden is None:
        h0_all = jnp.zeros((layers * num_dir, Bp, H), jnp.float32)
        c0_all = jnp.zeros((layers * num_dir, Bp, H), jnp.float32)
    else:
        h0_all, c0_all = hidden
        h0_all = h0_all.astype(jnp.float32)
        c0_all = c0_all.astype(jnp.float32)
        if Bp != B:
            h0_all = jnp.pad(h0_all, ((0, 0), (0, Bp - B), (0, 0)))
            c0_all = jnp.pad(c0_all, ((0, 0), (0, Bp - B), (0, 0)))

    xp = x.astype(jnp.bfloat16)
    if (Tp, Bp) != (T, B):
        xp = jnp.pad(xp, ((0, Tp - T), (0, Bp - B), (0, 0)))
    inp = xp.reshape(Tp * Bp, x.shape[-1])        # flattened lane-dense slab

    h_n, c_n = [], []
    for l in range(layers):
        p = params["lstm"][l]
        # Inter-layer activations are only ever MXU operands -> keep bf16.
        out_dtype = jnp.bfloat16 if (bi or l < layers - 1) else jnp.float32
        y, hT, cT = _lstm_layer(
            inp, p["w_ih"], p["w_hh"], p["b"],
            h0_all[l * num_dir:(l + 1) * num_dir],
            c0_all[l * num_dir:(l + 1) * num_dir],
            Tp=Tp, Bp=Bp, H=H, chunk=chunk, num_dir=num_dir,
            t_valid=t_valid, out_dtype=out_dtype)
        h_n.append(hT)
        c_n.append(cT)
        inp = y                                   # (Tp*Bp, num_dir*H)

    h_n = jnp.concatenate(h_n, axis=0)[:, :B]
    c_n = jnp.concatenate(c_n, axis=0)[:, :B]

    if bi:
        lin = params["linear"]
        y = matmul_bias(inp, lin["w"], lin["b"])  # (Tp*Bp, H) f32
    else:
        y = inp.astype(jnp.float32)
    y = y.reshape(Tp, Bp, H)[:T, :B]
    return y, (h_n, c_n)


# ----------------------------------------------------------------------------
# Pure-JAX f32 reference (lax.scan) for a tolerance check
# ----------------------------------------------------------------------------

def rnn_reference(params, x, hidden=None, *, dim, layers, bi):
    T, B, _ = x.shape
    num_dir = 2 if bi else 1
    H = dim
    if hidden is None:
        h0 = jnp.zeros((layers * num_dir, B, H), jnp.float32)
        c0 = jnp.zeros((layers * num_dir, B, H), jnp.float32)
    else:
        h0, c0 = hidden
    inp = x.astype(jnp.float32)
    h_n, c_n = [], []
    for l in range(layers):
        outs = []
        for d in range(num_dir):
            p = params["lstm"][l]
            w_ih = p["w_ih"][d].astype(jnp.float32)
            w_hh = p["w_hh"][d].astype(jnp.float32)
            bb = p["b"][d, 0].astype(jnp.float32)
            seq = inp[::-1] if d == 1 else inp

            def cell(carry, x_t, w_ih=w_ih, w_hh=w_hh, bb=bb):
                h, c = carry
                g = x_t @ w_ih + h @ w_hh + bb
                i, f, gg, o = jnp.split(g, 4, axis=-1)
                c = jax.nn.sigmoid(f) * c + jax.nn.sigmoid(i) * jnp.tanh(gg)
                h = jax.nn.sigmoid(o) * jnp.tanh(c)
                return (h, c), h

            (hT, cT), ys = lax.scan(cell, (h0[l * num_dir + d], c0[l * num_dir + d]), seq)
            if d == 1:
                ys = ys[::-1]
            outs.append(ys)
            h_n.append(hT)
            c_n.append(cT)
        inp = jnp.concatenate(outs, axis=-1) if num_dir == 2 else outs[0]
    y = inp
    if bi:
        lin = params["linear"]
        y = y @ lin["w"].astype(jnp.float32) + lin["b"]
    return y, (jnp.stack(h_n), jnp.stack(c_n))


if __name__ == "__main__":
    dim = 128      # multiple of 128 -> lane-aligned gate slices & fused output slab
    layers = 2
    bi = True
    T, B = 20, 4   # T % chunk != 0 exercises tail masking; B < 8 exercises batch padding

    key = jax.random.PRNGKey(0)
    kp, kx = jax.random.split(key)
    params = init_rnn(kp, dim, layers=layers, bi=bi)
    x = jax.random.normal(kx, (T, B, dim), jnp.float32)

    fwd = jax.jit(functools.partial(rnn_forward, dim=dim, layers=layers,
                                    bi=bi, chunk=8))
    y, (h_n, c_n) = fwd(params, x)
    jax.block_until_ready((y, h_n, c_n))

    assert y.shape == (T, B, dim), y.shape
    assert h_n.shape == (layers * 2, B, dim), h_n.shape
    assert c_n.shape == (layers * 2, B, dim), c_n.shape

    # Tolerance check against a pure-JAX f32 lax.scan LSTM + Linear reference
    # (kernel uses bf16 MXU operands and bf16 inter-layer activations).
    y_r, (h_r, c_r) = rnn_reference(params, x, dim=dim, layers=layers, bi=bi)
    errs = [float(jnp.max(jnp.abs(a - b)))
            for a, b in ((y, y_r), (h_n, h_r), (c_n, c_r))]
    assert all(e < 2e-1 for e in errs), errs
    assert all(bool(jnp.all(jnp.isfinite(v))) for v in (y, h_n, c_n))
    print("KERNEL_OK")
</pallas_src>

<mosaic_0001>
module attributes {stable_mosaic.version = 11 : i64} {
  func.func @_lstm_layer_kernel(%arg0: i32, %arg1: i32, %arg2: memref<64x128xbf16, #tpu.memory_space<vmem>>, %arg3: memref<1x128x512xbf16, #tpu.memory_space<vmem>>, %arg4: memref<1x128x512xbf16, #tpu.memory_space<vmem>>, %arg5: memref<1x1x512xf32, #tpu.memory_space<vmem>>, %arg6: memref<1x8x128xf32, #tpu.memory_space<vmem>>, %arg7: memref<1x8x128xf32, #tpu.memory_space<vmem>>, %arg8: memref<64x128xbf16, #tpu.memory_space<vmem>>, %arg9: memref<1x8x128xf32, #tpu.memory_space<vmem>>, %arg10: memref<1x8x128xf32, #tpu.memory_space<vmem>>, %arg11: memref<8x128xf32, #tpu.memory_space<vmem>>, %arg12: memref<8x128xf32, #tpu.memory_space<vmem>>, %arg13: memref<64x512xf32, #tpu.memory_space<vmem>>, %arg14: memref<64x128xf32, #tpu.memory_space<vmem>>) attributes {dimension_semantics = [#tpu.dimension_semantics<parallel>, #tpu.dimension_semantics<arbitrary>], iteration_bounds = array<i64: 2, 3>, scalar_prefetch = 0 : i64, scratch_operands = 4 : i64, tpu.core_type = #tpu.core_type<tc>, window_params = [{transform_indices = @transform_0, window_bounds = array<i64: 64, 128>}, {transform_indices = @transform_1, window_bounds = array<i64: 1, 128, 512>}, {transform_indices = @transform_2, window_bounds = array<i64: 1, 128, 512>}, {transform_indices = @transform_3, window_bounds = array<i64: 1, 1, 512>}, {transform_indices = @transform_4, window_bounds = array<i64: 1, 8, 128>}, {transform_indices = @transform_5, window_bounds = array<i64: 1, 8, 128>}, {transform_indices = @transform_6, window_bounds = array<i64: 64, 128>}, {transform_indices = @transform_7, window_bounds = array<i64: 1, 8, 128>}, {transform_indices = @transform_8, window_bounds = array<i64: 1, 8, 128>}]} {
    %c1_i32 = arith.constant 1 : i32
    %0 = arith.cmpi eq, %arg0, %c1_i32 : i32
    %c0_i32 = arith.constant 0 : i32
    %1 = arith.cmpi eq, %arg1, %c0_i32 : i32
    %2 = arith.extui %1 : i1 to i32
    %c0_i32_0 = arith.constant 0 : i32
    %3 = arith.cmpi ne, %2, %c0_i32_0 : i32
    scf.if %3 {
      %c0_166 = arith.constant 0 : index
      %c0_167 = arith.constant 0 : index
      %c0_168 = arith.constant 0 : index
      %385 = vector.load %arg6[%c0_166, %c0_167, %c0_168] : memref<1x8x128xf32, #tpu.memory_space<vmem>>, vector<1x8x128xf32>
      %386 = vector.shape_cast %385 : vector<1x8x128xf32> to vector<8x128xf32>
      %c0_169 = arith.constant 0 : index
      %c0_170 = arith.constant 0 : index
      %387 = vector.load %arg11[%c0_169, %c0_170] : memref<8x128xf32, #tpu.memory_space<vmem>>, vector<8x128xf32>
      tpu.vector_store %arg11[%c0_169, %c0_170], %386 {strides = array<i32>} : memref<8x128xf32, #tpu.memory_space<vmem>>, vector<8x128xf32>,
      %c0_171 = arith.constant 0 : index
      %c0_172 = arith.constant 0 : index
      %c0_173 = arith.constant 0 : index
      %388 = vector.load %arg7[%c0_171, %c0_172, %c0_173] : memref<1x8x128xf32, #tpu.memory_space<vmem>>, vector<1x8x128xf32>
      %389 = vector.shape_cast %388 : vector<1x8x128xf32> to vector<8x128xf32>
      %c0_174 = arith.constant 0 : index
      %c0_175 = arith.constant 0 : index
      %390 = vector.load %arg12[%c0_174, %c0_175] : memref<8x128xf32, #tpu.memory_space<vmem>>, vector<8x128xf32>
      tpu.vector_store %arg12[%c0_174, %c0_175], %389 {strides = array<i32>} : memref<8x128xf32, #tpu.memory_space<vmem>>, vector<8x128xf32>,
    } else {
    }
    %c0 = arith.constant 0 : index
    %c0_1 = arith.constant 0 : index
    %4 = vector.load %arg2[%c0, %c0_1] : memref<64x128xbf16, #tpu.memory_space<vmem>>, vector<64x128xbf16>
    %c0_2 = arith.constant 0 : index
    %c0_3 = arith.constant 0 : index
    %c0_4 = arith.constant 0 : index
    %5 = vector.load %arg3[%c0_2, %c0_3, %c0_4] : memref<1x128x512xbf16, #tpu.memory_space<vmem>>, vector<1x128x512xbf16>
    %6 = vector.shape_cast %5 : vector<1x128x512xbf16> to vector<128x512xbf16>
    %cst = arith.constant dense<0.000000e+00> : vector<64x512xf32>
    %7 = tpu.matmul %4, %6, %cst {dimension_numbers = #tpu.dot_dimension_numbers<[1], [0], [0], [1], [0, 0, 1, 1], [], []>} : vector<64x128xbf16>, vector<128x512xbf16>, vector<64x512xf32> -> vector<64x512xf32>
    %c0_5 = arith.constant 0 : index
    %c0_6 = arith.constant 0 : index
    %c0_7 = arith.constant 0 : index
    %8 = vector.load %arg5[%c0_5, %c0_6, %c0_7] : memref<1x1x512xf32, #tpu.memory_space<vmem>>, vector<1x1x512xf32>
    %9 = vector.shape_cast %8 : vector<1x1x512xf32> to vector<1x512xf32>
    %10 = vector.broadcast %9 : vector<1x512xf32> to vector<64x512xf32>
    %11 = arith.addf %7, %10 : vector<64x512xf32>
    %c0_8 = arith.constant 0 : index
    %c0_9 = arith.constant 0 : index
    %12 = vector.load %arg13[%c0_8, %c0_9] : memref<64x512xf32, #tpu.memory_space<vmem>>, vector<64x512xf32>
    tpu.vector_store %arg13[%c0_8, %c0_9], %11 {strides = array<i32>} : memref<64x512xf32, #tpu.memory_space<vmem>>, vector<64x512xf32>,
    %c0_10 = arith.constant 0 : index
    %c0_11 = arith.constant 0 : index
    %c0_12 = arith.constant 0 : index
    %13 = vector.load %arg4[%c0_10, %c0_11, %c0_12] : memref<1x128x512xbf16, #tpu.memory_space<vmem>>, vector<1x128x512xbf16>
    %14 = vector.shape_cast %13 : vector<1x128x512xbf16> to vector<128x512xbf16>
    %c2_i32 = arith.constant 2 : i32
    %15 = arith.muli %c2_i32, %arg1 : i32
    %c2_i32_13 = arith.constant 2 : i32
    %16 = arith.subi %c2_i32_13, %15 : i32
    %17 = arith.muli %arg0, %16 : i32
    %18 = arith.addi %17, %arg1 : i32
    %c0_i32_14 = arith.constant 0 : i32
    %c7_i32 = arith.constant 7 : i32
    %19 = arith.subi %c7_i32, %c0_i32_14 : i32
    %20 = arith.select %0, %19, %c0_i32_14 : i32
    %c8_i32 = arith.constant 8 : i32
    %21 = arith.muli %20, %c8_i32 : i32
    %22 = tpu.assume_multiple %21, 8 : i32
    %c0_15 = arith.constant 0 : index
    %c0_16 = arith.constant 0 : index
    %23 = vector.load %arg11[%c0_15, %c0_16] : memref<8x128xf32, #tpu.memory_space<vmem>>, vector<8x128xf32>
    %c0_17 = arith.constant 0 : index
    %c0_18 = arith.constant 0 : index
    %24 = vector.load %arg12[%c0_17, %c0_18] : memref<8x128xf32, #tpu.memory_space<vmem>>, vector<8x128xf32>
    %25 = arith.index_cast %22 : i32 to index
    %c0_19 = arith.constant 0 : index
    %26 = vector.load %arg13[%25, %c0_19] : memref<64x512xf32, #tpu.memory_space<vmem>>, vector<8x512xf32>
    %27 = arith.truncf %23 : vector<8x128xf32> to vector<8x128xbf16>
    %cst_20 = arith.constant dense<0.000000e+00> : vector<8x512xf32>
    %28 = tpu.matmul %27, %14, %cst_20 {dimension_numbers = #tpu.dot_dimension_numbers<[1], [0], [0], [1], [0, 0, 1, 1], [], []>} : vector<8x128xbf16>, vector<128x512xbf16>, vector<8x512xf32> -> vector<8x512xf32>
    %29 = arith.addf %26, %28 : vector<8x512xf32>
    %30 = vector.extract_strided_slice %29 {offsets = [0, 0], sizes = [8, 128], strides = [1, 1]} : vector<8x512xf32> to vector<8x128xf32>
    %31 = arith.negf %30 : vector<8x128xf32>
    %32 = math.exp %31 : vector<8x128xf32>
    %cst_21 = arith.constant 1.000000e+00 : f32
    %33 = vector.broadcast %cst_21 : f32 to vector<8x128xf32>
    %34 = arith.addf %33, %32 : vector<8x128xf32>
    %35 = arith.divf %33, %34 : vector<8x128xf32>
    %36 = vector.extract_strided_slice %29 {offsets = [0, 128], sizes = [8, 128], strides = [1, 1]} : vector<8x512xf32> to vector<8x128xf32>
    %37 = arith.negf %36 : vector<8x128xf32>
    %38 = math.exp %37 : vector<8x128xf32>
    %cst_22 = arith.constant 1.000000e+00 : f32
    %39 = vector.broadcast %cst_22 : f32 to vector<8x128xf32>
    %40 = arith.addf %39, %38 : vector<8x128xf32>
    %41 = arith.divf %39, %40 : vector<8x128xf32>
    %42 = vector.extract_strided_slice %29 {offsets = [0, 256], sizes = [8, 128], strides = [1, 1]} : vector<8x512xf32> to vector<8x128xf32>
    %43 = math.tanh %42 : vector<8x128xf32>
    %44 = vector.extract_strided_slice %29 {offsets = [0, 384], sizes = [8, 128], strides = [1, 1]} : vector<8x512xf32> to vector<8x128xf32>
    %45 = arith.negf %44 : vector<8x128xf32>
    %46 = math.exp %45 : vector<8x128xf32>
    %cst_23 = arith.constant 1.000000e+00 : f32
    %47 = vector.broadcast %cst_23 : f32 to vector<8x128xf32>
    %48 = arith.addf %47, %46 : vector<8x128xf32>
    %49 = arith.divf %47, %48 : vector<8x128xf32>
    %50 = arith.mulf %41, %24 : vector<8x128xf32>
    %51 = arith.mulf %35, %43 : vector<8x128xf32>
    %52 = arith.addf %50, %51 : vector<8x128xf32>
    %53 = math.tanh %52 : vector<8x128xf32>
    %54 = arith.mulf %49, %53 : vector<8x128xf32>
    %c8_i32_24 = arith.constant 8 : i32
    %55 = arith.muli %18, %c8_i32_24 : i32
    %56 = arith.addi %55, %20 : i32
    %c20_i32 = arith.constant 20 : i32
    %57 = arith.cmpi slt, %56, %c20_i32 : i32
    %58 = arith.select %57, %52, %24 : vector<8x128xf32>
    %59 = arith.select %57, %54, %23 : vector<8x128xf32>
    %c0_25 = arith.constant 0 : index
    %c0_26 = arith.constant 0 : index
    %60 = vector.load %arg11[%c0_25, %c0_26] : memref<8x128xf32, #tpu.memory_space<vmem>>, vector<8x128xf32>
    tpu.vector_store %arg11[%c0_25, %c0_26], %59 {strides = array<i32>} : memref<8x128xf32, #tpu.memory_space<vmem>>, vector<8x128xf32>,
    %c0_27 = arith.constant 0 : index
    %c0_28 = arith.constant 0 : index
    %61 = vector.load %arg12[%c0_27, %c0_28] : memref<8x128xf32, #tpu.memory_space<vmem>>, vector<8x128xf32>
    tpu.vector_store %arg12[%c0_27, %c0_28], %58 {strides = array<i32>} : memref<8x128xf32, #tpu.memory_space<vmem>>, vector<8x128xf32>,
    %62 = arith.index_cast %22 : i32 to index
    %c0_29 = arith.constant 0 : index
    %63 = vector.load %arg14[%62, %c0_29] : memref<64x128xf32, #tpu.memory_space<vmem>>, vector<8x128xf32>
    tpu.vector_store %arg14[%62, %c0_29], %59 {strides = array<i32>} : memref<64x128xf32, #tpu.memory_space<vmem>>, vector<8x128xf32>,
    %c1_i32_30 = arith.constant 1 : i32
    %c7_i32_31 = arith.constant 7 : i32
    %64 = arith.subi %c7_i32_31, %c1_i32_30 : i32
    %65 = arith.select %0, %64, %c1_i32_30 : i32
    %c8_i32_32 = arith.constant 8 : i32
    %66 = arith.muli %65, %c8_i32_32 : i32
    %67 = tpu.assume_multiple %66, 8 : i32
    %c0_33 = arith.constant 0 : index
    %c0_34 = arith.constant 0 : index
    %68 = vector.load %arg11[%c0_33, %c0_34] : memref<8x128xf32, #tpu.memory_space<vmem>>, vector<8x128xf32>
    %c0_35 = arith.constant 0 : index
    %c0_36 = arith.constant 0 : index
    %69 = vector.load %arg12[%c0_35, %c0_36] : memref<8x128xf32, #tpu.memory_space<vmem>>, vector<8x128xf32>
    %70 = arith.index_cast %67 : i32 to index
    %c0_37 = arith.constant 0 : index
    %71 = vector.load %arg13[%70, %c0_37] : memref<64x512xf32, #tpu.memory_space<vmem>>, vector<8x512xf32>
    %72 = arith.truncf %68 : vector<8x128xf32> to vector<8x128xbf16>
    %cst_38 = arith.constant dense<0.000000e+00> : vector<8x512xf32>
    %73 = tpu.matmul %72, %14, %cst_38 {dimension_numbers = #tpu.dot_dimension_numbers<[1], [0], [0], [1], [0, 0, 1, 1], [], []>} : vector<8x128xbf16>, vector<128x512xbf16>, vector<8x512xf32> -> vector<8x512xf32>
    %74 = arith.addf %71, %73 : vector<8x512xf32>
    %75 = vector.extract_strided_slice %74 {offsets = [0, 0], sizes = [8, 128], strides = [1, 1]} : vector<8x512xf32> to vector<8x128xf32>
    %76 = arith.negf %75 : vector<8x128xf32>
    %77 = math.exp %76 : vector<8x128xf32>
    %cst_39 = arith.constant 1.000000e+00 : f32
    %78 = vector.broadcast %cst_39 : f32 to vector<8x128xf32>
    %79 = arith.addf %78, %77 : vector<8x128xf32>
    %80 = arith.divf %78, %79 : vector<8x128xf32>
    %81 = vector.extract_strided_slice %74 {offsets = [0, 128], sizes = [8, 128], strides = [1, 1]} : vector<8x512xf32> to vector<8x128xf32>
    %82 = arith.negf %81 : vector<8x128xf32>
    %83 = math.exp %82 : vector<8x128xf32>
    %cst_40 = arith.constant 1.000000e+00 : f32
    %84 = vector.broadcast %cst_40 : f32 to vector<8x128xf32>
    %85 = arith.addf %84, %83 : vector<8x128xf32>
    %86 = arith.divf %84, %85 : vector<8x128xf32>
    %87 = vector.extract_strided_slice %74 {offsets = [0, 256], sizes = [8, 128], strides = [1, 1]} : vector<8x512xf32> to vector<8x128xf32>
    %88 = math.tanh %87 : vector<8x128xf32>
    %89 = vector.extract_strided_slice %74 {offsets = [0, 384], sizes = [8, 128], strides = [1, 1]} : vector<8x512xf32> to vector<8x128xf32>
    %90 = arith.negf %89 : vector<8x128xf32>
    %91 = math.exp %90 : vector<8x128xf32>
    %cst_41 = arith.constant 1.000000e+00 : f32
    %92 = vector.broadcast %cst_41 : f32 to vector<8x128xf32>
    %93 = arith.addf %92, %91 : vector<8x128xf32>
    %94 = arith.divf %92, %93 : vector<8x128xf32>
    %95 = arith.mulf %86, %69 : vector<8x128xf32>
    %96 = arith.mulf %80, %88 : vector<8x128xf32>
    %97 = arith.addf %95, %96 : vector<8x128xf32>
    %98 = math.tanh %97 : vector<8x128xf32>
    %99 = arith.mulf %94, %98 : vector<8x128xf32>
    %c8_i32_42 = arith.constant 8 : i32
    %100 = arith.muli %18, %c8_i32_42 : i32
    %101 = arith.addi %100, %65 : i32
    %c20_i32_43 = arith.constant 20 : i32
    %102 = arith.cmpi slt, %101, %c20_i32_43 : i32
    %103 = arith.select %102, %97, %69 : vector<8x128xf32>
    %104 = arith.select %102, %99, %68 : vector<8x128xf32>
    %c0_44 = arith.constant 0 : index
    %c0_45 = arith.constant 0 : index
    %105 = vector.load %arg11[%c0_44, %c0_45] : memref<8x128xf32, #tpu.memory_space<vmem>>, vector<8x128xf32>
    tpu.vector_store %arg11[%c0_44, %c0_45], %104 {strides = array<i32>} : memref<8x128xf32, #tpu.memory_space<vmem>>, vector<8x128xf32>,
    %c0_46 = arith.constant 0 : index
    %c0_47 = arith.constant 0 : index
    %106 = vector.load %arg12[%c0_46, %c0_47] : memref<8x128xf32, #tpu.memory_space<vmem>>, vector<8x128xf32>
    tpu.vector_store %arg12[%c0_46, %c0_47], %103 {strides = array<i32>} : memref<8x128xf32, #tpu.memory_space<vmem>>, vector<8x128xf32>,
    %107 = arith.index_cast %67 : i32 to index
    %c0_48 = arith.constant 0 : index
    %108 = vector.load %arg14[%107, %c0_48] : memref<64x128xf32, #tpu.memory_space<vmem>>, vector<8x128xf32>
    tpu.vector_store %arg14[%107, %c0_48], %104 {strides = array<i32>} : memref<64x128xf32, #tpu.memory_space<vmem>>, vector<8x128xf32>,
    %c2_i32_49 = arith.constant 2 : i32
    %c7_i32_50 = arith.constant 7 : i32
    %109 = arith.subi %c7_i32_50, %c2_i32_49 : i32
    %110 = arith.select %0, %109, %c2_i32_49 : i32
    %c8_i32_51 = arith.constant 8 : i32
    %111 = arith.muli %110, %c8_i32_51 : i32
    %112 = tpu.assume_multiple %111, 8 : i32
    %c0_52 = arith.constant 0 : index
    %c0_53 = arith.constant 0 : index
    %113 = vector.load %arg11[%c0_52, %c0_53] : memref<8x128xf32, #tpu.memory_space<vmem>>, vector<8x128xf32>
    %c0_54 = arith.constant 0 : index
    %c0_55 = arith.constant 0 : index
    %114 = vector.load %arg12[%c0_54, %c0_55] : memref<8x128xf32, #tpu.memory_space<vmem>>, vector<8x128xf32>
    %115 = arith.index_cast %112 : i32 to index
    %c0_56 = arith.constant 0 : index
    %116 = vector.load %arg13[%115, %c0_56] : memref<64x512xf32, #tpu.memory_space<vmem>>, vector<8x512xf32>
    %117 = arith.truncf %113 : vector<8x128xf32> to vector<8x128xbf16>
    %cst_57 = arith.constant dense<0.000000e+00> : vector<8x512xf32>
    %118 = tpu.matmul %117, %14, %cst_57 {dimension_numbers = #tpu.dot_dimension_numbers<[1], [0], [0], [1], [0, 0, 1, 1], [], []>} : vector<8x128xbf16>, vector<128x512xbf16>, vector<8x512xf32> -> vector<8x512xf32>
    %119 = arith.addf %116, %118 : vector<8x512xf32>
    %120 = vector.extract_strided_slice %119 {offsets = [0, 0], sizes = [8, 128], strides = [1, 1]} : vector<8x512xf32> to vector<8x128xf32>
    %121 = arith.negf %120 : vector<8x128xf32>
    %122 = math.exp %121 : vector<8x128xf32>
    %cst_58 = arith.constant 1.000000e+00 : f32
    %123 = vector.broadcast %cst_58 : f32 to vector<8x128xf32>
    %124 = arith.addf %123, %122 : vector<8x128xf32>
    %125 = arith.divf %123, %124 : vector<8x128xf32>
    %126 = vector.extract_strided_slice %119 {offsets = [0, 128], sizes = [8, 128], strides = [1, 1]} : vector<8x512xf32> to vector<8x128xf32>
    %127 = arith.negf %126 : vector<8x128xf32>
    %128 = math.exp %127 : vector<8x128xf32>
    %cst_59 = arith.constant 1.000000e+00 : f32
    %129 = vector.broadcast %cst_59 : f32 to vector<8x128xf32>
    %130 = arith.addf %129, %128 : vector<8x128xf32>
    %131 = arith.divf %129, %130 : vector<8x128xf32>
    %132 = vector.extract_strided_slice %119 {offsets = [0, 256], sizes = [8, 128], strides = [1, 1]} : vector<8x512xf32> to vector<8x128xf32>
    %133 = math.tanh %132 : vector<8x128xf32>
    %134 = vector.extract_strided_slice %119 {offsets = [0, 384], sizes = [8, 128], strides = [1, 1]} : vector<8x512xf32> to vector<8x128xf32>
    %135 = arith.negf %134 : vector<8x128xf32>
    %136 = math.exp %135 : vector<8x128xf32>
    %cst_60 = arith.constant 1.000000e+00 : f32
    %137 = vector.broadcast %cst_60 : f32 to vector<8x128xf32>
    %138 = arith.addf %137, %136 : vector<8x128xf32>
    %139 = arith.divf %137, %138 : vector<8x128xf32>
    %140 = arith.mulf %131, %114 : vector<8x128xf32>
    %141 = arith.mulf %125, %133 : vector<8x128xf32>
    %142 = arith.addf %140, %141 : vector<8x128xf32>
    %143 = math.tanh %142 : vector<8x128xf32>
    %144 = arith.mulf %139, %143 : vector<8x128xf32>
    %c8_i32_61 = arith.constant 8 : i32
    %145 = arith.muli %18, %c8_i32_61 : i32
    %146 = arith.addi %145, %110 : i32
    %c20_i32_62 = arith.constant 20 : i32
    %147 = arith.cmpi slt, %146, %c20_i32_62 : i32
    %148 = arith.select %147, %142, %114 : vector<8x128xf32>
    %149 = arith.select %147, %144, %113 : vector<8x128xf32>
    %c0_63 = arith.constant 0 : index
    %c0_64 = arith.constant 0 : index
    %150 = vector.load %arg11[%c0_63, %c0_64] : memref<8x128xf32, #tpu.memory_space<vmem>>, vector<8x128xf32>
    tpu.vector_store %arg11[%c0_63, %c0_64], %149 {strides = array<i32>} : memref<8x128xf32, #tpu.memory_space<vmem>>, vector<8x128xf32>,
    %c0_65 = arith.constant 0 : index
    %c0_66 = arith.constant 0 : index
    %151 = vector.load %arg12[%c0_65, %c0_66] : memref<8x128xf32, #tpu.memory_space<vmem>>, vector<8x128xf32>
    tpu.vector_store %arg12[%c0_65, %c0_66], %148 {strides = array<i32>} : memref<8x128xf32, #tpu.memory_space<vmem>>, vector<8x128xf32>,
    %152 = arith.index_cast %112 : i32 to index
    %c0_67 = arith.constant 0 : index
    %153 = vector.load %arg14[%152, %c0_67] : memref<64x128xf32, #tpu.memory_space<vmem>>, vector<8x128xf32>
    tpu.vector_store %arg14[%152, %c0_67], %149 {strides = array<i32>} : memref<64x128xf32, #tpu.memory_space<vmem>>, vector<8x128xf32>,
    %c3_i32 = arith.constant 3 : i32
    %c7_i32_68 = arith.constant 7 : i32
    %154 = arith.subi %c7_i32_68, %c3_i32 : i32
    %155 = arith.select %0, %154, %c3_i32 : i32
    %c8_i32_69 = arith.constant 8 : i32
    %156 = arith.muli %155, %c8_i32_69 : i32
    %157 = tpu.assume_multiple %156, 8 : i32
    %c0_70 = arith.constant 0 : index
    %c0_71 = arith.constant 0 : index
    %158 = vector.load %arg11[%c0_70, %c0_71] : memref<8x128xf32, #tpu.memory_space<vmem>>, vector<8x128xf32>
    %c0_72 = arith.constant 0 : index
    %c0_73 = arith.constant 0 : index
    %159 = vector.load %arg12[%c0_72, %c0_73] : memref<8x128xf32, #tpu.memory_space<vmem>>, vector<8x128xf32>
    %160 = arith.index_cast %157 : i32 to index
    %c0_74 = arith.constant 0 : index
    %161 = vector.load %arg13[%160, %c0_74] : memref<64x512xf32, #tpu.memory_space<vmem>>, vector<8x512xf32>
    %162 = arith.truncf %158 : vector<8x128xf32> to vector<8x128xbf16>
    %cst_75 = arith.constant dense<0.000000e+00> : vector<8x512xf32>
    %163 = tpu.matmul %162, %14, %cst_75 {dimension_numbers = #tpu.dot_dimension_numbers<[1], [0], [0], [1], [0, 0, 1, 1], [], []>} : vector<8x128xbf16>, vector<128x512xbf16>, vector<8x512xf32> -> vector<8x512xf32>
    %164 = arith.addf %161, %163 : vector<8x512xf32>
    %165 = vector.extract_strided_slice %164 {offsets = [0, 0], sizes = [8, 128], strides = [1, 1]} : vector<8x512xf32> to vector<8x128xf32>
    %166 = arith.negf %165 : vector<8x128xf32>
    %167 = math.exp %166 : vector<8x128xf32>
    %cst_76 = arith.constant 1.000000e+00 : f32
    %168 = vector.broadcast %cst_76 : f32 to vector<8x128xf32>
    %169 = arith.addf %168, %167 : vector<8x128xf32>
    %170 = arith.divf %168, %169 : vector<8x128xf32>
    %171 = vector.extract_strided_slice %164 {offsets = [0, 128], sizes = [8, 128], strides = [1, 1]} : vector<8x512xf32> to vector<8x128xf32>
    %172 = arith.negf %171 : vector<8x128xf32>
    %173 = math.exp %172 : vector<8x128xf32>
    %cst_77 = arith.constant 1.000000e+00 : f32
    %174 = vector.broadcast %cst_77 : f32 to vector<8x128xf32>
    %175 = arith.addf %174, %173 : vector<8x128xf32>
    %176 = arith.divf %174, %175 : vector<8x128xf32>
    %177 = vector.extract_strided_slice %164 {offsets = [0, 256], sizes = [8, 128], strides = [1, 1]} : vector<8x512xf32> to vector<8x128xf32>
    %178 = math.tanh %177 : vector<8x128xf32>
    %179 = vector.extract_strided_slice %164 {offsets = [0, 384], sizes = [8, 128], strides = [1, 1]} : vector<8x512xf32> to vector<8x128xf32>
    %180 = arith.negf %179 : vector<8x128xf32>
    %181 = math.exp %180 : vector<8x128xf32>
    %cst_78 = arith.constant 1.000000e+00 : f32
    %182 = vector.broadcast %cst_78 : f32 to vector<8x128xf32>
    %183 = arith.addf %182, %181 : vector<8x128xf32>
    %184 = arith.divf %182, %183 : vector<8x128xf32>
    %185 = arith.mulf %176, %159 : vector<8x128xf32>
    %186 = arith.mulf %170, %178 : vector<8x128xf32>
    %187 = arith.addf %185, %186 : vector<8x128xf32>
    %188 = math.tanh %187 : vector<8x128xf32>
    %189 = arith.mulf %184, %188 : vector<8x128xf32>
    %c8_i32_79 = arith.constant 8 : i32
    %190 = arith.muli %18, %c8_i32_79 : i32
    %191 = arith.addi %190, %155 : i32
    %c20_i32_80 = arith.constant 20 : i32
    %192 = arith.cmpi slt, %191, %c20_i32_80 : i32
    %193 = arith.select %192, %187, %159 : vector<8x128xf32>
    %194 = arith.select %192, %189, %158 : vector<8x128xf32>
    %c0_81 = arith.constant 0 : index
    %c0_82 = arith.constant 0 : index
    %195 = vector.load %arg11[%c0_81, %c0_82] : memref<8x128xf32, #tpu.memory_space<vmem>>, vector<8x128xf32>
    tpu.vector_store %arg11[%c0_81, %c0_82], %194 {strides = array<i32>} : memref<8x128xf32, #tpu.memory_space<vmem>>, vector<8x128xf32>,
    %c0_83 = arith.constant 0 : index
    %c0_84 = arith.constant 0 : index
    %196 = vector.load %arg12[%c0_83, %c0_84] : memref<8x128xf32, #tpu.memory_space<vmem>>, vector<8x128xf32>
    tpu.vector_store %arg12[%c0_83, %c0_84], %193 {strides = array<i32>} : memref<8x128xf32, #tpu.memory_space<vmem>>, vector<8x128xf32>,
    %197 = arith.index_cast %157 : i32 to index
    %c0_85 = arith.constant 0 : index
    %198 = vector.load %arg14[%197, %c0_85] : memref<64x128xf32, #tpu.memory_space<vmem>>, vector<8x128xf32>
    tpu.vector_store %arg14[%197, %c0_85], %194 {strides = array<i32>} : memref<64x128xf32, #tpu.memory_space<vmem>>, vector<8x128xf32>,
    %c4_i32 = arith.constant 4 : i32
    %c7_i32_86 = arith.constant 7 : i32
    %199 = arith.subi %c7_i32_86, %c4_i32 : i32
    %200 = arith.select %0, %199, %c4_i32 : i32
    %c8_i32_87 = arith.constant 8 : i32
    %201 = arith.muli %200, %c8_i32_87 : i32
    %202 = tpu.assume_multiple %201, 8 : i32
    %c0_88 = arith.constant 0 : index
    %c0_89 = arith.constant 0 : index
    %203 = vector.load %arg11[%c0_88, %c0_89] : memref<8x128xf32, #tpu.memory_space<vmem>>, vector<8x128xf32>
    %c0_90 = arith.constant 0 : index
    %c0_91 = arith.constant 0 : index
    %204 = vector.load %arg12[%c0_90, %c0_91] : memref<8x128xf32, #tpu.memory_space<vmem>>, vector<8x128xf32>
    %205 = arith.index_cast %202 : i32 to index
    %c0_92 = arith.constant 0 : index
    %206 = vector.load %arg13[%205, %c0_92] : memref<64x512xf32, #tpu.memory_space<vmem>>, vector<8x512xf32>
    %207 = arith.truncf %203 : vector<8x128xf32> to vector<8x128xbf16>
    %cst_93 = arith.constant dense<0.000000e+00> : vector<8x512xf32>
    %208 = tpu.matmul %207, %14, %cst_93 {dimension_numbers = #tpu.dot_dimension_numbers<[1], [0], [0], [1], [0, 0, 1, 1], [], []>} : vector<8x128xbf16>, vector<128x512xbf16>, vector<8x512xf32> -> vector<8x512xf32>
    %209 = arith.addf %206, %208 : vector<8x512xf32>
    %210 = vector.extract_strided_slice %209 {offsets = [0, 0], sizes = [8, 128], strides = [1, 1]} : vector<8x512xf32> to vector<8x128xf32>
    %211 = arith.negf %210 : vector<8x128xf32>
    %212 = math.exp %211 : vector<8x128xf32>
    %cst_94 = arith.constant 1.000000e+00 : f32
    %213 = vector.broadcast %cst_94 : f32 to vector<8x128xf32>
    %214 = arith.addf %213, %212 : vector<8x128xf32>
    %215 = arith.divf %213, %214 : vector<8x128xf32>
    %216 = vector.extract_strided_slice %209 {offsets = [0, 128], sizes = [8, 128], strides = [1, 1]} : vector<8x512xf32> to vector<8x128xf32>
    %217 = arith.negf %216 : vector<8x128xf32>
    %218 = math.exp %217 : vector<8x128xf32>
    %cst_95 = arith.constant 1.000000e+00 : f32
    %219 = vector.broadcast %cst_95 : f32 to vector<8x128xf32>
    %220 = arith.addf %219, %218 : vector<8x128xf32>
    %221 = arith.divf %219, %220 : vector<8x128xf32>
    %222 = vector.extract_strided_slice %209 {offsets = [0, 256], sizes = [8, 128], strides = [1, 1]} : vector<8x512xf32> to vector<8x128xf32>
    %223 = math.tanh %222 : vector<8x128xf32>
    %224 = vector.extract_strided_slice %209 {offsets = [0, 384], sizes = [8, 128], strides = [1, 1]} : vector<8x512xf32> to vector<8x128xf32>
    %225 = arith.negf %224 : vector<8x128xf32>
    %226 = math.exp %225 : vector<8x128xf32>
    %cst_96 = arith.constant 1.000000e+00 : f32
    %227 = vector.broadcast %cst_96 : f32 to vector<8x128xf32>
    %228 = arith.addf %227, %226 : vector<8x128xf32>
    %229 = arith.divf %227, %228 : vector<8x128xf32>
    %230 = arith.mulf %221, %204 : vector<8x128xf32>
    %231 = arith.mulf %215, %223 : vector<8x128xf32>
    %232 = arith.addf %230, %231 : vector<8x128xf32>
    %233 = math.tanh %232 : vector<8x128xf32>
    %234 = arith.mulf %229, %233 : vector<8x128xf32>
    %c8_i32_97 = arith.constant 8 : i32
    %235 = arith.muli %18, %c8_i32_97 : i32
    %236 = arith.addi %235, %200 : i32
    %c20_i32_98 = arith.constant 20 : i32
    %237 = arith.cmpi slt, %236, %c20_i32_98 : i32
    %238 = arith.select %237, %232, %204 : vector<8x128xf32>
    %239 = arith.select %237, %234, %203 : vector<8x128xf32>
    %c0_99 = arith.constant 0 : index
    %c0_100 = arith.constant 0 : index
    %240 = vector.load %arg11[%c0_99, %c0_100] : memref<8x128xf32, #tpu.memory_space<vmem>>, vector<8x128xf32>
    tpu.vector_store %arg11[%c0_99, %c0_100], %239 {strides = array<i32>} : memref<8x128xf32, #tpu.memory_space<vmem>>, vector<8x128xf32>,
    %c0_101 = arith.constant 0 : index
    %c0_102 = arith.constant 0 : index
    %241 = vector.load %arg12[%c0_101, %c0_102] : memref<8x128xf32, #tpu.memory_space<vmem>>, vector<8x128xf32>
    tpu.vector_store %arg12[%c0_101, %c0_102], %238 {strides = array<i32>} : memref<8x128xf32, #tpu.memory_space<vmem>>, vector<8x128xf32>,
    %242 = arith.index_cast %202 : i32 to index
    %c0_103 = arith.constant 0 : index
    %243 = vector.load %arg14[%242, %c0_103] : memref<64x128xf32, #tpu.memory_space<vmem>>, vector<8x128xf32>
    tpu.vector_store %arg14[%242, %c0_103], %239 {strides = array<i32>} : memref<64x128xf32, #tpu.memory_space<vmem>>, vector<8x128xf32>,
    %c5_i32 = arith.constant 5 : i32
    %c7_i32_104 = arith.constant 7 : i32
    %244 = arith.subi %c7_i32_104, %c5_i32 : i32
    %245 = arith.select %0, %244, %c5_i32 : i32
    %c8_i32_105 = arith.constant 8 : i32
    %246 = arith.muli %245, %c8_i32_105 : i32
    %247 = tpu.assume_multiple %246, 8 : i32
    %c0_106 = arith.constant 0 : index
    %c0_107 = arith.constant 0 : index
    %248 = vector.load %arg11[%c0_106, %c0_107] : memref<8x128xf32, #tpu.memory_space<vmem>>, vector<8x128xf32>
    %c0_108 = arith.constant 0 : index
    %c0_109 = arith.constant 0 : index
    %249 = vector.load %arg12[%c0_108, %c0_109] : memref<8x128xf32, #tpu.memory_space<vmem>>, vector<8x128xf32>
    %250 = arith.index_cast %247 : i32 to index
    %c0_110 = arith.constant 0 : index
    %251 = vector.load %arg13[%250, %c0_110] : memref<64x512xf32, #tpu.memory_space<vmem>>, vector<8x512xf32>
    %252 = arith.truncf %248 : vector<8x128xf32> to vector<8x128xbf16>
    %cst_111 = arith.constant dense<0.000000e+00> : vector<8x512xf32>
    %253 = tpu.matmul %252, %14, %cst_111 {dimension_numbers = #tpu.dot_dimension_numbers<[1], [0], [0], [1], [0, 0, 1, 1], [], []>} : vector<8x128xbf16>, vector<128x512xbf16>, vector<8x512xf32> -> vector<8x512xf32>
    %254 = arith.addf %251, %253 : vector<8x512xf32>
    %255 = vector.extract_strided_slice %254 {offsets = [0, 0], sizes = [8, 128], strides = [1, 1]} : vector<8x512xf32> to vector<8x128xf32>
    %256 = arith.negf %255 : vector<8x128xf32>
    %257 = math.exp %256 : vector<8x128xf32>
    %cst_112 = arith.constant 1.000000e+00 : f32
    %258 = vector.broadcast %cst_112 : f32 to vector<8x128xf32>
    %259 = arith.addf %258, %257 : vector<8x128xf32>
    %260 = arith.divf %258, %259 : vector<8x128xf32>
    %261 = vector.extract_strided_slice %254 {offsets = [0, 128], sizes = [8, 128], strides = [1, 1]} : vector<8x512xf32> to vector<8x128xf32>
    %262 = arith.negf %261 : vector<8x128xf32>
    %263 = math.exp %262 : vector<8x128xf32>
    %cst_113 = arith.constant 1.000000e+00 : f32
    %264 = vector.broadcast %cst_113 : f32 to vector<8x128xf32>
    %265 = arith.addf %264, %263 : vector<8x128xf32>
    %266 = arith.divf %264, %265 : vector<8x128xf32>
    %267 = vector.extract_strided_slice %254 {offsets = [0, 256], sizes = [8, 128], strides = [1, 1]} : vector<8x512xf32> to vector<8x128xf32>
    %268 = math.tanh %267 : vector<8x128xf32>
    %269 = vector.extract_strided_slice %254 {offsets = [0, 384], sizes = [8, 128], strides = [1, 1]} : vector<8x512xf32> to vector<8x128xf32>
    %270 = arith.negf %269 : vector<8x128xf32>
    %271 = math.exp %270 : vector<8x128xf32>
    %cst_114 = arith.constant 1.000000e+00 : f32
    %272 = vector.broadcast %cst_114 : f32 to vector<8x128xf32>
    %273 = arith.addf %272, %271 : vector<8x128xf32>
    %274 = arith.divf %272, %273 : vector<8x128xf32>
    %275 = arith.mulf %266, %249 : vector<8x128xf32>
    %276 = arith.mulf %260, %268 : vector<8x128xf32>
    %277 = arith.addf %275, %276 : vector<8x128xf32>
    %278 = math.tanh %277 : vector<8x128xf32>
    %279 = arith.mulf %274, %278 : vector<8x128xf32>
    %c8_i32_115 = arith.constant 8 : i32
    %280 = arith.muli %18, %c8_i32_115 : i32
    %281 = arith.addi %280, %245 : i32
    %c20_i32_116 = arith.constant 20 : i32
    %282 = arith.cmpi slt, %281, %c20_i32_116 : i32
    %283 = arith.select %282, %277, %249 : vector<8x128xf32>
    %284 = arith.select %282, %279, %248 : vector<8x128xf32>
    %c0_117 = arith.constant 0 : index
    %c0_118 = arith.constant 0 : index
    %285 = vector.load %arg11[%c0_117, %c0_118] : memref<8x128xf32, #tpu.memory_space<vmem>>, vector<8x128xf32>
    tpu.vector_store %arg11[%c0_117, %c0_118], %284 {strides = array<i32>} : memref<8x128xf32, #tpu.memory_space<vmem>>, vector<8x128xf32>,
    %c0_119 = arith.constant 0 : index
    %c0_120 = arith.constant 0 : index
    %286 = vector.load %arg12[%c0_119, %c0_120] : memref<8x128xf32, #tpu.memory_space<vmem>>, vector<8x128xf32>
    tpu.vector_store %arg12[%c0_119, %c0_120], %283 {strides = array<i32>} : memref<8x128xf32, #tpu.memory_space<vmem>>, vector<8x128xf32>,
    %287 = arith.index_cast %247 : i32 to index
    %c0_121 = arith.constant 0 : index
    %288 = vector.load %arg14[%287, %c0_121] : memref<64x128xf32, #tpu.memory_space<vmem>>, vector<8x128xf32>
    tpu.vector_store %arg14[%287, %c0_121], %284 {strides = array<i32>} : memref<64x128xf32, #tpu.memory_space<vmem>>, vector<8x128xf32>,
    %c6_i32 = arith.constant 6 : i32
    %c7_i32_122 = arith.constant 7 : i32
    %289 = arith.subi %c7_i32_122, %c6_i32 : i32
    %290 = arith.select %0, %289, %c6_i32 : i32
    %c8_i32_123 = arith.constant 8 : i32
    %291 = arith.muli %290, %c8_i32_123 : i32
    %292 = tpu.assume_multiple %291, 8 : i32
    %c0_124 = arith.constant 0 : index
    %c0_125 = arith.constant 0 : index
    %293 = vector.load %arg11[%c0_124, %c0_125] : memref<8x128xf32, #tpu.memory_space<vmem>>, vector<8x128xf32>
    %c0_126 = arith.constant 0 : index
    %c0_127 = arith.constant 0 : index
    %294 = vector.load %arg12[%c0_126, %c0_127] : memref<8x128xf32, #tpu.memory_space<vmem>>, vector<8x128xf32>
    %295 = arith.index_cast %292 : i32 to index
    %c0_128 = arith.constant 0 : index
    %296 = vector.load %arg13[%295, %c0_128] : memref<64x512xf32, #tpu.memory_space<vmem>>, vector<8x512xf32>
    %297 = arith.truncf %293 : vector<8x128xf32> to vector<8x128xbf16>
    %cst_129 = arith.constant dense<0.000000e+00> : vector<8x512xf32>
    %298 = tpu.matmul %297, %14, %cst_129 {dimension_numbers = #tpu.dot_dimension_numbers<[1], [0], [0], [1], [0, 0, 1, 1], [], []>} : vector<8x128xbf16>, vector<128x512xbf16>, vector<8x512xf32> -> vector<8x512xf32>
    %299 = arith.addf %296, %298 : vector<8x512xf32>
    %300 = vector.extract_strided_slice %299 {offsets = [0, 0], sizes = [8, 128], strides = [1, 1]} : vector<8x512xf32> to vector<8x128xf32>
    %301 = arith.negf %300 : vector<8x128xf32>
    %302 = math.exp %301 : vector<8x128xf32>
    %cst_130 = arith.constant 1.000000e+00 : f32
    %303 = vector.broadcast %cst_130 : f32 to vector<8x128xf32>
    %304 = arith.addf %303, %302 : vector<8x128xf32>
    %305 = arith.divf %303, %304 : vector<8x128xf32>
    %306 = vector.extract_strided_slice %299 {offsets = [0, 128], sizes = [8, 128], strides = [1, 1]} : vector<8x512xf32> to vector<8x128xf32>
    %307 = arith.negf %306 : vector<8x128xf32>
    %308 = math.exp %307 : vector<8x128xf32>
    %cst_131 = arith.constant 1.000000e+00 : f32
    %309 = vector.broadcast %cst_131 : f32 to vector<8x128xf32>
    %310 = arith.addf %309, %308 : vector<8x128xf32>
    %311 = arith.divf %309, %310 : vector<8x128xf32>
    %312 = vector.extract_strided_slice %299 {offsets = [0, 256], sizes = [8, 128], strides = [1, 1]} : vector<8x512xf32> to vector<8x128xf32>
    %313 = math.tanh %312 : vector<8x128xf32>
    %314 = vector.extract_strided_slice %299 {offsets = [0, 384], sizes = [8, 128], strides = [1, 1]} : vector<8x512xf32> to vector<8x128xf32>
    %315 = arith.negf %314 : vector<8x128xf32>
    %316 = math.exp %315 : vector<8x128xf32>
    %cst_132 = arith.constant 1.000000e+00 : f32
    %317 = vector.broadcast %cst_132 : f32 to vector<8x128xf32>
    %318 = arith.addf %317, %316 : vector<8x128xf32>
    %319 = arith.divf %317, %318 : vector<8x128xf32>
    %320 = arith.mulf %311, %294 : vector<8x128xf32>
    %321 = arith.mulf %305, %313 : vector<8x128xf32>
    %322 = arith.addf %320, %321 : vector<8x128xf32>
    %323 = math.tanh %322 : vector<8x128xf32>
    %324 = arith.mulf %319, %323 : vector<8x128xf32>
    %c8_i32_133 = arith.constant 8 : i32
    %325 = arith.muli %18, %c8_i32_133 : i32
    %326 = arith.addi %325, %290 : i32
    %c20_i32_134 = arith.constant 20 : i32
    %327 = arith.cmpi slt, %326, %c20_i32_134 : i32
    %328 = arith.select %327, %322, %294 : vector<8x128xf32>
    %329 = arith.select %327, %324, %293 : vector<8x128xf32>
    %c0_135 = arith.constant 0 : index
    %c0_136 = arith.constant 0 : index
    %330 = vector.load %arg11[%c0_135, %c0_136] : memref<8x128xf32, #tpu.memory_space<vmem>>, vector<8x128xf32>
    tpu.vector_store %arg11[%c0_135, %c0_136], %329 {strides = array<i32>} : memref<8x128xf32, #tpu.memory_space<vmem>>, vector<8x128xf32>,
    %c0_137 = arith.constant 0 : index
    %c0_138 = arith.constant 0 : index
    %331 = vector.load %arg12[%c0_137, %c0_138] : memref<8x128xf32, #tpu.memory_space<vmem>>, vector<8x128xf32>
    tpu.vector_store %arg12[%c0_137, %c0_138], %328 {strides = array<i32>} : memref<8x128xf32, #tpu.memory_space<vmem>>, vector<8x128xf32>,
    %332 = arith.index_cast %292 : i32 to index
    %c0_139 = arith.constant 0 : index
    %333 = vector.load %arg14[%332, %c0_139] : memref<64x128xf32, #tpu.memory_space<vmem>>, vector<8x128xf32>
    tpu.vector_store %arg14[%332, %c0_139], %329 {strides = array<i32>} : memref<64x128xf32, #tpu.memory_space<vmem>>, vector<8x128xf32>,
    %c7_i32_140 = arith.constant 7 : i32
    %c7_i32_141 = arith.constant 7 : i32
    %334 = arith.subi %c7_i32_141, %c7_i32_140 : i32
    %335 = arith.select %0, %334, %c7_i32_140 : i32
    %c8_i32_142 = arith.constant 8 : i32
    %336 = arith.muli %335, %c8_i32_142 : i32
    %337 = tpu.assume_multiple %336, 8 : i32
    %c0_143 = arith.constant 0 : index
    %c0_144 = arith.constant 0 : index
    %338 = vector.load %arg11[%c0_143, %c0_144] : memref<8x128xf32, #tpu.memory_space<vmem>>, vector<8x128xf32>
    %c0_145 = arith.constant 0 : index
    %c0_146 = arith.constant 0 : index
    %339 = vector.load %arg12[%c0_145, %c0_146] : memref<8x128xf32, #tpu.memory_space<vmem>>, vector<8x128xf32>
    %340 = arith.index_cast %337 : i32 to index
    %c0_147 = arith.constant 0 : index
    %341 = vector.load %arg13[%340, %c0_147] : memref<64x512xf32, #tpu.memory_space<vmem>>, vector<8x512xf32>
    %342 = arith.truncf %338 : vector<8x128xf32> to vector<8x128xbf16>
    %cst_148 = arith.constant dense<0.000000e+00> : vector<8x512xf32>
    %343 = tpu.matmul %342, %14, %cst_148 {dimension_numbers = #tpu.dot_dimension_numbers<[1], [0], [0], [1], [0, 0, 1, 1], [], []>} : vector<8x128xbf16>, vector<128x512xbf16>, vector<8x512xf32> -> vector<8x512xf32>
    %344 = arith.addf %341, %343 : vector<8x512xf32>
    %345 = vector.extract_strided_slice %344 {offsets = [0, 0], sizes = [8, 128], strides = [1, 1]} : vector<8x512xf32> to vector<8x128xf32>
    %346 = arith.negf %345 : vector<8x128xf32>
    %347 = math.exp %346 : vector<8x128xf32>
    %cst_149 = arith.constant 1.000000e+00 : f32
    %348 = vector.broadcast %cst_149 : f32 to vector<8x128xf32>
    %349 = arith.addf %348, %347 : vector<8x128xf32>
    %350 = arith.divf %348, %349 : vector<8x128xf32>
    %351 = vector.extract_strided_slice %344 {offsets = [0, 128], sizes = [8, 128], strides = [1, 1]} : vector<8x512xf32> to vector<8x128xf32>
    %352 = arith.negf %351 : vector<8x128xf32>
    %353 = math.exp %352 : vector<8x128xf32>
    %cst_150 = arith.constant 1.000000e+00 : f32
    %354 = vector.broadcast %cst_150 : f32 to vector<8x128xf32>
    %355 = arith.addf %354, %353 : vector<8x128xf32>
    %356 = arith.divf %354, %355 : vector<8x128xf32>
    %357 = vector.extract_strided_slice %344 {offsets = [0, 256], sizes = [8, 128], strides = [1, 1]} : vector<8x512xf32> to vector<8x128xf32>
    %358 = math.tanh %357 : vector<8x128xf32>
    %359 = vector.extract_strided_slice %344 {offsets = [0, 384], sizes = [8, 128], strides = [1, 1]} : vector<8x512xf32> to vector<8x128xf32>
    %360 = arith.negf %359 : vector<8x128xf32>
    %361 = math.exp %360 : vector<8x128xf32>
    %cst_151 = arith.constant 1.000000e+00 : f32
    %362 = vector.broadcast %cst_151 : f32 to vector<8x128xf32>
    %363 = arith.addf %362, %361 : vector<8x128xf32>
    %364 = arith.divf %362, %363 : vector<8x128xf32>
    %365 = arith.mulf %356, %339 : vector<8x128xf32>
    %366 = arith.mulf %350, %358 : vector<8x128xf32>
    %367 = arith.addf %365, %366 : vector<8x128xf32>
    %368 = math.tanh %367 : vector<8x128xf32>
    %369 = arith.mulf %364, %368 : vector<8x128xf32>
    %c8_i32_152 = arith.constant 8 : i32
    %370 = arith.muli %18, %c8_i32_152 : i32
    %371 = arith.addi %370, %335 : i32
    %c20_i32_153 = arith.constant 20 : i32
    %372 = arith.cmpi slt, %371, %c20_i32_153 : i32
    %373 = arith.select %372, %367, %339 : vector<8x128xf32>
    %374 = arith.select %372, %369, %338 : vector<8x128xf32>
    %c0_154 = arith.constant 0 : index
    %c0_155 = arith.constant 0 : index
    %375 = vector.load %arg11[%c0_154, %c0_155] : memref<8x128xf32, #tpu.memory_space<vmem>>, vector<8x128xf32>
    tpu.vector_store %arg11[%c0_154, %c0_155], %374 {strides = array<i32>} : memref<8x128xf32, #tpu.memory_space<vmem>>, vector<8x128xf32>,
    %c0_156 = arith.constant 0 : index
    %c0_157 = arith.constant 0 : index
    %376 = vector.load %arg12[%c0_156, %c0_157] : memref<8x128xf32, #tpu.memory_space<vmem>>, vector<8x128xf32>
    tpu.vector_store %arg12[%c0_156, %c0_157], %373 {strides = array<i32>} : memref<8x128xf32, #tpu.memory_space<vmem>>, vector<8x128xf32>,
    %377 = arith.index_cast %337 : i32 to index
    %c0_158 = arith.constant 0 : index
    %378 = vector.load %arg14[%377, %c0_158] : memref<64x128xf32, #tpu.memory_space<vmem>>, vector<8x128xf32>
    tpu.vector_store %arg14[%377, %c0_158], %374 {strides = array<i32>} : memref<64x128xf32, #tpu.memory_space<vmem>>, vector<8x128xf32>,
    %c8_i32_159 = arith.constant 8 : i32
    %c0_160 = arith.constant 0 : index
    %c0_161 = arith.constant 0 : index
    %379 = vector.load %arg14[%c0_160, %c0_161] : memref<64x128xf32, #tpu.memory_space<vmem>>, vector<64x128xf32>
    %380 = arith.truncf %379 : vector<64x128xf32> to vector<64x128xbf16>
    %c0_162 = arith.constant 0 : index
    %c0_163 = arith.constant 0 : index
    %381 = vector.load %arg8[%c0_162, %c0_163] : memref<64x128xbf16, #tpu.memory_space<vmem>>, vector<64x128xbf16>
    tpu.vector_store %arg8[%c0_162, %c0_163], %380 {strides = array<i32>} : memref<64x128xbf16, #tpu.memory_space<vmem>>, vector<64x128xbf16>,
    %c2_i32_164 = arith.constant 2 : i32
    %382 = arith.cmpi eq, %arg1, %c2_i32_164 : i32
    %383 = arith.extui %382 : i1 to i32
    %c0_i32_165 = arith.constant 0 : i32
    %384 = arith.cmpi ne, %383, %c0_i32_165 : i32
    scf.if %384 {
      %c0_166 = arith.constant 0 : index
      %c0_167 = arith.constant 0 : index
      %385 = vector.load %arg11[%c0_166, %c0_167] : memref<8x128xf32, #tpu.memory_space<vmem>>, vector<8x128xf32>
      %c0_168 = arith.constant 0 : index
      %c0_169 = arith.constant 0 : index
      %c0_170 = arith.constant 0 : index
      %386 = vector.load %arg9[%c0_168, %c0_169, %c0_170] : memref<1x8x128xf32, #tpu.memory_space<vmem>>, vector<1x8x128xf32>
      %387 = vector.shape_cast %386 : vector<1x8x128xf32> to vector<8x128xf32>
      %388 = vector.shape_cast %385 : vector<8x128xf32> to vector<1x8x128xf32>
      tpu.vector_store %arg9[%c0_168, %c0_169, %c0_170], %388 {strides = array<i32>} : memref<1x8x128xf32, #tpu.memory_space<vmem>>, vector<1x8x128xf32>,
      %c0_171 = arith.constant 0 : index
      %c0_172 = arith.constant 0 : index
      %389 = vector.load %arg12[%c0_171, %c0_172] : memref<8x128xf32, #tpu.memory_space<vmem>>, vector<8x128xf32>
      %c0_173 = arith.constant 0 : index
      %c0_174 = arith.constant 0 : index
      %c0_175 = arith.constant 0 : index
      %390 = vector.load %arg10[%c0_173, %c0_174, %c0_175] : memref<1x8x128xf32, #tpu.memory_space<vmem>>, vector<1x8x128xf32>
      %391 = vector.shape_cast %390 : vector<1x8x128xf32> to vector<8x128xf32>
      %392 = vector.shape_cast %389 : vector<8x128xf32> to vector<1x8x128xf32>
      tpu.vector_store %arg10[%c0_173, %c0_174, %c0_175], %392 {strides = array<i32>} : memref<1x8x128xf32, #tpu.memory_space<vmem>>, vector<1x8x128xf32>,
    } else {
    }
    return
  }
  func.func @transform_0(%arg0: i32, %arg1: i32) -> (i32, i32) {
    %c2_i32 = arith.constant 2 : i32
    %0 = arith.muli %c2_i32, %arg1 : i32
    %c2_i32_0 = arith.constant 2 : i32
    %1 = arith.subi %c2_i32_0, %0 : i32
    %2 = arith.muli %arg0, %1 : i32
    %3 = arith.addi %2, %arg1 : i32
    %c0_i32 = arith.constant 0 : i32
    %c0_i32_1 = arith.constant 0 : i32
    return %3, %c0_i32 : i32, i32
  }
  func.func @transform_1(%arg0: i32, %arg1: i32) -> (i32, i32, i32) {
    %c0_i32 = arith.constant 0 : i32
    %c0_i32_0 = arith.constant 0 : i32
    %c0_i32_1 = arith.constant 0 : i32
    return %arg0, %c0_i32, %c0_i32_0 : i32, i32, i32
  }
  func.func @transform_2(%arg0: i32, %arg1: i32) -> (i32, i32, i32) {
    %c0_i32 = arith.constant 0 : i32
    %c0_i32_0 = arith.constant 0 : i32
    %c0_i32_1 = arith.constant 0 : i32
    return %arg0, %c0_i32, %c0_i32_0 : i32, i32, i32
  }
  func.func @transform_3(%arg0: i32, %arg1: i32) -> (i32, i32, i32) {
    %c0_i32 = arith.constant 0 : i32
    %c0_i32_0 = arith.constant 0 : i32
    %c0_i32_1 = arith.constant 0 : i32
    return %arg0, %c0_i32, %c0_i32_0 : i32, i32, i32
  }
  func.func @transform_4(%arg0: i32, %arg1: i32) -> (i32, i32, i32) {
    %c0_i32 = arith.constant 0 : i32
    %c0_i32_0 = arith.constant 0 : i32
    %c0_i32_1 = arith.constant 0 : i32
    return %arg0, %c0_i32, %c0_i32_0 : i32, i32, i32
  }
  func.func @transform_5(%arg0: i32, %arg1: i32) -> (i32, i32, i32) {
    %c0_i32 = arith.constant 0 : i32
    %c0_i32_0 = arith.constant 0 : i32
    %c0_i32_1 = arith.constant 0 : i32
    return %arg0, %c0_i32, %c0_i32_0 : i32, i32, i32
  }
  func.func @transform_6(%arg0: i32, %arg1: i32) -> (i32, i32) {
    %c2_i32 = arith.constant 2 : i32
    %0 = arith.muli %c2_i32, %arg1 : i32
    %c2_i32_0 = arith.constant 2 : i32
    %1 = arith.subi %c2_i32_0, %0 : i32
    %2 = arith.muli %arg0, %1 : i32
    %3 = arith.addi %2, %arg1 : i32
    %c0_i32 = arith.constant 0 : i32
    return %3, %arg0 : i32, i32
  }
  func.func @transform_7(%arg0: i32, %arg1: i32) -> (i32, i32, i32) {
    %c0_i32 = arith.constant 0 : i32
    %c0_i32_0 = arith.constant 0 : i32
    %c0_i32_1 = arith.constant 0 : i32
    return %arg0, %c0_i32, %c0_i32_0 : i32, i32, i32
  }
  func.func @transform_8(%arg0: i32, %arg1: i32) -> (i32, i32, i32) {
    %c0_i32 = arith.constant 0 : i32
    %c0_i32_0 = arith.constant 0 : i32
    %c0_i32_1 = arith.constant 0 : i32
    return %arg0, %c0_i32, %c0_i32_0 : i32, i32, i32
  }
}

module attributes {stable_mosaic.version = 11 : i64} {
  func.func @_lstm_layer_kernel(%arg0: i32, %arg1: i32, %arg2: memref<64x256xbf16, #tpu.memory_space<vmem>>, %arg3: memref<1x256x512xbf16, #tpu.memory_space<vmem>>, %arg4: memref<1x128x512xbf16, #tpu.memory_space<vmem>>, %arg5: memref<1x1x512xf32, #tpu.memory_space<vmem>>, %arg6: memref<1x8x128xf32, #tpu.memory_space<vmem>>, %arg7: memref<1x8x128xf32, #tpu.memory_space<vmem>>, %arg8: memref<64x128xbf16, #tpu.memory_space<vmem>>, %arg9: memref<1x8x128xf32, #tpu.memory_space<vmem>>, %arg10: memref<1x8x128xf32, #tpu.memory_space<vmem>>, %arg11: memref<8x128xf32, #tpu.memory_space<vmem>>, %arg12: memref<8x128xf32, #tpu.memory_space<vmem>>, %arg13: memref<64x512xf32, #tpu.memory_space<vmem>>, %arg14: memref<64x128xf32, #tpu.memory_space<vmem>>) attributes {dimension_semantics = [#tpu.dimension_semantics<parallel>, #tpu.dimension_semantics<arbitrary>], iteration_bounds = array<i64: 2, 3>, scalar_prefetch = 0 : i64, scratch_operands = 4 : i64, tpu.core_type = #tpu.core_type<tc>, window_params = [{transform_indices = @transform_0, window_bounds = array<i64: 64, 256>}, {transform_indices = @transform_1, window_bounds = array<i64: 1, 256, 512>}, {transform_indices = @transform_2, window_bounds = array<i64: 1, 128, 512>}, {transform_indices = @transform_3, window_bounds = array<i64: 1, 1, 512>}, {transform_indices = @transform_4, window_bounds = array<i64: 1, 8, 128>}, {transform_indices = @transform_5, window_bounds = array<i64: 1, 8, 128>}, {transform_indices = @transform_6, window_bounds = array<i64: 64, 128>}, {transform_indices = @transform_7, window_bounds = array<i64: 1, 8, 128>}, {transform_indices = @transform_8, window_bounds = array<i64: 1, 8, 128>}]} {
    %c1_i32 = arith.constant 1 : i32
    %0 = arith.cmpi eq, %arg0, %c1_i32 : i32
    %c0_i32 = arith.constant 0 : i32
    %1 = arith.cmpi eq, %arg1, %c0_i32 : i32
    %2 = arith.extui %1 : i1 to i32
    %c0_i32_0 = arith.constant 0 : i32
    %3 = arith.cmpi ne, %2, %c0_i32_0 : i32
    scf.if %3 {
      %c0_166 = arith.constant 0 : index
      %c0_167 = arith.constant 0 : index
      %c0_168 = arith.constant 0 : index
      %385 = vector.load %arg6[%c0_166, %c0_167, %c0_168] : memref<1x8x128xf32, #tpu.memory_space<vmem>>, vector<1x8x128xf32>
      %386 = vector.shape_cast %385 : vector<1x8x128xf32> to vector<8x128xf32>
      %c0_169 = arith.constant 0 : index
      %c0_170 = arith.constant 0 : index
      %387 = vector.load %arg11[%c0_169, %c0_170] : memref<8x128xf32, #tpu.memory_space<vmem>>, vector<8x128xf32>
      tpu.vector_store %arg11[%c0_169, %c0_170], %386 {strides = array<i32>} : memref<8x128xf32, #tpu.memory_space<vmem>>, vector<8x128xf32>,
      %c0_171 = arith.constant 0 : index
      %c0_172 = arith.constant 0 : index
      %c0_173 = arith.constant 0 : index
      %388 = vector.load %arg7[%c0_171, %c0_172, %c0_173] : memref<1x8x128xf32, #tpu.memory_space<vmem>>, vector<1x8x128xf32>
      %389 = vector.shape_cast %388 : vector<1x8x128xf32> to vector<8x128xf32>
      %c0_174 = arith.constant 0 : index
      %c0_175 = arith.constant 0 : index
      %390 = vector.load %arg12[%c0_174, %c0_175] : memref<8x128xf32, #tpu.memory_space<vmem>>, vector<8x128xf32>
      tpu.vector_store %arg12[%c0_174, %c0_175], %389 {strides = array<i32>} : memref<8x128xf32, #tpu.memory_space<vmem>>, vector<8x128xf32>,
    } else {
    }
    %c0 = arith.constant 0 : index
    %c0_1 = arith.constant 0 : index
    %4 = vector.load %arg2[%c0, %c0_1] : memref<64x256xbf16, #tpu.memory_space<vmem>>, vector<64x256xbf16>
    %c0_2 = arith.constant 0 : index
    %c0_3 = arith.constant 0 : index
    %c0_4 = arith.constant 0 : index
    %5 = vector.load %arg3[%c0_2, %c0_3, %c0_4] : memref<1x256x512xbf16, #tpu.memory_space<vmem>>, vector<1x256x512xbf16>
    %6 = vector.shape_cast %5 : vector<1x256x512xbf16> to vector<256x512xbf16>
    %cst = arith.constant dense<0.000000e+00> : vector<64x512xf32>
    %7 = tpu.matmul %4, %6, %cst {dimension_numbers = #tpu.dot_dimension_numbers<[1], [0], [0], [1], [0, 0, 1, 1], [], []>} : vector<64x256xbf16>, vector<256x512xbf16>, vector<64x512xf32> -> vector<64x512xf32>
    %c0_5 = arith.constant 0 : index
    %c0_6 = arith.constant 0 : index
    %c0_7 = arith.constant 0 : index
    %8 = vector.load %arg5[%c0_5, %c0_6, %c0_7] : memref<1x1x512xf32, #tpu.memory_space<vmem>>, vector<1x1x512xf32>
    %9 = vector.shape_cast %8 : vector<1x1x512xf32> to vector<1x512xf32>
    %10 = vector.broadcast %9 : vector<1x512xf32> to vector<64x512xf32>
    %11 = arith.addf %7, %10 : vector<64x512xf32>
    %c0_8 = arith.constant 0 : index
    %c0_9 = arith.constant 0 : index
    %12 = vector.load %arg13[%c0_8, %c0_9] : memref<64x512xf32, #tpu.memory_space<vmem>>, vector<64x512xf32>
    tpu.vector_store %arg13[%c0_8, %c0_9], %11 {strides = array<i32>} : memref<64x512xf32, #tpu.memory_space<vmem>>, vector<64x512xf32>,
    %c0_10 = arith.constant 0 : index
    %c0_11 = arith.constant 0 : index
    %c0_12 = arith.constant 0 : index
    %13 = vector.load %arg4[%c0_10, %c0_11, %c0_12] : memref<1x128x512xbf16, #tpu.memory_space<vmem>>, vector<1x128x512xbf16>
    %14 = vector.shape_cast %13 : vector<1x128x512xbf16> to vector<128x512xbf16>
    %c2_i32 = arith.constant 2 : i32
    %15 = arith.muli %c2_i32, %arg1 : i32
    %c2_i32_13 = arith.constant 2 : i32
    %16 = arith.subi %c2_i32_13, %15 : i32
    %17 = arith.muli %arg0, %16 : i32
    %18 = arith.addi %17, %arg1 : i32
    %c0_i32_14 = arith.constant 0 : i32
    %c7_i32 = arith.constant 7 : i32
    %19 = arith.subi %c7_i32, %c0_i32_14 : i32
    %20 = arith.select %0, %19, %c0_i32_14 : i32
    %c8_i32 = arith.constant 8 : i32
    %21 = arith.muli %20, %c8_i32 : i32
    %22 = tpu.assume_multiple %21, 8 : i32
    %c0_15 = arith.constant 0 : index
    %c0_16 = arith.constant 0 : index
    %23 = vector.load %arg11[%c0_15, %c0_16] : memref<8x128xf32, #tpu.memory_space<vmem>>, vector<8x128xf32>
    %c0_17 = arith.constant 0 : index
    %c0_18 = arith.constant 0 : index
    %24 = vector.load %arg12[%c0_17, %c0_18] : memref<8x128xf32, #tpu.memory_space<vmem>>, vector<8x128xf32>
    %25 = arith.index_cast %22 : i32 to index
    %c0_19 = arith.constant 0 : index
    %26 = vector.load %arg13[%25, %c0_19] : memref<64x512xf32, #tpu.memory_space<vmem>>, vector<8x512xf32>
    %27 = arith.truncf %23 : vector<8x128xf32> to vector<8x128xbf16>
    %cst_20 = arith.constant dense<0.000000e+00> : vector<8x512xf32>
    %28 = tpu.matmul %27, %14, %cst_20 {dimension_numbers = #tpu.dot_dimension_numbers<[1], [0], [0], [1], [0, 0, 1, 1], [], []>} : vector<8x128xbf16>, vector<128x512xbf16>, vector<8x512xf32> -> vector<8x512xf32>
    %29 = arith.addf %26, %28 : vector<8x512xf32>
    %30 = vector.extract_strided_slice %29 {offsets = [0, 0], sizes = [8, 128], strides = [1, 1]} : vector<8x512xf32> to vector<8x128xf32>
    %31 = arith.negf %30 : vector<8x128xf32>
    %32 = math.exp %31 : vector<8x128xf32>
    %cst_21 = arith.constant 1.000000e+00 : f32
    %33 = vector.broadcast %cst_21 : f32 to vector<8x128xf32>
    %34 = arith.addf %33, %32 : vector<8x128xf32>
    %35 = arith.divf %33, %34 : vector<8x128xf32>
    %36 = vector.extract_strided_slice %29 {offsets = [0, 128], sizes = [8, 128], strides = [1, 1]} : vector<8x512xf32> to vector<8x128xf32>
    %37 = arith.negf %36 : vector<8x128xf32>
    %38 = math.exp %37 : vector<8x128xf32>
    %cst_22 = arith.constant 1.000000e+00 : f32
    %39 = vector.broadcast %cst_22 : f32 to vector<8x128xf32>
    %40 = arith.addf %39, %38 : vector<8x128xf32>
    %41 = arith.divf %39, %40 : vector<8x128xf32>
    %42 = vector.extract_strided_slice %29 {offsets = [0, 256], sizes = [8, 128], strides = [1, 1]} : vector<8x512xf32> to vector<8x128xf32>
    %43 = math.tanh %42 : vector<8x128xf32>
    %44 = vector.extract_strided_slice %29 {offsets = [0, 384], sizes = [8, 128], strides = [1, 1]} : vector<8x512xf32> to vector<8x128xf32>
    %45 = arith.negf %44 : vector<8x128xf32>
    %46 = math.exp %45 : vector<8x128xf32>
    %cst_23 = arith.constant 1.000000e+00 : f32
    %47 = vector.broadcast %cst_23 : f32 to vector<8x128xf32>
    %48 = arith.addf %47, %46 : vector<8x128xf32>
    %49 = arith.divf %47, %48 : vector<8x128xf32>
    %50 = arith.mulf %41, %24 : vector<8x128xf32>
    %51 = arith.mulf %35, %43 : vector<8x128xf32>
    %52 = arith.addf %50, %51 : vector<8x128xf32>
    %53 = math.tanh %52 : vector<8x128xf32>
    %54 = arith.mulf %49, %53 : vector<8x128xf32>
    %c8_i32_24 = arith.constant 8 : i32
    %55 = arith.muli %18, %c8_i32_24 : i32
    %56 = arith.addi %55, %20 : i32
    %c20_i32 = arith.constant 20 : i32
    %57 = arith.cmpi slt, %56, %c20_i32 : i32
    %58 = arith.select %57, %52, %24 : vector<8x128xf32>
    %59 = arith.select %57, %54, %23 : vector<8x128xf32>
    %c0_25 = arith.constant 0 : index
    %c0_26 = arith.constant 0 : index
    %60 = vector.load %arg11[%c0_25, %c0_26] : memref<8x128xf32, #tpu.memory_space<vmem>>, vector<8x128xf32>
    tpu.vector_store %arg11[%c0_25, %c0_26], %59 {strides = array<i32>} : memref<8x128xf32, #tpu.memory_space<vmem>>, vector<8x128xf32>,
    %c0_27 = arith.constant 0 : index
    %c0_28 = arith.constant 0 : index
    %61 = vector.load %arg12[%c0_27, %c0_28] : memref<8x128xf32, #tpu.memory_space<vmem>>, vector<8x128xf32>
    tpu.vector_store %arg12[%c0_27, %c0_28], %58 {strides = array<i32>} : memref<8x128xf32, #tpu.memory_space<vmem>>, vector<8x128xf32>,
    %62 = arith.index_cast %22 : i32 to index
    %c0_29 = arith.constant 0 : index
    %63 = vector.load %arg14[%62, %c0_29] : memref<64x128xf32, #tpu.memory_space<vmem>>, vector<8x128xf32>
    tpu.vector_store %arg14[%62, %c0_29], %59 {strides = array<i32>} : memref<64x128xf32, #tpu.memory_space<vmem>>, vector<8x128xf32>,
    %c1_i32_30 = arith.constant 1 : i32
    %c7_i32_31 = arith.constant 7 : i32
    %64 = arith.subi %c7_i32_31, %c1_i32_30 : i32
    %65 = arith.select %0, %64, %c1_i32_30 : i32
    %c8_i32_32 = arith.constant 8 : i32
    %66 = arith.muli %65, %c8_i32_32 : i32
    %67 = tpu.assume_multiple %66, 8 : i32
    %c0_33 = arith.constant 0 : index
    %c0_34 = arith.constant 0 : index
    %68 = vector.load %arg11[%c0_33, %c0_34] : memref<8x128xf32, #tpu.memory_space<vmem>>, vector<8x128xf32>
    %c0_35 = arith.constant 0 : index
    %c0_36 = arith.constant 0 : index
    %69 = vector.load %arg12[%c0_35, %c0_36] : memref<8x128xf32, #tpu.memory_space<vmem>>, vector<8x128xf32>
    %70 = arith.index_cast %67 : i32 to index
    %c0_37 = arith.constant 0 : index
    %71 = vector.load %arg13[%70, %c0_37] : memref<64x512xf32, #tpu.memory_space<vmem>>, vector<8x512xf32>
    %72 = arith.truncf %68 : vector<8x128xf32> to vector<8x128xbf16>
    %cst_38 = arith.constant dense<0.000000e+00> : vector<8x512xf32>
    %73 = tpu.matmul %72, %14, %cst_38 {dimension_numbers = #tpu.dot_dimension_numbers<[1], [0], [0], [1], [0, 0, 1, 1], [], []>} : vector<8x128xbf16>, vector<128x512xbf16>, vector<8x512xf32> -> vector<8x512xf32>
    %74 = arith.addf %71, %73 : vector<8x512xf32>
    %75 = vector.extract_strided_slice %74 {offsets = [0, 0], sizes = [8, 128], strides = [1, 1]} : vector<8x512xf32> to vector<8x128xf32>
    %76 = arith.negf %75 : vector<8x128xf32>
    %77 = math.exp %76 : vector<8x128xf32>
    %cst_39 = arith.constant 1.000000e+00 : f32
    %78 = vector.broadcast %cst_39 : f32 to vector<8x128xf32>
    %79 = arith.addf %78, %77 : vector<8x128xf32>
    %80 = arith.divf %78, %79 : vector<8x128xf32>
    %81 = vector.extract_strided_slice %74 {offsets = [0, 128], sizes = [8, 128], strides = [1, 1]} : vector<8x512xf32> to vector<8x128xf32>
    %82 = arith.negf %81 : vector<8x128xf32>
    %83 = math.exp %82 : vector<8x128xf32>
    %cst_40 = arith.constant 1.000000e+00 : f32
    %84 = vector.broadcast %cst_40 : f32 to vector<8x128xf32>
    %85 = arith.addf %84, %83 : vector<8x128xf32>
    %86 = arith.divf %84, %85 : vector<8x128xf32>
    %87 = vector.extract_strided_slice %74 {offsets = [0, 256], sizes = [8, 128], strides = [1, 1]} : vector<8x512xf32> to vector<8x128xf32>
    %88 = math.tanh %87 : vector<8x128xf32>
    %89 = vector.extract_strided_slice %74 {offsets = [0, 384], sizes = [8, 128], strides = [1, 1]} : vector<8x512xf32> to vector<8x128xf32>
    %90 = arith.negf %89 : vector<8x128xf32>
    %91 = math.exp %90 : vector<8x128xf32>
    %cst_41 = arith.constant 1.000000e+00 : f32
    %92 = vector.broadcast %cst_41 : f32 to vector<8x128xf32>
    %93 = arith.addf %92, %91 : vector<8x128xf32>
    %94 = arith.divf %92, %93 : vector<8x128xf32>
    %95 = arith.mulf %86, %69 : vector<8x128xf32>
    %96 = arith.mulf %80, %88 : vector<8x128xf32>
    %97 = arith.addf %95, %96 : vector<8x128xf32>
    %98 = math.tanh %97 : vector<8x128xf32>
    %99 = arith.mulf %94, %98 : vector<8x128xf32>
    %c8_i32_42 = arith.constant 8 : i32
    %100 = arith.muli %18, %c8_i32_42 : i32
    %101 = arith.addi %100, %65 : i32
    %c20_i32_43 = arith.constant 20 : i32
    %102 = arith.cmpi slt, %101, %c20_i32_43 : i32
    %103 = arith.select %102, %97, %69 : vector<8x128xf32>
    %104 = arith.select %102, %99, %68 : vector<8x128xf32>
    %c0_44 = arith.constant 0 : index
    %c0_45 = arith.constant 0 : index
    %105 = vector.load %arg11[%c0_44, %c0_45] : memref<8x128xf32, #tpu.memory_space<vmem>>, vector<8x128xf32>
    tpu.vector_store %arg11[%c0_44, %c0_45], %104 {strides = array<i32>} : memref<8x128xf32, #tpu.memory_space<vmem>>, vector<8x128xf32>,
    %c0_46 = arith.constant 0 : index
    %c0_47 = arith.constant 0 : index
    %106 = vector.load %arg12[%c0_46, %c0_47] : memref<8x128xf32, #tpu.memory_space<vmem>>, vector<8x128xf32>
    tpu.vector_store %arg12[%c0_46, %c0_47], %103 {strides = array<i32>} : memref<8x128xf32, #tpu.memory_space<vmem>>, vector<8x128xf32>,
    %107 = arith.index_cast %67 : i32 to index
    %c0_48 = arith.constant 0 : index
    %108 = vector.load %arg14[%107, %c0_48] : memref<64x128xf32, #tpu.memory_space<vmem>>, vector<8x128xf32>
    tpu.vector_store %arg14[%107, %c0_48], %104 {strides = array<i32>} : memref<64x128xf32, #tpu.memory_space<vmem>>, vector<8x128xf32>,
    %c2_i32_49 = arith.constant 2 : i32
    %c7_i32_50 = arith.constant 7 : i32
    %109 = arith.subi %c7_i32_50, %c2_i32_49 : i32
    %110 = arith.select %0, %109, %c2_i32_49 : i32
    %c8_i32_51 = arith.constant 8 : i32
    %111 = arith.muli %110, %c8_i32_51 : i32
    %112 = tpu.assume_multiple %111, 8 : i32
    %c0_52 = arith.constant 0 : index
    %c0_53 = arith.constant 0 : index
    %113 = vector.load %arg11[%c0_52, %c0_53] : memref<8x128xf32, #tpu.memory_space<vmem>>, vector<8x128xf32>
    %c0_54 = arith.constant 0 : index
    %c0_55 = arith.constant 0 : index
    %114 = vector.load %arg12[%c0_54, %c0_55] : memref<8x128xf32, #tpu.memory_space<vmem>>, vector<8x128xf32>
    %115 = arith.index_cast %112 : i32 to index
    %c0_56 = arith.constant 0 : index
    %116 = vector.load %arg13[%115, %c0_56] : memref<64x512xf32, #tpu.memory_space<vmem>>, vector<8x512xf32>
    %117 = arith.truncf %113 : vector<8x128xf32> to vector<8x128xbf16>
    %cst_57 = arith.constant dense<0.000000e+00> : vector<8x512xf32>
    %118 = tpu.matmul %117, %14, %cst_57 {dimension_numbers = #tpu.dot_dimension_numbers<[1], [0], [0], [1], [0, 0, 1, 1], [], []>} : vector<8x128xbf16>, vector<128x512xbf16>, vector<8x512xf32> -> vector<8x512xf32>
    %119 = arith.addf %116, %118 : vector<8x512xf32>
    %120 = vector.extract_strided_slice %119 {offsets = [0, 0], sizes = [8, 128], strides = [1, 1]} : vector<8x512xf32> to vector<8x128xf32>
    %121 = arith.negf %120 : vector<8x128xf32>
    %122 = math.exp %121 : vector<8x128xf32>
    %cst_58 = arith.constant 1.000000e+00 : f32
    %123 = vector.broadcast %cst_58 : f32 to vector<8x128xf32>
    %124 = arith.addf %123, %122 : vector<8x128xf32>
    %125 = arith.divf %123, %124 : vector<8x128xf32>
    %126 = vector.extract_strided_slice %119 {offsets = [0, 128], sizes = [8, 128], strides = [1, 1]} : vector<8x512xf32> to vector<8x128xf32>
    %127 = arith.negf %126 : vector<8x128xf32>
    %128 = math.exp %127 : vector<8x128xf32>
    %cst_59 = arith.constant 1.000000e+00 : f32
    %129 = vector.broadcast %cst_59 : f32 to vector<8x128xf32>
    %130 = arith.addf %129, %128 : vector<8x128xf32>
    %131 = arith.divf %129, %130 : vector<8x128xf32>
    %132 = vector.extract_strided_slice %119 {offsets = [0, 256], sizes = [8, 128], strides = [1, 1]} : vector<8x512xf32> to vector<8x128xf32>
    %133 = math.tanh %132 : vector<8x128xf32>
    %134 = vector.extract_strided_slice %119 {offsets = [0, 384], sizes = [8, 128], strides = [1, 1]} : vector<8x512xf32> to vector<8x128xf32>
    %135 = arith.negf %134 : vector<8x128xf32>
    %136 = math.exp %135 : vector<8x128xf32>
    %cst_60 = arith.constant 1.000000e+00 : f32
    %137 = vector.broadcast %cst_60 : f32 to vector<8x128xf32>
    %138 = arith.addf %137, %136 : vector<8x128xf32>
    %139 = arith.divf %137, %138 : vector<8x128xf32>
    %140 = arith.mulf %131, %114 : vector<8x128xf32>
    %141 = arith.mulf %125, %133 : vector<8x128xf32>
    %142 = arith.addf %140, %141 : vector<8x128xf32>
    %143 = math.tanh %142 : vector<8x128xf32>
    %144 = arith.mulf %139, %143 : vector<8x128xf32>
    %c8_i32_61 = arith.constant 8 : i32
    %145 = arith.muli %18, %c8_i32_61 : i32
    %146 = arith.addi %145, %110 : i32
    %c20_i32_62 = arith.constant 20 : i32
    %147 = arith.cmpi slt, %146, %c20_i32_62 : i32
    %148 = arith.select %147, %142, %114 : vector<8x128xf32>
    %149 = arith.select %147, %144, %113 : vector<8x128xf32>
    %c0_63 = arith.constant 0 : index
    %c0_64 = arith.constant 0 : index
    %150 = vector.load %arg11[%c0_63, %c0_64] : memref<8x128xf32, #tpu.memory_space<vmem>>, vector<8x128xf32>
    tpu.vector_store %arg11[%c0_63, %c0_64], %149 {strides = array<i32>} : memref<8x128xf32, #tpu.memory_space<vmem>>, vector<8x128xf32>,
    %c0_65 = arith.constant 0 : index
    %c0_66 = arith.constant 0 : index
    %151 = vector.load %arg12[%c0_65, %c0_66] : memref<8x128xf32, #tpu.memory_space<vmem>>, vector<8x128xf32>
    tpu.vector_store %arg12[%c0_65, %c0_66], %148 {strides = array<i32>} : memref<8x128xf32, #tpu.memory_space<vmem>>, vector<8x128xf32>,
    %152 = arith.index_cast %112 : i32 to index
    %c0_67 = arith.constant 0 : index
    %153 = vector.load %arg14[%152, %c0_67] : memref<64x128xf32, #tpu.memory_space<vmem>>, vector<8x128xf32>
    tpu.vector_store %arg14[%152, %c0_67], %149 {strides = array<i32>} : memref<64x128xf32, #tpu.memory_space<vmem>>, vector<8x128xf32>,
    %c3_i32 = arith.constant 3 : i32
    %c7_i32_68 = arith.constant 7 : i32
    %154 = arith.subi %c7_i32_68, %c3_i32 : i32
    %155 = arith.select %0, %154, %c3_i32 : i32
    %c8_i32_69 = arith.constant 8 : i32
    %156 = arith.muli %155, %c8_i32_69 : i32
    %157 = tpu.assume_multiple %156, 8 : i32
    %c0_70 = arith.constant 0 : index
    %c0_71 = arith.constant 0 : index
    %158 = vector.load %arg11[%c0_70, %c0_71] : memref<8x128xf32, #tpu.memory_space<vmem>>, vector<8x128xf32>
    %c0_72 = arith.constant 0 : index
    %c0_73 = arith.constant 0 : index
    %159 = vector.load %arg12[%c0_72, %c0_73] : memref<8x128xf32, #tpu.memory_space<vmem>>, vector<8x128xf32>
    %160 = arith.index_cast %157 : i32 to index
    %c0_74 = arith.constant 0 : index
    %161 = vector.load %arg13[%160, %c0_74] : memref<64x512xf32, #tpu.memory_space<vmem>>, vector<8x512xf32>
    %162 = arith.truncf %158 : vector<8x128xf32> to vector<8x128xbf16>
    %cst_75 = arith.constant dense<0.000000e+00> : vector<8x512xf32>
    %163 = tpu.matmul %162, %14, %cst_75 {dimension_numbers = #tpu.dot_dimension_numbers<[1], [0], [0], [1], [0, 0, 1, 1], [], []>} : vector<8x128xbf16>, vector<128x512xbf16>, vector<8x512xf32> -> vector<8x512xf32>
    %164 = arith.addf %161, %163 : vector<8x512xf32>
    %165 = vector.extract_strided_slice %164 {offsets = [0, 0], sizes = [8, 128], strides = [1, 1]} : vector<8x512xf32> to vector<8x128xf32>
    %166 = arith.negf %165 : vector<8x128xf32>
    %167 = math.exp %166 : vector<8x128xf32>
    %cst_76 = arith.constant 1.000000e+00 : f32
    %168 = vector.broadcast %cst_76 : f32 to vector<8x128xf32>
    %169 = arith.addf %168, %167 : vector<8x128xf32>
    %170 = arith.divf %168, %169 : vector<8x128xf32>
    %171 = vector.extract_strided_slice %164 {offsets = [0, 128], sizes = [8, 128], strides = [1, 1]} : vector<8x512xf32> to vector<8x128xf32>
    %172 = arith.negf %171 : vector<8x128xf32>
    %173 = math.exp %172 : vector<8x128xf32>
    %cst_77 = arith.constant 1.000000e+00 : f32
    %174 = vector.broadcast %cst_77 : f32 to vector<8x128xf32>
    %175 = arith.addf %174, %173 : vector<8x128xf32>
    %176 = arith.divf %174, %175 : vector<8x128xf32>
    %177 = vector.extract_strided_slice %164 {offsets = [0, 256], sizes = [8, 128], strides = [1, 1]} : vector<8x512xf32> to vector<8x128xf32>
    %178 = math.tanh %177 : vector<8x128xf32>
    %179 = vector.extract_strided_slice %164 {offsets = [0, 384], sizes = [8, 128], strides = [1, 1]} : vector<8x512xf32> to vector<8x128xf32>
    %180 = arith.negf %179 : vector<8x128xf32>
    %181 = math.exp %180 : vector<8x128xf32>
    %cst_78 = arith.constant 1.000000e+00 : f32
    %182 = vector.broadcast %cst_78 : f32 to vector<8x128xf32>
    %183 = arith.addf %182, %181 : vector<8x128xf32>
    %184 = arith.divf %182, %183 : vector<8x128xf32>
    %185 = arith.mulf %176, %159 : vector<8x128xf32>
    %186 = arith.mulf %170, %178 : vector<8x128xf32>
    %187 = arith.addf %185, %186 : vector<8x128xf32>
    %188 = math.tanh %187 : vector<8x128xf32>
    %189 = arith.mulf %184, %188 : vector<8x128xf32>
    %c8_i32_79 = arith.constant 8 : i32
    %190 = arith.muli %18, %c8_i32_79 : i32
    %191 = arith.addi %190, %155 : i32
    %c20_i32_80 = arith.constant 20 : i32
    %192 = arith.cmpi slt, %191, %c20_i32_80 : i32
    %193 = arith.select %192, %187, %159 : vector<8x128xf32>
    %194 = arith.select %192, %189, %158 : vector<8x128xf32>
    %c0_81 = arith.constant 0 : index
    %c0_82 = arith.constant 0 : index
    %195 = vector.load %arg11[%c0_81, %c0_82] : memref<8x128xf32, #tpu.memory_space<vmem>>, vector<8x128xf32>
    tpu.vector_store %arg11[%c0_81, %c0_82], %194 {strides = array<i32>} : memref<8x128xf32, #tpu.memory_space<vmem>>, vector<8x128xf32>,
    %c0_83 = arith.constant 0 : index
    %c0_84 = arith.constant 0 : index
    %196 = vector.load %arg12[%c0_83, %c0_84] : memref<8x128xf32, #tpu.memory_space<vmem>>, vector<8x128xf32>
    tpu.vector_store %arg12[%c0_83, %c0_84], %193 {strides = array<i32>} : memref<8x128xf32, #tpu.memory_space<vmem>>, vector<8x128xf32>,
    %197 = arith.index_cast %157 : i32 to index
    %c0_85 = arith.constant 0 : index
    %198 = vector.load %arg14[%197, %c0_85] : memref<64x128xf32, #tpu.memory_space<vmem>>, vector<8x128xf32>
    tpu.vector_store %arg14[%197, %c0_85], %194 {strides = array<i32>} : memref<64x128xf32, #tpu.memory_space<vmem>>, vector<8x128xf32>,
    %c4_i32 = arith.constant 4 : i32
    %c7_i32_86 = arith.constant 7 : i32
    %199 = arith.subi %c7_i32_86, %c4_i32 : i32
    %200 = arith.select %0, %199, %c4_i32 : i32
    %c8_i32_87 = arith.constant 8 : i32
    %201 = arith.muli %200, %c8_i32_87 : i32
    %202 = tpu.assume_multiple %201, 8 : i32
    %c0_88 = arith.constant 0 : index
    %c0_89 = arith.constant 0 : index
    %203 = vector.load %arg11[%c0_88, %c0_89] : memref<8x128xf32, #tpu.memory_space<vmem>>, vector<8x128xf32>
    %c0_90 = arith.constant 0 : index
    %c0_91 = arith.constant 0 : index
    %204 = vector.load %arg12[%c0_90, %c0_91] : memref<8x128xf32, #tpu.memory_space<vmem>>, vector<8x128xf32>
    %205 = arith.index_cast %202 : i32 to index
    %c0_92 = arith.constant 0 : index
    %206 = vector.load %arg13[%205, %c0_92] : memref<64x512xf32, #tpu.memory_space<vmem>>, vector<8x512xf32>
    %207 = arith.truncf %203 : vector<8x128xf32> to vector<8x128xbf16>
    %cst_93 = arith.constant dense<0.000000e+00> : vector<8x512xf32>
    %208 = tpu.matmul %207, %14, %cst_93 {dimension_numbers = #tpu.dot_dimension_numbers<[1], [0], [0], [1], [0, 0, 1, 1], [], []>} : vector<8x128xbf16>, vector<128x512xbf16>, vector<8x512xf32> -> vector<8x512xf32>
    %209 = arith.addf %206, %208 : vector<8x512xf32>
    %210 = vector.extract_strided_slice %209 {offsets = [0, 0], sizes = [8, 128], strides = [1, 1]} : vector<8x512xf32> to vector<8x128xf32>
    %211 = arith.negf %210 : vector<8x128xf32>
    %212 = math.exp %211 : vector<8x128xf32>
    %cst_94 = arith.constant 1.000000e+00 : f32
    %213 = vector.broadcast %cst_94 : f32 to vector<8x128xf32>
    %214 = arith.addf %213, %212 : vector<8x128xf32>
    %215 = arith.divf %213, %214 : vector<8x128xf32>
    %216 = vector.extract_strided_slice %209 {offsets = [0, 128], sizes = [8, 128], strides = [1, 1]} : vector<8x512xf32> to vector<8x128xf32>
    %217 = arith.negf %216 : vector<8x128xf32>
    %218 = math.exp %217 : vector<8x128xf32>
    %cst_95 = arith.constant 1.000000e+00 : f32
    %219 = vector.broadcast %cst_95 : f32 to vector<8x128xf32>
    %220 = arith.addf %219, %218 : vector<8x128xf32>
    %221 = arith.divf %219, %220 : vector<8x128xf32>
    %222 = vector.extract_strided_slice %209 {offsets = [0, 256], sizes = [8, 128], strides = [1, 1]} : vector<8x512xf32> to vector<8x128xf32>
    %223 = math.tanh %222 : vector<8x128xf32>
    %224 = vector.extract_strided_slice %209 {offsets = [0, 384], sizes = [8, 128], strides = [1, 1]} : vector<8x512xf32> to vector<8x128xf32>
    %225 = arith.negf %224 : vector<8x128xf32>
    %226 = math.exp %225 : vector<8x128xf32>
    %cst_96 = arith.constant 1.000000e+00 : f32
    %227 = vector.broadcast %cst_96 : f32 to vector<8x128xf32>
    %228 = arith.addf %227, %226 : vector<8x128xf32>
    %229 = arith.divf %227, %228 : vector<8x128xf32>
    %230 = arith.mulf %221, %204 : vector<8x128xf32>
    %231 = arith.mulf %215, %223 : vector<8x128xf32>
    %232 = arith.addf %230, %231 : vector<8x128xf32>
    %233 = math.tanh %232 : vector<8x128xf32>
    %234 = arith.mulf %229, %233 : vector<8x128xf32>
    %c8_i32_97 = arith.constant 8 : i32
    %235 = arith.muli %18, %c8_i32_97 : i32
    %236 = arith.addi %235, %200 : i32
    %c20_i32_98 = arith.constant 20 : i32
    %237 = arith.cmpi slt, %236, %c20_i32_98 : i32
    %238 = arith.select %237, %232, %204 : vector<8x128xf32>
    %239 = arith.select %237, %234, %203 : vector<8x128xf32>
    %c0_99 = arith.constant 0 : index
    %c0_100 = arith.constant 0 : index
    %240 = vector.load %arg11[%c0_99, %c0_100] : memref<8x128xf32, #tpu.memory_space<vmem>>, vector<8x128xf32>
    tpu.vector_store %arg11[%c0_99, %c0_100], %239 {strides = array<i32>} : memref<8x128xf32, #tpu.memory_space<vmem>>, vector<8x128xf32>,
    %c0_101 = arith.constant 0 : index
    %c0_102 = arith.constant 0 : index
    %241 = vector.load %arg12[%c0_101, %c0_102] : memref<8x128xf32, #tpu.memory_space<vmem>>, vector<8x128xf32>
    tpu.vector_store %arg12[%c0_101, %c0_102], %238 {strides = array<i32>} : memref<8x128xf32, #tpu.memory_space<vmem>>, vector<8x128xf32>,
    %242 = arith.index_cast %202 : i32 to index
    %c0_103 = arith.constant 0 : index
    %243 = vector.load %arg14[%242, %c0_103] : memref<64x128xf32, #tpu.memory_space<vmem>>, vector<8x128xf32>
    tpu.vector_store %arg14[%242, %c0_103], %239 {strides = array<i32>} : memref<64x128xf32, #tpu.memory_space<vmem>>, vector<8x128xf32>,
    %c5_i32 = arith.constant 5 : i32
    %c7_i32_104 = arith.constant 7 : i32
    %244 = arith.subi %c7_i32_104, %c5_i32 : i32
    %245 = arith.select %0, %244, %c5_i32 : i32
    %c8_i32_105 = arith.constant 8 : i32
    %246 = arith.muli %245, %c8_i32_105 : i32
    %247 = tpu.assume_multiple %246, 8 : i32
    %c0_106 = arith.constant 0 : index
    %c0_107 = arith.constant 0 : index
    %248 = vector.load %arg11[%c0_106, %c0_107] : memref<8x128xf32, #tpu.memory_space<vmem>>, vector<8x128xf32>
    %c0_108 = arith.constant 0 : index
    %c0_109 = arith.constant 0 : index
    %249 = vector.load %arg12[%c0_108, %c0_109] : memref<8x128xf32, #tpu.memory_space<vmem>>, vector<8x128xf32>
    %250 = arith.index_cast %247 : i32 to index
    %c0_110 = arith.constant 0 : index
    %251 = vector.load %arg13[%250, %c0_110] : memref<64x512xf32, #tpu.memory_space<vmem>>, vector<8x512xf32>
    %252 = arith.truncf %248 : vector<8x128xf32> to vector<8x128xbf16>
    %cst_111 = arith.constant dense<0.000000e+00> : vector<8x512xf32>
    %253 = tpu.matmul %252, %14, %cst_111 {dimension_numbers = #tpu.dot_dimension_numbers<[1], [0], [0], [1], [0, 0, 1, 1], [], []>} : vector<8x128xbf16>, vector<128x512xbf16>, vector<8x512xf32> -> vector<8x512xf32>
    %254 = arith.addf %251, %253 : vector<8x512xf32>
    %255 = vector.extract_strided_slice %254 {offsets = [0, 0], sizes = [8, 128], strides = [1, 1]} : vector<8x512xf32> to vector<8x128xf32>
    %256 = arith.negf %255 : vector<8x128xf32>
    %257 = math.exp %256 : vector<8x128xf32>
    %cst_112 = arith.constant 1.000000e+00 : f32
    %258 = vector.broadcast %cst_112 : f32 to vector<8x128xf32>
    %259 = arith.addf %258, %257 : vector<8x128xf32>
    %260 = arith.divf %258, %259 : vector<8x128xf32>
    %261 = vector.extract_strided_slice %254 {offsets = [0, 128], sizes = [8, 128], strides = [1, 1]} : vector<8x512xf32> to vector<8x128xf32>
    %262 = arith.negf %261 : vector<8x128xf32>
    %263 = math.exp %262 : vector<8x128xf32>
    %cst_113 = arith.constant 1.000000e+00 : f32
    %264 = vector.broadcast %cst_113 : f32 to vector<8x128xf32>
    %265 = arith.addf %264, %263 : vector<8x128xf32>
    %266 = arith.divf %264, %265 : vector<8x128xf32>
    %267 = vector.extract_strided_slice %254 {offsets = [0, 256], sizes = [8, 128], strides = [1, 1]} : vector<8x512xf32> to vector<8x128xf32>
    %268 = math.tanh %267 : vector<8x128xf32>
    %269 = vector.extract_strided_slice %254 {offsets = [0, 384], sizes = [8, 128], strides = [1, 1]} : vector<8x512xf32> to vector<8x128xf32>
    %270 = arith.negf %269 : vector<8x128xf32>
    %271 = math.exp %270 : vector<8x128xf32>
    %cst_114 = arith.constant 1.000000e+00 : f32
    %272 = vector.broadcast %cst_114 : f32 to vector<8x128xf32>
    %273 = arith.addf %272, %271 : vector<8x128xf32>
    %274 = arith.divf %272, %273 : vector<8x128xf32>
    %275 = arith.mulf %266, %249 : vector<8x128xf32>
    %276 = arith.mulf %260, %268 : vector<8x128xf32>
    %277 = arith.addf %275, %276 : vector<8x128xf32>
    %278 = math.tanh %277 : vector<8x128xf32>
    %279 = arith.mulf %274, %278 : vector<8x128xf32>
    %c8_i32_115 = arith.constant 8 : i32
    %280 = arith.muli %18, %c8_i32_115 : i32
    %281 = arith.addi %280, %245 : i32
    %c20_i32_116 = arith.constant 20 : i32
    %282 = arith.cmpi slt, %281, %c20_i32_116 : i32
    %283 = arith.select %282, %277, %249 : vector<8x128xf32>
    %284 = arith.select %282, %279, %248 : vector<8x128xf32>
    %c0_117 = arith.constant 0 : index
    %c0_118 = arith.constant 0 : index
    %285 = vector.load %arg11[%c0_117, %c0_118] : memref<8x128xf32, #tpu.memory_space<vmem>>, vector<8x128xf32>
    tpu.vector_store %arg11[%c0_117, %c0_118], %284 {strides = array<i32>} : memref<8x128xf32, #tpu.memory_space<vmem>>, vector<8x128xf32>,
    %c0_119 = arith.constant 0 : index
    %c0_120 = arith.constant 0 : index
    %286 = vector.load %arg12[%c0_119, %c0_120] : memref<8x128xf32, #tpu.memory_space<vmem>>, vector<8x128xf32>
    tpu.vector_store %arg12[%c0_119, %c0_120], %283 {strides = array<i32>} : memref<8x128xf32, #tpu.memory_space<vmem>>, vector<8x128xf32>,
    %287 = arith.index_cast %247 : i32 to index
    %c0_121 = arith.constant 0 : index
    %288 = vector.load %arg14[%287, %c0_121] : memref<64x128xf32, #tpu.memory_space<vmem>>, vector<8x128xf32>
    tpu.vector_store %arg14[%287, %c0_121], %284 {strides = array<i32>} : memref<64x128xf32, #tpu.memory_space<vmem>>, vector<8x128xf32>,
    %c6_i32 = arith.constant 6 : i32
    %c7_i32_122 = arith.constant 7 : i32
    %289 = arith.subi %c7_i32_122, %c6_i32 : i32
    %290 = arith.select %0, %289, %c6_i32 : i32
    %c8_i32_123 = arith.constant 8 : i32
    %291 = arith.muli %290, %c8_i32_123 : i32
    %292 = tpu.assume_multiple %291, 8 : i32
    %c0_124 = arith.constant 0 : index
    %c0_125 = arith.constant 0 : index
    %293 = vector.load %arg11[%c0_124, %c0_125] : memref<8x128xf32, #tpu.memory_space<vmem>>, vector<8x128xf32>
    %c0_126 = arith.constant 0 : index
    %c0_127 = arith.constant 0 : index
    %294 = vector.load %arg12[%c0_126, %c0_127] : memref<8x128xf32, #tpu.memory_space<vmem>>, vector<8x128xf32>
    %295 = arith.index_cast %292 : i32 to index
    %c0_128 = arith.constant 0 : index
    %296 = vector.load %arg13[%295, %c0_128] : memref<64x512xf32, #tpu.memory_space<vmem>>, vector<8x512xf32>
    %297 = arith.truncf %293 : vector<8x128xf32> to vector<8x128xbf16>
    %cst_129 = arith.constant dense<0.000000e+00> : vector<8x512xf32>
    %298 = tpu.matmul %297, %14, %cst_129 {dimension_numbers = #tpu.dot_dimension_numbers<[1], [0], [0], [1], [0, 0, 1, 1], [], []>} : vector<8x128xbf16>, vector<128x512xbf16>, vector<8x512xf32> -> vector<8x512xf32>
    %299 = arith.addf %296, %298 : vector<8x512xf32>
    %300 = vector.extract_strided_slice %299 {offsets = [0, 0], sizes = [8, 128], strides = [1, 1]} : vector<8x512xf32> to vector<8x128xf32>
    %301 = arith.negf %300 : vector<8x128xf32>
    %302 = math.exp %301 : vector<8x128xf32>
    %cst_130 = arith.constant 1.000000e+00 : f32
    %303 = vector.broadcast %cst_130 : f32 to vector<8x128xf32>
    %304 = arith.addf %303, %302 : vector<8x128xf32>
    %305 = arith.divf %303, %304 : vector<8x128xf32>
    %306 = vector.extract_strided_slice %299 {offsets = [0, 128], sizes = [8, 128], strides = [1, 1]} : vector<8x512xf32> to vector<8x128xf32>
    %307 = arith.negf %306 : vector<8x128xf32>
    %308 = math.exp %307 : vector<8x128xf32>
    %cst_131 = arith.constant 1.000000e+00 : f32
    %309 = vector.broadcast %cst_131 : f32 to vector<8x128xf32>
    %310 = arith.addf %309, %308 : vector<8x128xf32>
    %311 = arith.divf %309, %310 : vector<8x128xf32>
    %312 = vector.extract_strided_slice %299 {offsets = [0, 256], sizes = [8, 128], strides = [1, 1]} : vector<8x512xf32> to vector<8x128xf32>
    %313 = math.tanh %312 : vector<8x128xf32>
    %314 = vector.extract_strided_slice %299 {offsets = [0, 384], sizes = [8, 128], strides = [1, 1]} : vector<8x512xf32> to vector<8x128xf32>
    %315 = arith.negf %314 : vector<8x128xf32>
    %316 = math.exp %315 : vector<8x128xf32>
    %cst_132 = arith.constant 1.000000e+00 : f32
    %317 = vector.broadcast %cst_132 : f32 to vector<8x128xf32>
    %318 = arith.addf %317, %316 : vector<8x128xf32>
    %319 = arith.divf %317, %318 : vector<8x128xf32>
    %320 = arith.mulf %311, %294 : vector<8x128xf32>
    %321 = arith.mulf %305, %313 : vector<8x128xf32>
    %322 = arith.addf %320, %321 : vector<8x128xf32>
    %323 = math.tanh %322 : vector<8x128xf32>
    %324 = arith.mulf %319, %323 : vector<8x128xf32>
    %c8_i32_133 = arith.constant 8 : i32
    %325 = arith.muli %18, %c8_i32_133 : i32
    %326 = arith.addi %325, %290 : i32
    %c20_i32_134 = arith.constant 20 : i32
    %327 = arith.cmpi slt, %326, %c20_i32_134 : i32
    %328 = arith.select %327, %322, %294 : vector<8x128xf32>
    %329 = arith.select %327, %324, %293 : vector<8x128xf32>
    %c0_135 = arith.constant 0 : index
    %c0_136 = arith.constant 0 : index
    %330 = vector.load %arg11[%c0_135, %c0_136] : memref<8x128xf32, #tpu.memory_space<vmem>>, vector<8x128xf32>
    tpu.vector_store %arg11[%c0_135, %c0_136], %329 {strides = array<i32>} : memref<8x128xf32, #tpu.memory_space<vmem>>, vector<8x128xf32>,
    %c0_137 = arith.constant 0 : index
    %c0_138 = arith.constant 0 : index
    %331 = vector.load %arg12[%c0_137, %c0_138] : memref<8x128xf32, #tpu.memory_space<vmem>>, vector<8x128xf32>
    tpu.vector_store %arg12[%c0_137, %c0_138], %328 {strides = array<i32>} : memref<8x128xf32, #tpu.memory_space<vmem>>, vector<8x128xf32>,
    %332 = arith.index_cast %292 : i32 to index
    %c0_139 = arith.constant 0 : index
    %333 = vector.load %arg14[%332, %c0_139] : memref<64x128xf32, #tpu.memory_space<vmem>>, vector<8x128xf32>
    tpu.vector_store %arg14[%332, %c0_139], %329 {strides = array<i32>} : memref<64x128xf32, #tpu.memory_space<vmem>>, vector<8x128xf32>,
    %c7_i32_140 = arith.constant 7 : i32
    %c7_i32_141 = arith.constant 7 : i32
    %334 = arith.subi %c7_i32_141, %c7_i32_140 : i32
    %335 = arith.select %0, %334, %c7_i32_140 : i32
    %c8_i32_142 = arith.constant 8 : i32
    %336 = arith.muli %335, %c8_i32_142 : i32
    %337 = tpu.assume_multiple %336, 8 : i32
    %c0_143 = arith.constant 0 : index
    %c0_144 = arith.constant 0 : index
    %338 = vector.load %arg11[%c0_143, %c0_144] : memref<8x128xf32, #tpu.memory_space<vmem>>, vector<8x128xf32>
    %c0_145 = arith.constant 0 : index
    %c0_146 = arith.constant 0 : index
    %339 = vector.load %arg12[%c0_145, %c0_146] : memref<8x128xf32, #tpu.memory_space<vmem>>, vector<8x128xf32>
    %340 = arith.index_cast %337 : i32 to index
    %c0_147 = arith.constant 0 : index
    %341 = vector.load %arg13[%340, %c0_147] : memref<64x512xf32, #tpu.memory_space<vmem>>, vector<8x512xf32>
    %342 = arith.truncf %338 : vector<8x128xf32> to vector<8x128xbf16>
    %cst_148 = arith.constant dense<0.000000e+00> : vector<8x512xf32>
    %343 = tpu.matmul %342, %14, %cst_148 {dimension_numbers = #tpu.dot_dimension_numbers<[1], [0], [0], [1], [0, 0, 1, 1], [], []>} : vector<8x128xbf16>, vector<128x512xbf16>, vector<8x512xf32> -> vector<8x512xf32>
    %344 = arith.addf %341, %343 : vector<8x512xf32>
    %345 = vector.extract_strided_slice %344 {offsets = [0, 0], sizes = [8, 128], strides = [1, 1]} : vector<8x512xf32> to vector<8x128xf32>
    %346 = arith.negf %345 : vector<8x128xf32>
    %347 = math.exp %346 : vector<8x128xf32>
    %cst_149 = arith.constant 1.000000e+00 : f32
    %348 = vector.broadcast %cst_149 : f32 to vector<8x128xf32>
    %349 = arith.addf %348, %347 : vector<8x128xf32>
    %350 = arith.divf %348, %349 : vector<8x128xf32>
    %351 = vector.extract_strided_slice %344 {offsets = [0, 128], sizes = [8, 128], strides = [1, 1]} : vector<8x512xf32> to vector<8x128xf32>
    %352 = arith.negf %351 : vector<8x128xf32>
    %353 = math.exp %352 : vector<8x128xf32>
    %cst_150 = arith.constant 1.000000e+00 : f32
    %354 = vector.broadcast %cst_150 : f32 to vector<8x128xf32>
    %355 = arith.addf %354, %353 : vector<8x128xf32>
    %356 = arith.divf %354, %355 : vector<8x128xf32>
    %357 = vector.extract_strided_slice %344 {offsets = [0, 256], sizes = [8, 128], strides = [1, 1]} : vector<8x512xf32> to vector<8x128xf32>
    %358 = math.tanh %357 : vector<8x128xf32>
    %359 = vector.extract_strided_slice %344 {offsets = [0, 384], sizes = [8, 128], strides = [1, 1]} : vector<8x512xf32> to vector<8x128xf32>
    %360 = arith.negf %359 : vector<8x128xf32>
    %361 = math.exp %360 : vector<8x128xf32>
    %cst_151 = arith.constant 1.000000e+00 : f32
    %362 = vector.broadcast %cst_151 : f32 to vector<8x128xf32>
    %363 = arith.addf %362, %361 : vector<8x128xf32>
    %364 = arith.divf %362, %363 : vector<8x128xf32>
    %365 = arith.mulf %356, %339 : vector<8x128xf32>
    %366 = arith.mulf %350, %358 : vector<8x128xf32>
    %367 = arith.addf %365, %366 : vector<8x128xf32>
    %368 = math.tanh %367 : vector<8x128xf32>
    %369 = arith.mulf %364, %368 : vector<8x128xf32>
    %c8_i32_152 = arith.constant 8 : i32
    %370 = arith.muli %18, %c8_i32_152 : i32
    %371 = arith.addi %370, %335 : i32
    %c20_i32_153 = arith.constant 20 : i32
    %372 = arith.cmpi slt, %371, %c20_i32_153 : i32
    %373 = arith.select %372, %367, %339 : vector<8x128xf32>
    %374 = arith.select %372, %369, %338 : vector<8x128xf32>
    %c0_154 = arith.constant 0 : index
    %c0_155 = arith.constant 0 : index
    %375 = vector.load %arg11[%c0_154, %c0_155] : memref<8x128xf32, #tpu.memory_space<vmem>>, vector<8x128xf32>
    tpu.vector_store %arg11[%c0_154, %c0_155], %374 {strides = array<i32>} : memref<8x128xf32, #tpu.memory_space<vmem>>, vector<8x128xf32>,
    %c0_156 = arith.constant 0 : index
    %c0_157 = arith.constant 0 : index
    %376 = vector.load %arg12[%c0_156, %c0_157] : memref<8x128xf32, #tpu.memory_space<vmem>>, vector<8x128xf32>
    tpu.vector_store %arg12[%c0_156, %c0_157], %373 {strides = array<i32>} : memref<8x128xf32, #tpu.memory_space<vmem>>, vector<8x128xf32>,
    %377 = arith.index_cast %337 : i32 to index
    %c0_158 = arith.constant 0 : index
    %378 = vector.load %arg14[%377, %c0_158] : memref<64x128xf32, #tpu.memory_space<vmem>>, vector<8x128xf32>
    tpu.vector_store %arg14[%377, %c0_158], %374 {strides = array<i32>} : memref<64x128xf32, #tpu.memory_space<vmem>>, vector<8x128xf32>,
    %c8_i32_159 = arith.constant 8 : i32
    %c0_160 = arith.constant 0 : index
    %c0_161 = arith.constant 0 : index
    %379 = vector.load %arg14[%c0_160, %c0_161] : memref<64x128xf32, #tpu.memory_space<vmem>>, vector<64x128xf32>
    %380 = arith.truncf %379 : vector<64x128xf32> to vector<64x128xbf16>
    %c0_162 = arith.constant 0 : index
    %c0_163 = arith.constant 0 : index
    %381 = vector.load %arg8[%c0_162, %c0_163] : memref<64x128xbf16, #tpu.memory_space<vmem>>, vector<64x128xbf16>
    tpu.vector_store %arg8[%c0_162, %c0_163], %380 {strides = array<i32>} : memref<64x128xbf16, #tpu.memory_space<vmem>>, vector<64x128xbf16>,
    %c2_i32_164 = arith.constant 2 : i32
    %382 = arith.cmpi eq, %arg1, %c2_i32_164 : i32
    %383 = arith.extui %382 : i1 to i32
    %c0_i32_165 = arith.constant 0 : i32
    %384 = arith.cmpi ne, %383, %c0_i32_165 : i32
    scf.if %384 {
      %c0_166 = arith.constant 0 : index
      %c0_167 = arith.constant 0 : index
      %385 = vector.load %arg11[%c0_166, %c0_167] : memref<8x128xf32, #tpu.memory_space<vmem>>, vector<8x128xf32>
      %c0_168 = arith.constant 0 : index
      %c0_169 = arith.constant 0 : index
      %c0_170 = arith.constant 0 : index
      %386 = vector.load %arg9[%c0_168, %c0_169, %c0_170] : memref<1x8x128xf32, #tpu.memory_space<vmem>>, vector<1x8x128xf32>
      %387 = vector.shape_cast %386 : vector<1x8x128xf32> to vector<8x128xf32>
      %388 = vector.shape_cast %385 : vector<8x128xf32> to vector<1x8x128xf32>
      tpu.vector_store %arg9[%c0_168, %c0_169, %c0_170], %388 {strides = array<i32>} : memref<1x8x128xf32, #tpu.memory_space<vmem>>, vector<1x8x128xf32>,
      %c0_171 = arith.constant 0 : index
      %c0_172 = arith.constant 0 : index
      %389 = vector.load %arg12[%c0_171, %c0_172] : memref<8x128xf32, #tpu.memory_space<vmem>>, vector<8x128xf32>
      %c0_173 = arith.constant 0 : index
      %c0_174 = arith.constant 0 : index
      %c0_175 = arith.constant 0 : index
      %390 = vector.load %arg10[%c0_173, %c0_174, %c0_175] : memref<1x8x128xf32, #tpu.memory_space<vmem>>, vector<1x8x128xf32>
      %391 = vector.shape_cast %390 : vector<1x8x128xf32> to vector<8x128xf32>
      %392 = vector.shape_cast %389 : vector<8x128xf32> to vector<1x8x128xf32>
      tpu.vector_store %arg10[%c0_173, %c0_174, %c0_175], %392 {strides = array<i32>} : memref<1x8x128xf32, #tpu.memory_space<vmem>>, vector<1x8x128xf32>,
    } else {
    }
    return
  }
  func.func @transform_0(%arg0: i32, %arg1: i32) -> (i32, i32) {
    %c2_i32 = arith.constant 2 : i32
    %0 = arith.muli %c2_i32, %arg1 : i32
    %c2_i32_0 = arith.constant 2 : i32
    %1 = arith.subi %c2_i32_0, %0 : i32
    %2 = arith.muli %arg0, %1 : i32
    %3 = arith.addi %2, %arg1 : i32
    %c0_i32 = arith.constant 0 : i32
    %c0_i32_1 = arith.constant 0 : i32
    return %3, %c0_i32 : i32, i32
  }
  func.func @transform_1(%arg0: i32, %arg1: i32) -> (i32, i32, i32) {
    %c0_i32 = arith.constant 0 : i32
    %c0_i32_0 = arith.constant 0 : i32
    %c0_i32_1 = arith.constant 0 : i32
    return %arg0, %c0_i32, %c0_i32_0 : i32, i32, i32
  }
  func.func @transform_2(%arg0: i32, %arg1: i32) -> (i32, i32, i32) {
    %c0_i32 = arith.constant 0 : i32
    %c0_i32_0 = arith.constant 0 : i32
    %c0_i32_1 = arith.constant 0 : i32
    return %arg0, %c0_i32, %c0_i32_0 : i32, i32, i32
  }
  func.func @transform_3(%arg0: i32, %arg1: i32) -> (i32, i32, i32) {
    %c0_i32 = arith.constant 0 : i32
    %c0_i32_0 = arith.constant 0 : i32
    %c0_i32_1 = arith.constant 0 : i32
    return %arg0, %c0_i32, %c0_i32_0 : i32, i32, i32
  }
  func.func @transform_4(%arg0: i32, %arg1: i32) -> (i32, i32, i32) {
    %c0_i32 = arith.constant 0 : i32
    %c0_i32_0 = arith.constant 0 : i32
    %c0_i32_1 = arith.constant 0 : i32
    return %arg0, %c0_i32, %c0_i32_0 : i32, i32, i32
  }
  func.func @transform_5(%arg0: i32, %arg1: i32) -> (i32, i32, i32) {
    %c0_i32 = arith.constant 0 : i32
    %c0_i32_0 = arith.constant 0 : i32
    %c0_i32_1 = arith.constant 0 : i32
    return %arg0, %c0_i32, %c0_i32_0 : i32, i32, i32
  }
  func.func @transform_6(%arg0: i32, %arg1: i32) -> (i32, i32) {
    %c2_i32 = arith.constant 2 : i32
    %0 = arith.muli %c2_i32, %arg1 : i32
    %c2_i32_0 = arith.constant 2 : i32
    %1 = arith.subi %c2_i32_0, %0 : i32
    %2 = arith.muli %arg0, %1 : i32
    %3 = arith.addi %2, %arg1 : i32
    %c0_i32 = arith.constant 0 : i32
    return %3, %arg0 : i32, i32
  }
  func.func @transform_7(%arg0: i32, %arg1: i32) -> (i32, i32, i32) {
    %c0_i32 = arith.constant 0 : i32
    %c0_i32_0 = arith.constant 0 : i32
    %c0_i32_1 = arith.constant 0 : i32
    return %arg0, %c0_i32, %c0_i32_0 : i32, i32, i32
  }
  func.func @transform_8(%arg0: i32, %arg1: i32) -> (i32, i32, i32) {
    %c0_i32 = arith.constant 0 : i32
    %c0_i32_0 = arith.constant 0 : i32
    %c0_i32_1 = arith.constant 0 : i32
    return %arg0, %c0_i32, %c0_i32_0 : i32, i32, i32
  }
}

module attributes {stable_mosaic.version = 11 : i64} {
  func.func @_matmul_bias_kernel(%arg0: i32, %arg1: i32, %arg2: i32, %arg3: memref<192x256xbf16, #tpu.memory_space<vmem>>, %arg4: memref<256x128xbf16, #tpu.memory_space<vmem>>, %arg5: memref<1x128xf32, #tpu.memory_space<vmem>>, %arg6: memref<192x128xf32, #tpu.memory_space<vmem>>, %arg7: memref<192x128xf32, #tpu.memory_space<vmem>>) attributes {dimension_semantics = [#tpu.dimension_semantics<parallel>, #tpu.dimension_semantics<parallel>, #tpu.dimension_semantics<arbitrary>], iteration_bounds = array<i64: 1, 1, 1>, scalar_prefetch = 0 : i64, scratch_operands = 1 : i64, tpu.core_type = #tpu.core_type<tc>, window_params = [{transform_indices = @transform_0, window_bounds = array<i64: 192, 256>}, {transform_indices = @transform_1, window_bounds = array<i64: 256, 128>}, {transform_indices = @transform_2, window_bounds = array<i64: 1, 128>}, {transform_indices = @transform_3, window_bounds = array<i64: 192, 128>}]} {
    %c0_i32 = arith.constant 0 : i32
    %0 = arith.cmpi eq, %arg2, %c0_i32 : i32
    %1 = arith.extui %0 : i1 to i32
    %c0_i32_0 = arith.constant 0 : i32
    %2 = arith.cmpi ne, %1, %c0_i32_0 : i32
    scf.if %2 {
      %cst_10 = arith.constant 0.000000e+00 : f32
      %12 = vector.broadcast %cst_10 : f32 to vector<192x128xf32>
      %c0_11 = arith.constant 0 : index
      %c0_12 = arith.constant 0 : index
      %13 = vector.load %arg7[%c0_11, %c0_12] : memref<192x128xf32, #tpu.memory_space<vmem>>, vector<192x128xf32>
      tpu.vector_store %arg7[%c0_11, %c0_12], %12 {strides = array<i32>} : memref<192x128xf32, #tpu.memory_space<vmem>>, vector<192x128xf32>,
    } else {
    }
    %c0 = arith.constant 0 : index
    %c0_1 = arith.constant 0 : index
    %3 = vector.load %arg7[%c0, %c0_1] : memref<192x128xf32, #tpu.memory_space<vmem>>, vector<192x128xf32>
    %c0_2 = arith.constant 0 : index
    %c0_3 = arith.constant 0 : index
    %4 = vector.load %arg3[%c0_2, %c0_3] : memref<192x256xbf16, #tpu.memory_space<vmem>>, vector<192x256xbf16>
    %c0_4 = arith.constant 0 : index
    %c0_5 = arith.constant 0 : index
    %5 = vector.load %arg4[%c0_4, %c0_5] : memref<256x128xbf16, #tpu.memory_space<vmem>>, vector<256x128xbf16>
    %cst = arith.constant dense<0.000000e+00> : vector<192x128xf32>
    %6 = tpu.matmul %4, %5, %cst {dimension_numbers = #tpu.dot_dimension_numbers<[1], [0], [0], [1], [0, 0, 1, 1], [], []>} : vector<192x256xbf16>, vector<256x128xbf16>, vector<192x128xf32> -> vector<192x128xf32>
    %7 = arith.addf %3, %6 : vector<192x128xf32>
    %c0_6 = arith.constant 0 : index
    %c0_7 = arith.constant 0 : index
    %8 = vector.load %arg7[%c0_6, %c0_7] : memref<192x128xf32, #tpu.memory_space<vmem>>, vector<192x128xf32>
    tpu.vector_store %arg7[%c0_6, %c0_7], %7 {strides = array<i32>} : memref<192x128xf32, #tpu.memory_space<vmem>>, vector<192x128xf32>,
    %c0_i32_8 = arith.constant 0 : i32
    %9 = arith.cmpi eq, %arg2, %c0_i32_8 : i32
    %10 = arith.extui %9 : i1 to i32
    %c0_i32_9 = arith.constant 0 : i32
    %11 = arith.cmpi ne, %10, %c0_i32_9 : i32
    scf.if %11 {
      %c0_10 = arith.constant 0 : index
      %c0_11 = arith.constant 0 : index
      %12 = vector.load %arg7[%c0_10, %c0_11] : memref<192x128xf32, #tpu.memory_space<vmem>>, vector<192x128xf32>
      %c0_12 = arith.constant 0 : index
      %c0_13 = arith.constant 0 : index
      %13 = vector.load %arg5[%c0_12, %c0_13] : memref<1x128xf32, #tpu.memory_space<vmem>>, vector<1x128xf32>
      %14 = vector.broadcast %13 : vector<1x128xf32> to vector<192x128xf32>
      %15 = arith.addf %12, %14 : vector<192x128xf32>
      %c0_14 = arith.constant 0 : index
      %c0_15 = arith.constant 0 : index
      %16 = vector.load %arg6[%c0_14, %c0_15] : memref<192x128xf32, #tpu.memory_space<vmem>>, vector<192x128xf32>
      tpu.vector_store %arg6[%c0_14, %c0_15], %15 {strides = array<i32>} : memref<192x128xf32, #tpu.memory_space<vmem>>, vector<192x128xf32>,
    } else {
    }
    return
  }
  func.func @transform_0(%arg0: i32, %arg1: i32, %arg2: i32) -> (i32, i32) {
    %c0_i32 = arith.constant 0 : i32
    return %arg0, %arg2 : i32, i32
  }
  func.func @transform_1(%arg0: i32, %arg1: i32, %arg2: i32) -> (i32, i32) {
    %c0_i32 = arith.constant 0 : i32
    return %arg2, %arg1 : i32, i32
  }
  func.func @transform_2(%arg0: i32, %arg1: i32, %arg2: i32) -> (i32, i32) {
    %c0_i32 = arith.constant 0 : i32
    %c0_i32_0 = arith.constant 0 : i32
    return %c0_i32, %arg1 : i32, i32
  }
  func.func @transform_3(%arg0: i32, %arg1: i32, %arg2: i32) -> (i32, i32) {
    %c0_i32 = arith.constant 0 : i32
    return %arg0, %arg1 : i32, i32
  }
}

</mosaic_0001>

<bundles_post_ra>
// kernel: rnn_forward.3
= control target key start
LH: loop header
LB: loop body
LE: loop exit
PB: predicated region body
PF: predicated region fallthrough
CT: control target
= control target key end

     0   :  { %s4314_s0 = inlined_call_operand.vmem [shape: bf16[192,128], index: 0, kind: input, shape index: {}]   ;;  %s4315_s1 = inlined_call_operand.hbm [shape: bf16[2,128,512], index: 1, kind: input, shape index: {}]   ;;  %s4316_s2 = inlined_call_operand.hbm [shape: bf16[2,128,512], index: 2, kind: input, shape index: {}]   ;;  %s4317_s3 = inlined_call_operand.vmem [shape: f32[2,1,512], index: 3, kind: input, shape index: {}]   ;;  %s4318_s4 = inlined_call_operand.vmem [shape: f32[2,8,128], index: 4, kind: input, shape index: {}, may-alias: {4,5}]   ;;  %s4319_s5 = inlined_call_operand.vmem [shape: f32[2,8,128], index: 5, kind: input, shape index: {}, may-alias: {4,5}]   ;;  %s4320_s6 = inlined_call_operand.vmem [shape: bf16[192,256], index: 6, kind: output, shape index: {0}]   ;;  %s4321_s7 = inlined_call_operand.vmem [shape: f32[2,8,128], index: 7, kind: output, shape index: {1}]   ;;  %s4322_s8 = inlined_call_operand.vmem [shape: f32[2,8,128], index: 8, kind: output, shape index: {2}]  }
   0x1   :  { %4333 = sst [smem:[#allocation24_spill]] %s4315_s1 }
   0x2   :  { %4334 = sst [smem:[#allocation25_spill]] %s4316_s2 }
   0x3   :  { %4335 = sst [smem:[#allocation26_spill]] %s4317_s3 }
   0x4   :  { %4336 = sst [smem:[#allocation27_spill]] %s4318_s4 }
   0x5   :  { %4337 = sst [smem:[#allocation28_spill]] %s4319_s5 }
   0x6   :  { %4338 = sst [smem:[#allocation29_spill]] %s4320_s6 }
   0x7   :  { %4339 = sst [smem:[#allocation30_spill]] %s4321_s7 }
   0x8   :  { %4340 = sst [smem:[#allocation31_spill]] %s4322_s8 }
   0x9   :  { %14 = vsyncpa [#allocation7], 0 }
   0xa   :  { %16 = vsyncpa [#allocation7 + $0x1], 0 }
   0xb   :  { %17 = vsyncpa [#allocation9], 0 }
   0xc   :  { %19 = vsyncpa [#allocation9 + $0x1], 0  ;;  %s3354_s27 = smov 0   ;;  %s3356_s28 = smov 0  }
   0xd   :  { %s3358_s29 = smov 0   ;;  %s3360_s30 = smov 0  }
   0xe   :  { %s3362_s9 = smov 0   ;;  %s3364_s10 = smov 0  }
   0xf   :  { %s3366_s11 = smov 0   ;;  %s3368_s12 = smov 0  }
  0x10   :  { %s3370_s13 = smov 0   ;;  %s3372_s14 = smov 0  }
  0x11 LB: > { %4341 = sst [smem:[#allocation13_spill]] %s3270_s28  ;;  %s2602_s15 = sadd.s32 4294967295, %s3302_s14   ;;  %s3302_s14 = sphi %s3372_s14, %s25_s14   ;;  %s3298_s13 = sphi %s3370_s13, %s4378_s13   ;;  %s3294_s12 = sphi %s3368_s12, %s4377_s12   ;;  %s3290_s11 = sphi %s3366_s11, %s4376_s11   ;;  %s3286_s10 = sphi %s3364_s10, %s4375_s10   ;;  %s3282_s9 = sphi %s3362_s9, %s4374_s9   ;;  %s3278_s30 = sphi %s3360_s30, %s4373_s30   ;;  %s3274_s29 = sphi %s3358_s29, %s4372_s29   ;;  %s3270_s28 = sphi %s3356_s28, %s4371_s28   ;;  %s3266_s27 = sphi %s3354_s27, %s4370_s27  }
  0x12   : > { %4342 = sst [smem:[#allocation14_spill]] %s3278_s30  ;;  %s34_s16 = sadd.s32 1, %s3294_s12 }
  0x13   : > { %4343 = sst [smem:[#allocation15_spill]] %s3282_s9  ;;  %p35_p0 = scmp.ge.s32.totalorder %s34_s16, 3 }
  0x14   : > { %4344 = sst [smem:[#allocation16_spill]] %s3294_s12  ;;  %s37_s17 = sadd.s32 1, %s3298_s13 }
  0x15   : > { %4345 = sst [smem:[#allocation17_spill]] %s3298_s13  ;;  %s78_s18 = sadd.s32 1, %s3282_s9 }
  0x16   : > { %4346 = sst [smem:[#allocation18_spill]] %s3302_s14  ;;  %p85_p1 = scmp.ne.s32.totalorder %s3282_s9, %s3278_s30 }
  0x17   : > { %s4380_s16 = smov (%p35_p0, %s34_s16), 0  ;;  %s4382_s17 = smov (!%p35_p0, %s37_s17), %s3298_s13 }
  0x18   : > { %4347 = sst [smem:[#allocation19_spill]] %s4380_s16  ;;  %p86_p2 = scmp.eq.s32.totalorder %s3302_s14, 0 }
  0x19   : > { %p91_p3 = scmp.ne.s32.totalorder %s3278_s30, %s3274_s29  ;;  %p39_p4 = scmp.ge.s32.totalorder %s4382_s17, 2 }
  0x1a   : > { %p92_p5 = scmp.eq.s32.totalorder %s2602_s15, 0  ;;  %p3413_p6 = por %p86_p2, %p85_p1 }
  0x1b   : > { %s2606_s20 = sshll.u32 %s3294_s12, 1  ;;  %s4384_s17 = smov (%p39_p4, %s4382_s17), 0 }
  0x1c   : > { %4349 = sst [smem:[#allocation20_spill]] %s4384_s17  ;;  %p3420_p7 = por %p92_p5, %p91_p3 }
  0x1d   : > { %s206_s22 = ssub.s32 2, %s2606_s20  ;;  %s75_s23 = ssub.s32 %s3298_s13, %s4384_s17 }
  0x1e   : > { %s207_s24 = smul.u32 %s3298_s13, %s206_s22  ;;  %p76_p8 = scmp.eq.s32.totalorder %s75_s23, 0 }
  0x1f   : > { %s2607_s25 = sshll.u32 %s4380_s16, 1  ;;  %s218_s7 = sadd.s32 1, %s3270_s28 }
  0x20   : > { %s208_s26 = sadd.s32 %s3294_s12, %s207_s24  ;;  %s210_s29 = ssub.s32 2, %s2607_s25 }
  0x21   : > { %s3430_s6 = scalar_select %p76_p8, %s3282_s9, %s78_s18  }
  0x22   : > { %s211_s8 = smul.u32 %s210_s29, %s4384_s17  ;;  %p228_p9 = scmp.ne.s32.totalorder %s3270_s28, %s3266_s27 }
  0x23   : > { %4351 = sst [smem:[#allocation21_spill]] %s3430_s6  ;;  %p229_p10 = scmp.eq.s32.totalorder %s2602_s15, 5 }
  0x24   : > { %s212_s20 = sadd.s32 %s211_s8, %s4380_s16  ;;  %p2816_p12 = scmp.lt.s32.totalorder %s3302_s14, 6 }
  0x25   : > { %s213_s5 = ssub.s32 %s208_s26, %s212_s20  ;;  %p3437_p11 = por %p229_p10, %p228_p9 }
  0x26   : > { %s215_s4 = sor.u32 %s213_s5, %s75_s23  ;;  %s3443_s24 = sand.u32 1, %s3282_s9  }
  0x27   : > { %p216_p13 = scmp.eq.s32.totalorder %s215_s4, 0  ;;  %s4324_s18 = sshll.u32 %s3443_s24, 8 }
  0x28   : > { %s2763_s29 = sshll.u32 %s3298_s13, 12  ;;  %s4354_s1 = sld [smem:[#allocation24_spill]] }
  0x29   : > { %s3447_s25 = scalar_select %p216_p13, %s3270_s28, %s218_s7  }
  0x2a   : > { %s328_s20 = scalar_lea.vmem [#allocation6], %s4324_s18  ;;  %p3459_p0 = pnand %p2816_p12, %p3413_p6 }
  0x2b   : > { %4353 = sst [smem:[#allocation22_spill]] %s3447_s25  ;;  %s335_s17 = sshll.u32 %s328_s20, 4  ;;  %s336_s17 = int_to_ptr.vmem [resolvable:$true] %s335_s17 }
  0x2c   : > { %p2616_p1 = scmp.ge.s32.totalorder %s3302_s14, 1  ;;  %s325_s5 = scalar_lea.sflag [#allocation7], %s3443_s24 }
  0x2d   : > { %p3162_p2 = pneg %p3459_p0  ;;  %s3173_s7 = scalar_lea.vmem %s336_s17, 4096 }
  0x2e   : > { %s334_s26 = scalar_lea.hbm %s4354_s1, %s2763_s29  ;;  %p3174_p3 = scmp.ne.s32.totalorder %s336_s17, %s3173_s7 }
  0x2f   : > { %s3304_s23 = smov [#allocation6]  }
  0x30   : > { %p3176_p4 = pnand %p3174_p3, %p3162_p2  ;;  %s3178_s15 = sshll.u32 %s3304_s23, 4  ;;  %s3179_s15 = int_to_ptr.vmem [resolvable:$false] %s3178_s15 }
  0x31   : > { %s3180_s19 = scalar_lea.vmem %s3179_s15, 8192  ;;  %p3181_p6 = scmp.lt.s32.totalorder %s336_s17, %s3179_s15 }
  0x32   : > { %p3177_p5 = pneg %p3176_p4  ;;  %p3182_p8 = scmp.lt.s32.totalorder %s3180_s19, %s3173_s7 }
  0x34   : > { %p3183_p9 = por %p3182_p8, %p3181_p6 }
  0x36   : > { %p3184_p10 = pnand %p3183_p9, %p3177_p5 }
  0x38   : > { %3187 = shalt.err (!%p3184_p10)
}
  0x39   : > { %s3305_s8 = smov 256   ;;  %s3306_s20 = smov 16  }
  0x3a   : > { %2812 = dma.hbm_to_vmem [thread:$0]  (!%p3459_p0), %s334_s26, 4096, %s336_s17, %s325_s5, %s3305_s8, %s3305_s8, %s3306_s20  }
  0x3b   : > { %p385_p12 = scmp.lt.s32.totalorder %s3302_s14, 7  ;;  %s4356_s2 = sld [smem:[#allocation25_spill]] }
  0x3c   : > { %s4358_s19 = sshll.u32 %s3443_s24, 8  ;;  %s346_s12 = scalar_lea.sflag [#allocation9], %s3443_s24 }
  0x3d   : > { %p3480_p13 = pnand %p2616_p1, %p385_p12  ;;  %s349_s1 = scalar_lea.vmem [#allocation8], %s4358_s19 }
  0x3e   : > { %s356_s16 = sshll.u32 %s349_s1, 4  ;;  %s3307_s17 = smov [#allocation8]   ;;  %s357_s16 = int_to_ptr.vmem [resolvable:$true] %s356_s16 }
  0x3f   : > { %s3201_s6 = scalar_lea.vmem %s357_s16, 4096  ;;  %s3206_s26 = sshll.u32 %s3307_s17, 4  ;;  %s3207_s26 = int_to_ptr.vmem [resolvable:$false] %s3206_s26 }
  0x40   : > { %p3202_p3 = scmp.ne.s32.totalorder %s357_s16, %s3201_s6  ;;  %s3208_s18 = scalar_lea.vmem %s3207_s26, 8192 }
  0x41   : > { %s355_s7 = scalar_lea.hbm %s4356_s2, %s2763_s29  ;;  %p3209_p6 = scmp.lt.s32.totalorder %s357_s16, %s3207_s26 }
  0x42   : > { %p3204_p4 = pnand %p3202_p3, %p3162_p2  ;;  %p3210_p1 = scmp.lt.s32.totalorder %s3208_s18, %s3201_s6 }
  0x44   : > { %p3205_p5 = pneg %p3204_p4  ;;  %p3211_p8 = por %p3210_p1, %p3209_p6 }
  0x46   : > { %p3212_p9 = pnand %p3211_p8, %p3205_p5 }
  0x48   : > { %3215 = shalt.err (!%p3212_p9)
}
  0x49   : > { %2815 = dma.hbm_to_vmem [thread:$0]  (!%p3459_p0), %s355_s7, 4096, %s357_s16, %s346_s12, %s3305_s8, %s3305_s8, %s3306_s20  }
  0x4a   : > { %389 = sbr.rel (%p3480_p13) target bundleno = 2225 (0x8b1), region = 44 }
  0x4f   : > { %s391_s1 = sand.u32 1, %s3278_s30  }
  0x50   : > { %s2617_s24 = sshll.u32 %s391_s1, 8  ;;  %s392_s29 = scalar_lea.sflag [#allocation7], %s391_s1 }
  0x51   : > { %s3495_s5 = scalar_lea.vmem [#allocation6], %s2617_s24 }
  0x52   : > { %3257 = dma.done.wait (%p3420_p7), %s392_s29, 4096  }
  0x53   : > { %3259 = vsyncadd (%p3420_p7), %s392_s29, 4294963200  ;;  %s401_s6 = scalar_lea.sflag [#allocation9], %s391_s1  ;;  %s3501_s23 = scalar_lea.vmem [#allocation8], %s2617_s24 }
  0x54   : > { %3261 = dma.done.wait (%p3420_p7), %s401_s6, 4096  }
  0x55   : > { %3263 = vsyncadd (%p3420_p7), %s401_s6, 4294963200  ;;  %s455_s12 = sand.u32 1, %s3266_s27   ;;  %s2620_s16 = sshll.u32 %s3286_s10, 1 }
  0x56   : > { %s2619_s4 = sshll.u32 %s455_s12, 5  ;;  %s471_s8 = ssub.s32 2, %s2620_s16 }
  0x57   : > { %s472_s20 = smul.u32 %s3290_s11, %s471_s8  ;;  %p484_p0 = scmp.lt.s32.totalorder %s3290_s11, 1 }
  0x58   : > { %p510_p2 = scmp.eq.s32.totalorder %s3290_s11, 1  ;;  %s4360_s3 = sld [smem:[#allocation26_spill]] }
  0x59   : > { %s3513_s7 = sadd.s32 %s3286_s10, %s472_s20  ;;  %s4361_s20 = sld [smem:[#allocation27_spill]] }
  0x5a   : > { %4359 = sst [smem:[#allocation23_spill]] %s3513_s7  ;;  %s3516_s15 = sshll.u32 %s3513_s7, 3 }
  0x5b   : > { %p475_p7 = scmp.lt.s32.totalorder %s3516_s15, 23  ;;  %s4362_s9 = sld [smem:[#allocation28_spill]] }
  0x5c   : > { %s485_s21 = scalar_select %p484_p0, %s3290_s11, 1 }
  0x5d   : > { %s476_s19 = scalar_select %p475_p7, %s3516_s15, 23 }
  0x5e   : > { %s2623_s17 = sshll.u32 %s485_s21, 2  ;;  %s3521_s26 = sshll.u32 %s485_s21, 3 }
  0x5f   : > { %s2622_s27 = sshll.u32 %s476_s19, 2  ;;  %s3526_s24 = scalar_lea.vmem %s4360_s3, %s2623_s17 }
  0x60   : > { %s3531_s12 = scalar_lea.vmem %s4314_s0, %s2622_s27  ;;  %s491_s21 = scalar_lea.vmem %s4361_s20, %s3521_s26 }
  0x61   : > { %s495_s30 = scalar_lea.vmem %s4362_s9, %s3521_s26  ;;  %s4363_s28 = sld [smem:[#allocation30_spill]] }
  0x62   : > { %s4364_s1 = sld [smem:[#allocation31_spill]]  ;;  %s3549_s7 = scalar_lea.vmem [#allocation10], %s2619_s4 }
  0x63   : > { %p2628_p10 = scmp.ne.s32.totalorder %s3286_s10, 0 }
  0x65   : > { %514 = sbr.rel (%p2628_p10) target bundleno = 109 (0x6d), region = 56 }
  0x67   : > { %s504_s14 = scalar_lea.vmem %s4363_s28, %s3521_s26 }
  0x68   : > { %s508_s3 = scalar_lea.vmem %s4364_s1, %s3521_s26 }
  0x6a   : > { %v515_v0 = vld [vmem:[%s491_s21] sm:$0xff] }
  0x6b   : > { %v517_v1 = vld [vmem:[%s495_s30] sm:$0xff]  ;;  %516 = vst [vmem:[#allocation2] sm:$0xff] %v515_v0 }
  0x6c   : > { %518 = vst [vmem:[#allocation3] sm:$0xff] %v517_v1 }
  0x6d PF: > { %v2900_v2 = vld [vmem:[%s3495_s5 + $0xe4] ss:$16 sps:$4 sm:$0xff]   ;;  %v2902_v3 = vld [vmem:[%s3495_s5 + $0xec] ss:$16 sps:$4 sm:$0xff]   ;;  %v3308_v4 = vmov 0   ;;  %p2755_p9 = scmp.ne.s32.totalorder %s3286_s10, 2 }
  0x6e   : > { %797 = vmatprep.mubr.bf16.mxu0 %v3308_v4  ;;  %870 = vmatprep.mubr.bf16.mxu1 %v3308_v4  ;;  %v2904_v5 = vld [vmem:[%s3495_s5 + $0xe0] ss:$16 sps:$4 sm:$0xff]   ;;  %v2905_v6 = vld [vmem:[%s3495_s5 + $0xe8] ss:$16 sps:$4 sm:$0xff]   ;;  %v2906_v7 = vld [vmem:[%s3495_s5 + $0xc4] ss:$16 sps:$4 sm:$0xff]  }
  0x6f   : > { %765 = vmatprep.subr.bf16.mxu0 %v2900_v2  ;;  %838 = vmatprep.subr.bf16.mxu1 %v2902_v3  ;;  %v2908_v8 = vld [vmem:[%s3495_s5 + $0xcc] ss:$16 sps:$4 sm:$0xff]   ;;  %v2910_v9 = vld [vmem:[%s3495_s5 + $0xc0] ss:$16 sps:$4 sm:$0xff]   ;;  %v2911_v10 = vld [vmem:[%s3495_s5 + $0xc8] ss:$16 sps:$4 sm:$0xff]  }
  0x70   : > { %766 = vmatpush1.bf16.msra.mxu0 %v2904_v5  ;;  %839 = vmatpush1.bf16.msra.mxu1 %v2905_v6  ;;  %v2912_v11 = vld [vmem:[%s3495_s5 + $0xa4] ss:$16 sps:$4 sm:$0xff]   ;;  %v2914_v12 = vld [vmem:[%s3495_s5 + $0xac] ss:$16 sps:$4 sm:$0xff]   ;;  %v2916_v13 = vld [vmem:[%s3495_s5 + $0xa0] ss:$16 sps:$4 sm:$0xff]  }
  0x71   : > { %767 = vmatprep.subr.bf16.mxu0 %v2906_v7  ;;  %840 = vmatprep.subr.bf16.mxu1 %v2908_v8  ;;  %v2917_v14 = vld [vmem:[%s3495_s5 + $0xa8] ss:$16 sps:$4 sm:$0xff]   ;;  %v2918_v15 = vld [vmem:[%s3495_s5 + $0x84] ss:$16 sps:$4 sm:$0xff]   ;;  %v2920_v16 = vld [vmem:[%s3495_s5 + $0x8c] ss:$16 sps:$4 sm:$0xff]  }
  0x72   : > { %v2922_v17 = vld [vmem:[%s3495_s5 + $0x80] ss:$16 sps:$4 sm:$0xff]   ;;  %v2923_v18 = vld [vmem:[%s3495_s5 + $0x88] ss:$16 sps:$4 sm:$0xff]   ;;  %v2924_v19 = vld [vmem:[%s3495_s5 + $0x64] ss:$16 sps:$4 sm:$0xff]  }
  0x73   : > { %v2926_v20 = vld [vmem:[%s3495_s5 + $0x6c] ss:$16 sps:$4 sm:$0xff]   ;;  %v2928_v21 = vld [vmem:[%s3495_s5 + $0x60] ss:$16 sps:$4 sm:$0xff]   ;;  %v2929_v22 = vld [vmem:[%s3495_s5 + $0x68] ss:$16 sps:$4 sm:$0xff]  }
  0x74   : > { %768 = vmatpush1.bf16.msra.mxu0 %v2910_v9  ;;  %841 = vmatpush1.bf16.msra.mxu1 %v2911_v10  ;;  %v2930_v23 = vld [vmem:[%s3495_s5 + $0x44] ss:$16 sps:$4 sm:$0xff]   ;;  %v2932_v24 = vld [vmem:[%s3495_s5 + $0x4c] ss:$16 sps:$4 sm:$0xff]   ;;  %v2934_v25 = vld [vmem:[%s3495_s5 + $0x40] ss:$16 sps:$4 sm:$0xff]   ;;  %v561_v10 = vlaneseq }
  0x75   : > { %769 = vmatprep.subr.bf16.mxu0 %v2912_v11  ;;  %842 = vmatprep.subr.bf16.mxu1 %v2914_v12  ;;  %v2935_v26 = vld [vmem:[%s3495_s5 + $0x48] ss:$16 sps:$4 sm:$0xff]   ;;  %v2936_v27 = vld [vmem:[%s3495_s5 + $0x24] ss:$16 sps:$4 sm:$0xff]   ;;  %v2938_v28 = vld [vmem:[%s3495_s5 + $0x2c] ss:$16 sps:$4 sm:$0xff]  }
  0x76   : > { %v2940_v29 = vld [vmem:[%s3495_s5 + $0x20] ss:$16 sps:$4 sm:$0xff]   ;;  %v2941_v30 = vld [vmem:[%s3495_s5 + $0x28] ss:$16 sps:$4 sm:$0xff]   ;;  %v2942_v31 = vld [vmem:[%s3495_s5 + $0x4] ss:$16 sps:$4 sm:$0xff]  }
  0x77   : > { %v2944_v32 = vld [vmem:[%s3495_s5 + $0xc] ss:$16 sps:$4 sm:$0xff]   ;;  %v2946_v33 = vld [vmem:[%s3495_s5] ss:$16 sps:$4 sm:$0xff]   ;;  %v2947_v34 = vld [vmem:[%s3495_s5 + $0x8] ss:$16 sps:$4 sm:$0xff]  }
  0x78   : > { %770 = vmatpush1.bf16.msra.mxu0 %v2916_v13  ;;  %843 = vmatpush1.bf16.msra.mxu1 %v2917_v14  ;;  %v3587_v35 = vld [vmem:[%s3501_s23 + $0xe4] ss:$16 sps:$4 sm:$0xff]   ;;  %v3590_v36 = vld [vmem:[%s3501_s23 + $0xec] ss:$16 sps:$4 sm:$0xff]   ;;  %v3594_v38 = vld [vmem:[%s3501_s23 + $0xe0] ss:$16 sps:$4 sm:$0xff]  }
  0x79   : > { %771 = vmatprep.subr.bf16.mxu0 %v2918_v15  ;;  %844 = vmatprep.subr.bf16.mxu1 %v2920_v16  ;;  %v2948_v37 = vld [vmem:[%s3531_s12] sm:$0xff]   ;;  %v3602_v40 = vld [vmem:[%s3501_s23 + $0xe8] ss:$16 sps:$4 sm:$0xff]   ;;  %v3605_v41 = vld [vmem:[%s3501_s23 + $0xcc] ss:$16 sps:$4 sm:$0xff]   ;;  %v562_v11 = vshrl.u32 %v561_v10, 7 }
  0x7a   : > { %v3598_v39 = vld [vmem:[%s3501_s23 + $0xc4] ss:$16 sps:$4 sm:$0xff]   ;;  %v3609_v42 = vld [vmem:[%s3501_s23 + $0xc0] ss:$16 sps:$4 sm:$0xff]   ;;  %v2958_v44 = vld [vmem:[%s3531_s12 + $0x8] sm:$0xff]  }
  0x7b   : > { %v3615_v43 = vld [vmem:[%s3501_s23 + $0xa4] ss:$16 sps:$4 sm:$0xff]   ;;  %v3620_v45 = vld [vmem:[%s3501_s23 + $0xc8] ss:$16 sps:$4 sm:$0xff]   ;;  %v3623_v46 = vld [vmem:[%s3501_s23 + $0xa0] ss:$16 sps:$4 sm:$0xff]  }
  0x7c   : > { %772 = vmatpush1.bf16.msra.mxu0 %v2922_v17  ;;  %845 = vmatpush1.bf16.msra.mxu1 %v2923_v18  ;;  %v3628_v47 = vld [vmem:[%s3501_s23 + $0xac] ss:$16 sps:$4 sm:$0xff]   ;;  %v3632_v48 = vld [vmem:[%s3501_s23 + $0x84] ss:$16 sps:$4 sm:$0xff]   ;;  %v3636_v49 = vld [vmem:[%s3501_s23 + $0xa8] ss:$16 sps:$4 sm:$0xff]  }
  0x7d   : > { %773 = vmatprep.subr.bf16.mxu0 %v2924_v19  ;;  %846 = vmatprep.subr.bf16.mxu1 %v2926_v20  ;;  %v3639_v50 = vld [vmem:[%s3501_s23 + $0x8c] ss:$16 sps:$4 sm:$0xff]   ;;  %v3643_v51 = vld [vmem:[%s3501_s23 + $0x80] ss:$16 sps:$4 sm:$0xff]   ;;  %v3649_v52 = vld [vmem:[%s3501_s23 + $0x64] ss:$16 sps:$4 sm:$0xff]  }
  0x7e   : > { %v3654_v53 = vld [vmem:[%s3501_s23 + $0x88] ss:$16 sps:$4 sm:$0xff]   ;;  %v2971_v54 = vld [vmem:[%s3531_s12 + $0x10] sm:$0xff]   ;;  %v3663_v56 = vld [vmem:[%s3501_s23 + $0x6c] ss:$16 sps:$4 sm:$0xff]   ;;  %v563_v12 = vsub.s32 0, %v562_v11 }
  0x7f   : > { %v3660_v55 = vld [vmem:[%s3501_s23 + $0x60] ss:$16 sps:$4 sm:$0xff]   ;;  %v3667_v57 = vld [vmem:[%s3501_s23 + $0x44] ss:$16 sps:$4 sm:$0xff]   ;;  %v3671_v58 = vld [vmem:[%s3501_s23 + $0x68] ss:$16 sps:$4 sm:$0xff]  }
  0x80   : > { %774 = vmatpush1.bf16.msra.mxu0 %v2928_v21  ;;  %847 = vmatpush1.bf16.msra.mxu1 %v2929_v22  ;;  %v3674_v59 = vld [vmem:[%s3501_s23 + $0x4c] ss:$16 sps:$4 sm:$0xff]   ;;  %v3678_v60 = vld [vmem:[%s3501_s23 + $0x40] ss:$16 sps:$4 sm:$0xff]   ;;  %v3684_v61 = vld [vmem:[%s3501_s23 + $0x24] ss:$16 sps:$4 sm:$0xff]  }
  0x81   : > { %775 = vmatprep.subr.bf16.mxu0 %v2930_v23  ;;  %848 = vmatprep.subr.bf16.mxu1 %v2932_v24  ;;  %v3689_v62 = vld [vmem:[%s3501_s23 + $0x48] ss:$16 sps:$4 sm:$0xff]   ;;  %v3695_v0 = vld [vmem:[%s3501_s23 + $0x20] ss:$16 sps:$4 sm:$0xff]   ;;  %v3698_v1 = vld [vmem:[%s3501_s23 + $0x2c] ss:$16 sps:$4 sm:$0xff]  }
  0x82   : > { %v2984_v63 = vld [vmem:[%s3531_s12 + $0x18] sm:$0xff]   ;;  %v3702_v2 = vld [vmem:[%s3501_s23 + $0x4] ss:$16 sps:$4 sm:$0xff]   ;;  %v3713_v6 = vld [vmem:[%s3501_s23] ss:$16 sps:$4 sm:$0xff]   ;;  %v571_v13 = vsub.s32 2, %v562_v11 }
  0x83   : > { %v3706_v3 = vld [vmem:[%s3501_s23 + $0x28] ss:$16 sps:$4 sm:$0xff]   ;;  %v3709_v5 = vld [vmem:[%s3501_s23 + $0xc] ss:$16 sps:$4 sm:$0xff]   ;;  %v3716_v7 = vld [vmem:[#allocation2] sm:$0xff]  ;;  %v567_v15 = vsub.s32 1, %v562_v11 }
  0x84   : > { %776 = vmatpush1.bf16.msra.mxu0 %v2934_v25  ;;  %849 = vmatpush1.bf16.msra.mxu1 %v2935_v26  ;;  %v3722_v8 = vld [vmem:[%s3501_s23 + $0x8] ss:$16 sps:$4 sm:$0xff]   ;;  %v992_v9 = vpack.c.bf16 %v3716_v7, %v3716_v7  ;;  %v559_v14 = vld [vmem:[%s3526_s24] sm:$0xf]  ;;  %v575_v16 = vsub.s32 3, %v562_v11 }
  0x85   : > { %777 = vmatprep.subr.bf16.mxu0 %v2936_v27  ;;  %850 = vmatprep.subr.bf16.mxu1 %v2938_v28  ;;  %v3767_v17 = vrot.slane %v559_v14, %v563_v12  ;;  %v3769_v18 = vrot.slane %v559_v14, %v571_v13  ;;  %v3771_v19 = vrot.slane %v559_v14, %v567_v15  ;;  %s3799_s2 = scalar_select %p510_p2, 7, 0 }
  0x86   : > { %v3773_v20 = vrot.slane %v559_v14, %v575_v16  ;;  %s3862_s27 = scalar_select %p510_p2, 6, 1 }
  0x87   : > { %s2666_s28 = sshll.u32 %s3799_s2, 3  ;;  %s1264_s25 = sadd.s32 %s3516_s15, %s3799_s2 }
  0x88   : > { %778 = vmatpush1.bf16.msra.mxu0 %v2940_v29  ;;  %851 = vmatpush1.bf16.msra.mxu1 %v2941_v30  ;;  %s983_s30 = sshra.s32 %s2666_s28, 3  ;;  %p1265_p12 = scmp.lt.s32.totalorder %s1264_s25, 20 }
  0x89   : > { %779 = vmatprep.subr.bf16.mxu0 %v2942_v31  ;;  %852 = vmatprep.subr.bf16.mxu1 %v2944_v32  ;;  %s2765_s9 = sshll.u32 %s983_s30, 5  ;;  %s1273_s4 = scalar_lea.vmem [#allocation5], %s2666_s28 }
  0x8a   : > { %s987_s13 = scalar_lea.vmem [#allocation4], %s2765_s9  ;;  %s2705_s24 = sshll.u32 %s3862_s27, 3 }
  0x8b   : > { %s1266_s5 = scalar_select %p1265_p12, 1, 0 }
  0x8c   : > { %780 = vmatpush1.bf16.msra.mxu0 %v2946_v33  ;;  %853 = vmatpush1.bf16.msra.mxu1 %v2947_v34  ;;  %s1279_s29 = sshra.s32 %s2705_s24, 3  ;;  %s1399_s16 = sadd.s32 %s3516_s15, %s3862_s27 }
  0x8d   : > { %1153 = vmatprep.subr.bf16.mxu0 %v3587_v35  ;;  %1194 = vmatprep.subr.bf16.mxu1 %v3590_v36  ;;  %s2766_s6 = sshll.u32 %s1279_s29, 5  ;;  %p1400_p13 = scmp.lt.s32.totalorder %s1399_s16, 20 }
  0x8e   : > { %s1283_s12 = scalar_lea.vmem [#allocation4], %s2766_s6  ;;  %s1408_s20 = scalar_lea.vmem [#allocation5], %s2705_s24 }
  0x8f   : > { %798 = vmatmul.mubr.bf16.vlgmr.msra.gmra.mxu0 %v2948_v37  ;;  %871 = vmatmul.mubr.bf16.vlgmr.msra.gmra.mxu1 %v2948_v37  ;;  %s1401_s8 = scalar_select %p1400_p13, 1, 0 }
  0x90   : > { %1154 = vmatpush1.bf16.msra.mxu0 %v3594_v38  ;;  %807 = vmatprep.mubr.bf16.mxu0 %v3308_v4  ;;  %s3917_s21 = scalar_select %p510_p2, 5, 2 }
  0x91   : > { %1155 = vmatprep.subr.bf16.mxu0 %v3598_v39  ;;  %880 = vmatprep.mubr.bf16.mxu1 %v3308_v4  ;;  %s3978_s9 = scalar_select %p510_p2, 4, 3 }
  0x92   : > { %1195 = vmatpush1.bf16.msra.mxu1 %v3602_v40  ;;  %s2711_s19 = sshll.u32 %s3917_s21, 3  ;;  %s1534_s2 = sadd.s32 %s3516_s15, %s3917_s21 }
  0x93   : > { %1196 = vmatprep.subr.bf16.mxu1 %v3605_v41  ;;  %s1414_s18 = sshra.s32 %s2711_s19, 3  ;;  %p1535_p3 = scmp.lt.s32.totalorder %s1534_s2, 20 }
  0x94   : > { %1156 = vmatpush1.bf16.msra.mxu0 %v3609_v42  ;;  %s2767_s17 = sshll.u32 %s1414_s18, 5  ;;  %s1543_s30 = scalar_lea.vmem [#allocation5], %s2711_s19 }
  0x95   : > { %1157 = vmatprep.subr.bf16.mxu0 %v3615_v43  ;;  %s1418_s1 = scalar_lea.vmem [#allocation4], %s2767_s17  ;;  %s1669_s27 = sadd.s32 %s3516_s15, %s3978_s9 }
  0x96   : > { %1197 = vmatpush1.bf16.msra.mxu1 %v3620_v45  ;;  %s1536_s28 = scalar_select %p1535_p3, 1, 0 }
  0x97   : > { %808 = vmatmul.mubr.bf16.gmra.mxu0 %v2958_v44  ;;  %881 = vmatmul.mubr.bf16.gmra.mxu1 %v2958_v44  ;;  %p1670_p4 = scmp.lt.s32.totalorder %s1669_s27, 20 }
  0x98   : > { %1158 = vmatpush1.bf16.msra.mxu0 %v3623_v46  ;;  %1198 = vmatprep.subr.bf16.mxu1 %v3628_v47  ;;  %s4123_s6 = scalar_select %p510_p2, 3, 4 }
  0x99   : > { %1159 = vmatprep.subr.bf16.mxu0 %v3632_v48  ;;  %817 = vmatprep.mubr.bf16.mxu0 %v3308_v4  ;;  %s1671_s24 = scalar_select %p1670_p4, 1, 0 }
  0x9a   : > { %890 = vmatprep.mubr.bf16.mxu1 %v3308_v4  ;;  %1199 = vmatpush1.bf16.msra.mxu1 %v3636_v49  ;;  %s4178_s18 = scalar_select %p510_p2, 2, 5 }
  0x9b   : > { %1200 = vmatprep.subr.bf16.mxu1 %v3639_v50 }
  0x9c   : > { %1160 = vmatpush1.bf16.msra.mxu0 %v3643_v51  ;;  %s2729_s17 = sshll.u32 %s4178_s18, 3 }
  0x9d   : > { %1161 = vmatprep.subr.bf16.mxu0 %v3649_v52 }
  0x9e   : > { %1201 = vmatpush1.bf16.msra.mxu1 %v3654_v53 }
  0x9f   : > { %818 = vmatmul.mubr.bf16.gmra.mxu0 %v2971_v54  ;;  %891 = vmatmul.mubr.bf16.gmra.mxu1 %v2971_v54 }
  0xa0   : > { %1162 = vmatpush1.bf16.msra.mxu0 %v3660_v55  ;;  %1202 = vmatprep.subr.bf16.mxu1 %v3663_v56 }
  0xa1   : > { %1163 = vmatprep.subr.bf16.mxu0 %v3667_v57  ;;  %827 = vmatprep.mubr.bf16.mxu0 %v3308_v4 }
  0xa2   : > { %900 = vmatprep.mubr.bf16.mxu1 %v3308_v4  ;;  %1203 = vmatpush1.bf16.msra.mxu1 %v3671_v58 }
  0xa3   : > { %1204 = vmatprep.subr.bf16.mxu1 %v3674_v59 }
  0xa4   : > { %1164 = vmatpush1.bf16.msra.mxu0 %v3678_v60 }
  0xa5   : > { %1165 = vmatprep.subr.bf16.mxu0 %v3684_v61 }
  0xa6   : > { %1205 = vmatpush1.bf16.msra.mxu1 %v3689_v62 }
  0xa7   : > { %828 = vmatmul.mubr.bf16.gmra.mxu0 %v2984_v63  ;;  %901 = vmatmul.mubr.bf16.gmra.mxu1 %v2984_v63 }
  0xa8   : > { %1166 = vmatpush1.bf16.msra.mxu0 %v3695_v0  ;;  %1206 = vmatprep.subr.bf16.mxu1 %v3698_v1 }
  0xa9   : > { %1167 = vmatprep.subr.bf16.mxu0 %v3702_v2  ;;  %1185 = vmatprep.mubr.bf16.mxu0 %v3308_v4 }
  0xaa   : > { %1207 = vmatpush1.bf16.msra.mxu1 %v3706_v3  ;;  %1226 = vmatprep.mubr.bf16.mxu1 %v3308_v4 }
  0xab   : > { %1208 = vmatprep.subr.bf16.mxu1 %v3709_v5 }
  0xac   : > { %1168 = vmatpush1.bf16.msra.mxu0 %v3713_v6 }
  0xad   : > { %1289 = vmatprep.subr.bf16.mxu0 %v3587_v35 }
  0xae   : > { %1209 = vmatpush1.bf16.msra.mxu1 %v3722_v8 }
  0xaf   : > { %1186 = vmatmul.mubr.bf16.vlgmr.msra.gmra.mxu0 %v992_v9  ;;  %1330 = vmatprep.subr.bf16.mxu1 %v3590_v36 }
  0xb0   : > { %1290 = vmatpush1.bf16.msra.mxu0 %v3594_v38  ;;  %1321 = vmatprep.mubr.bf16.mxu0 %v3308_v4 }
  0xb1   : > { %1227 = vmatmul.mubr.bf16.vlgmr.msra.gmra.mxu1 %v992_v9  ;;  %1291 = vmatprep.subr.bf16.mxu0 %v3598_v39 }
  0xb2   : > { %1331 = vmatpush1.bf16.msra.mxu1 %v3602_v40  ;;  %1362 = vmatprep.mubr.bf16.mxu1 %v3308_v4 }
  0xb3   : > { %1332 = vmatprep.subr.bf16.mxu1 %v3605_v41 }
  0xb4   : > { %1292 = vmatpush1.bf16.msra.mxu0 %v3609_v42 }
  0xb5   : > { %1293 = vmatprep.subr.bf16.mxu0 %v3615_v43 }
  0xb6   : > { %1333 = vmatpush1.bf16.msra.mxu1 %v3620_v45 }
  0xb7   : > { %1334 = vmatprep.subr.bf16.mxu1 %v3628_v47 }
  0xb8   : > { %1294 = vmatpush1.bf16.msra.mxu0 %v3623_v46 }
  0xb9   : > { %1295 = vmatprep.subr.bf16.mxu0 %v3632_v48 }
  0xba   : > { %1335 = vmatpush1.bf16.msra.mxu1 %v3636_v49 }
  0xbb   : > { %1336 = vmatprep.subr.bf16.mxu1 %v3639_v50 }
  0xbc   : > { %1296 = vmatpush1.bf16.msra.mxu0 %v3643_v51 }
  0xbd   : > { %1297 = vmatprep.subr.bf16.mxu0 %v3649_v52 }
  0xbe   : > { %1337 = vmatpush1.bf16.msra.mxu1 %v3654_v53 }
  0xbf   : > { %1338 = vmatprep.subr.bf16.mxu1 %v3663_v56 }
  0xc0   : > { %1298 = vmatpush1.bf16.msra.mxu0 %v3660_v55 }
  0xc1   : > { %1299 = vmatprep.subr.bf16.mxu0 %v3667_v57 }
  0xc2   : > { %1339 = vmatpush1.bf16.msra.mxu1 %v3671_v58 }
  0xc3   : > { %1340 = vmatprep.subr.bf16.mxu1 %v3674_v59 }
  0xc4   : > { %1300 = vmatpush1.bf16.msra.mxu0 %v3678_v60 }
  0xc5   : > { %1301 = vmatprep.subr.bf16.mxu0 %v3684_v61 }
  0xc6   : > { %1341 = vmatpush1.bf16.msra.mxu1 %v3689_v62 }
  0xc7   : > { %1342 = vmatprep.subr.bf16.mxu1 %v3698_v1 }
  0xc8   : > { %1302 = vmatpush1.bf16.msra.mxu0 %v3695_v0 }
  0xc9   : > { %1303 = vmatprep.subr.bf16.mxu0 %v3702_v2 }
  0xca   : > { %1343 = vmatpush1.bf16.msra.mxu1 %v3706_v3 }
  0xcb   : > { %1344 = vmatprep.subr.bf16.mxu1 %v3709_v5 }
  0xcc   : > { %1304 = vmatpush1.bf16.msra.mxu0 %v3713_v6 }
  0xcd   : > { %1424 = vmatprep.subr.bf16.mxu0 %v3587_v35 }
  0xce   : > { %1345 = vmatpush1.bf16.msra.mxu1 %v3722_v8 }
  0xcf   : > { %1465 = vmatprep.subr.bf16.mxu1 %v3590_v36 }
 0x14f   : > { %v799_v21 = vpop.f32.mrf.mxu0  ;;  %v872_v22 = vpop.f32.mrf.mxu1 }
 0x150   : > { %v800_v23 = vadd.f32 %v799_v21, %v3767_v17  ;;  %v873_v24 = vadd.f32 %v872_v22, %v3769_v18 }
 0x151   : > { %v801_v25 = vpop.f32.mrf.mxu0  ;;  %v874_v26 = vpop.f32.mrf.mxu1 }
 0x152   : > { %911 = vst [vmem:[#allocation4] sm:$0xff] %v800_v23  ;;  %913 = vst [vmem:[#allocation4 + $0x10] sm:$0xff] %v873_v24  ;;  %v802_v27 = vadd.f32 %v801_v25, %v3771_v19  ;;  %v875_v28 = vadd.f32 %v874_v26, %v3773_v20 }
 0x153   : > { %v803_v29 = vpop.f32.mrf.mxu0  ;;  %v876_v30 = vpop.f32.mrf.mxu1 }
 0x154   : > { %912 = vst [vmem:[#allocation4 + $0x8] sm:$0xff] %v802_v27  ;;  %914 = vst [vmem:[#allocation4 + $0x18] sm:$0xff] %v875_v28  ;;  %v804_v31 = vadd.f32 %v803_v29, %v3767_v17  ;;  %v877_v32 = vadd.f32 %v876_v30, %v3769_v18 }
 0x155   : > { %v805_v33 = vpop.f32.mrf.mxu0  ;;  %v878_v34 = vpop.f32.mrf.mxu1 }
 0x156   : > { %915 = vst [vmem:[#allocation4 + $0x20] sm:$0xff] %v804_v31  ;;  %917 = vst [vmem:[#allocation4 + $0x30] sm:$0xff] %v877_v32  ;;  %v806_v37 = vadd.f32 %v805_v33, %v3771_v19  ;;  %v879_v44 = vadd.f32 %v878_v34, %v3773_v20 }
 0x157   : > { %v809_v54 = vpop.f32.mrf.mxu0  ;;  %v882_v63 = vpop.f32.mrf.mxu1 }
 0x158   : > { %916 = vst [vmem:[#allocation4 + $0x28] sm:$0xff] %v806_v37  ;;  %918 = vst [vmem:[#allocation4 + $0x38] sm:$0xff] %v879_v44  ;;  %v810_v9 = vadd.f32 %v809_v54, %v3767_v17  ;;  %v883_v10 = vadd.f32 %v882_v63, %v3769_v18 }
 0x159   : > { %v811_v11 = vpop.f32.mrf.mxu0  ;;  %v884_v12 = vpop.f32.mrf.mxu1 }
 0x15a   : > { %919 = vst [vmem:[#allocation4 + $0x40] sm:$0xff] %v810_v9  ;;  %921 = vst [vmem:[#allocation4 + $0x50] sm:$0xff] %v883_v10  ;;  %v812_v13 = vadd.f32 %v811_v11, %v3771_v19  ;;  %v885_v14 = vadd.f32 %v884_v12, %v3773_v20 }
 0x15b   : > { %v813_v15 = vpop.f32.mrf.mxu0  ;;  %v886_v16 = vpop.f32.mrf.mxu1 }
 0x15c   : > { %920 = vst [vmem:[#allocation4 + $0x48] sm:$0xff] %v812_v13  ;;  %922 = vst [vmem:[#allocation4 + $0x58] sm:$0xff] %v885_v14  ;;  %v814_v21 = vadd.f32 %v813_v15, %v3767_v17  ;;  %v887_v22 = vadd.f32 %v886_v16, %v3769_v18 }
 0x15d   : > { %v815_v23 = vpop.f32.mrf.mxu0  ;;  %v888_v24 = vpop.f32.mrf.mxu1 }
 0x15e   : > { %923 = vst [vmem:[#allocation4 + $0x60] sm:$0xff] %v814_v21  ;;  %925 = vst [vmem:[#allocation4 + $0x70] sm:$0xff] %v887_v22  ;;  %v816_v25 = vadd.f32 %v815_v23, %v3771_v19  ;;  %v889_v26 = vadd.f32 %v888_v24, %v3773_v20 }
 0x15f   : > { %v819_v27 = vpop.f32.mrf.mxu0  ;;  %v892_v28 = vpop.f32.mrf.mxu1 }
 0x160   : > { %924 = vst [vmem:[#allocation4 + $0x68] sm:$0xff] %v816_v25  ;;  %926 = vst [vmem:[#allocation4 + $0x78] sm:$0xff] %v889_v26  ;;  %v820_v29 = vadd.f32 %v819_v27, %v3767_v17  ;;  %v893_v30 = vadd.f32 %v892_v28, %v3769_v18 }
 0x161   : > { %v821_v31 = vpop.f32.mrf.mxu0  ;;  %v894_v32 = vpop.f32.mrf.mxu1 }
 0x162   : > { %927 = vst [vmem:[#allocation4 + $0x80] sm:$0xff] %v820_v29  ;;  %929 = vst [vmem:[#allocation4 + $0x90] sm:$0xff] %v893_v30  ;;  %v822_v33 = vadd.f32 %v821_v31, %v3771_v19  ;;  %v895_v34 = vadd.f32 %v894_v32, %v3773_v20 }
 0x163   : > { %v823_v37 = vpop.f32.mrf.mxu0  ;;  %v896_v44 = vpop.f32.mrf.mxu1 }
 0x164   : > { %928 = vst [vmem:[#allocation4 + $0x88] sm:$0xff] %v822_v33  ;;  %930 = vst [vmem:[#allocation4 + $0x98] sm:$0xff] %v895_v34  ;;  %v824_v54 = vadd.f32 %v823_v37, %v3767_v17  ;;  %v897_v63 = vadd.f32 %v896_v44, %v3769_v18 }
 0x165   : > { %v825_v9 = vpop.f32.mrf.mxu0  ;;  %v898_v10 = vpop.f32.mrf.mxu1 }
 0x166   : > { %931 = vst [vmem:[#allocation4 + $0xa0] sm:$0xff] %v824_v54  ;;  %933 = vst [vmem:[#allocation4 + $0xb0] sm:$0xff] %v897_v63  ;;  %v826_v11 = vadd.f32 %v825_v9, %v3771_v19  ;;  %v899_v12 = vadd.f32 %v898_v10, %v3773_v20 }
 0x167   : > { %v829_v13 = vpop.f32.mrf.mxu0  ;;  %v902_v14 = vpop.f32.mrf.mxu1 }
 0x168   : > { %932 = vst [vmem:[#allocation4 + $0xa8] sm:$0xff] %v826_v11  ;;  %934 = vst [vmem:[#allocation4 + $0xb8] sm:$0xff] %v899_v12  ;;  %v830_v15 = vadd.f32 %v829_v13, %v3767_v17  ;;  %v903_v16 = vadd.f32 %v902_v14, %v3769_v18 }
 0x169   : > { %v831_v21 = vpop.f32.mrf.mxu0  ;;  %v904_v22 = vpop.f32.mrf.mxu1 }
 0x16a   : > { %935 = vst [vmem:[#allocation4 + $0xc0] sm:$0xff] %v830_v15  ;;  %937 = vst [vmem:[#allocation4 + $0xd0] sm:$0xff] %v903_v16  ;;  %v832_v23 = vadd.f32 %v831_v21, %v3771_v19  ;;  %v905_v24 = vadd.f32 %v904_v22, %v3773_v20 }
 0x16b   : > { %v833_v25 = vpop.f32.mrf.mxu0  ;;  %v906_v26 = vpop.f32.mrf.mxu1 }
 0x16c   : > { %936 = vst [vmem:[#allocation4 + $0xc8] sm:$0xff] %v832_v23  ;;  %938 = vst [vmem:[#allocation4 + $0xd8] sm:$0xff] %v905_v24  ;;  %v834_v27 = vadd.f32 %v833_v25, %v3767_v17  ;;  %v907_v28 = vadd.f32 %v906_v26, %v3769_v18 }
 0x16d   : > { %v835_v29 = vpop.f32.mrf.mxu0  ;;  %v908_v30 = vpop.f32.mrf.mxu1 }
 0x16e   : > { %939 = vst [vmem:[#allocation4 + $0xe0] sm:$0xff] %v834_v27  ;;  %941 = vst [vmem:[#allocation4 + $0xf0] sm:$0xff] %v907_v28  ;;  %v836_v31 = vadd.f32 %v835_v29, %v3771_v19  ;;  %v909_v32 = vadd.f32 %v908_v30, %v3773_v20  ;;  %v982_v28 = vld [vmem:[#allocation3] sm:$0xff]  ;;  %v1267_v30 = vstv %s1266_s5 }
 0x16f   : > { %v1187_v33 = vpop.f32.mrf.mxu0  ;;  %vm1268_vm0 = vcmp.eq.s32.totalorder %v1267_v30, 1 }
 0x170   : > { %940 = vst [vmem:[#allocation4 + $0xe8] sm:$0xff] %v836_v31  ;;  %942 = vst [vmem:[#allocation4 + $0xf8] sm:$0xff] %v909_v32 }
 0x171   : > { %v1189_v34 = vpop.f32.mrf.mxu0  ;;  %v1228_v37 = vpop.f32.mrf.mxu1 }
 0x173   : > { %v1191_v44 = vpop.f32.mrf.mxu0  ;;  %v1230_v17 = vpop.f32.mrf.mxu1 }
 0x175   : > { %v1192_v54 = vpop.f32.mrf.mxu0  ;;  %v1232_v63 = vpop.f32.mrf.mxu1 }
 0x177   : > { %v988_v18 = vld [vmem:[%s987_s13] sm:$0xff]  ;;  %v989_v10 = vld [vmem:[%s987_s13 + $0x8] sm:$0xff]  ;;  %v1233_v11 = vpop.f32.mrf.mxu1  ;;  %v991_v20 = vld [vmem:[%s987_s13 + $0x18] sm:$0xff] }
 0x178   : > { %v1235_v9 = vadd.f32 %v1187_v33, %v988_v18  ;;  %v1236_v13 = vadd.f32 %v1189_v34, %v989_v10  ;;  %v1238_v14 = vadd.f32 %v1230_v17, %v991_v20  ;;  %v990_v15 = vld [vmem:[%s987_s13 + $0x10] sm:$0xff]  ;;  %s2717_s13 = sshll.u32 %s3978_s9, 3 }
 0x179   : > { %v1237_v22 = vadd.f32 %v1228_v37, %v990_v15  ;;  %s1549_s25 = sshra.s32 %s2717_s13, 3  ;;  %s1678_s29 = scalar_lea.vmem [#allocation5], %s2717_s13 }
 0x17a   : > { %v2701_v12 = vmul.f32 -1.442695, %v1235_v9  ;;  %v2702_v19 = vmul.f32 -1.442695, %v1236_v13  ;;  %v2703_v16 = vmul.f32 -1.442695, %v1238_v14 }
 0x17b   : > { %v1285_v13 = vld [vmem:[%s1283_s12 + $0x8] sm:$0xff]  ;;  %s2768_s5 = sshll.u32 %s1549_s25, 5  ;;  %s1948_s13 = scalar_lea.vmem [#allocation5], %s2729_s17 }
 0x17c   : > { %3000 = vpow2.f32 %v2701_v12  ;;  %s4233_s25 = scalar_select %p510_p2, 1, 6 }
 0x17d   : > { %3002 = vpow2.f32 %v2702_v19 }
 0x17e   : > { %3004 = vpow2.f32 %v2703_v16 }
 0x189   : > { %v3001_v21 = vpop.eup %3000 }
 0x18a   : > { %v1242_v23 = vadd.f32 1.0, %v3001_v21  ;;  %v3003_v24 = vpop.eup %3002 }
 0x18b   : > { %v1248_v25 = vadd.f32 1.0, %v3003_v24  ;;  %v3005_v26 = vpop.eup %3004 }
 0x18c   : > { %3006 = vrcp.f32 %v1242_v23  ;;  %v1255_v32 = vadd.f32 1.0, %v3005_v26 }
 0x18d   : > { %3008 = vtanh.f32 %v1237_v22 }
 0x18e   : > { %3010 = vrcp.f32 %v1248_v25  ;;  %v1287_v25 = vld [vmem:[%s1283_s12 + $0x18] sm:$0xff] }
 0x18f   : > { %3012 = vrcp.f32 %v1255_v32 }
 0x199   : > { %v3007_v27 = vpop.eup %3006 }
 0x19a   : > { %v3009_v29 = vpop.eup %3008 }
 0x19b   : > { %v3011_v31 = vpop.eup %3010  ;;  %v1259_v34 = vmul.f32 %v3009_v29, %v3007_v27 }
 0x19c   : > { %v1258_v33 = vmul.f32 %v3011_v31, %v982_v28  ;;  %v3013_v17 = vpop.eup %3012 }
 0x19e   : > { %v1260_v37 = vadd.f32 %v1259_v34, %v1258_v33 }
 0x1a0   : > { %3014 = vtanh.f32 %v1260_v37  ;;  %v3816_v44 = vsel %vm1268_vm0, %v1260_v37, %v982_v28  ;;  %v1286_v28 = vld [vmem:[%s1283_s12 + $0x10] sm:$0xff] }
 0x1ad   : > { %v3015_v18 = vpop.eup %3014 }
 0x1ae   : > { %v1262_v54 = vmul.f32 %v3015_v18, %v3013_v17  ;;  %v1402_v18 = vstv %s1401_s8 }
 0x1af   : > { %vm1403_vm1 = vcmp.eq.s32.totalorder %v1402_v18, 1 }
 0x1b0   : > { %v3819_v63 = vsel %vm1268_vm0, %v1262_v54, %v3716_v7  ;;  %v1284_v7 = vld [vmem:[%s1283_s12] sm:$0xff]  ;;  %s2723_s12 = sshll.u32 %s4123_s6, 3 }
 0x1b1   : > { %1274 = vst [vmem:[%s1273_s4] sm:$0xff] %v3819_v63  ;;  %v1288_v9 = vpack.c.bf16 %v3819_v63, %v3819_v63  ;;  %s1553_s4 = scalar_lea.vmem [#allocation4], %s2768_s5  ;;  %s1684_s16 = sshra.s32 %s2723_s12, 3 }
 0x1b2   : > { %s2769_s8 = sshll.u32 %s1684_s16, 5  ;;  %s1813_s19 = scalar_lea.vmem [#allocation5], %s2723_s12 }
 0x1b3   : > { %1322 = vmatmul.mubr.bf16.vlgmr.msra.gmra.mxu0 %v1288_v9  ;;  %1363 = vmatmul.mubr.bf16.vlgmr.msra.gmra.mxu1 %v1288_v9  ;;  %s2735_s5 = sshll.u32 %s4233_s25, 3 }
 0x1b4   : > { %1425 = vmatpush1.bf16.msra.mxu0 %v3594_v38  ;;  %1466 = vmatpush1.bf16.msra.mxu1 %v3602_v40  ;;  %s2083_s12 = scalar_lea.vmem [#allocation5], %s2735_s5 }
 0x1b5   : > { %1426 = vmatprep.subr.bf16.mxu0 %v3598_v39  ;;  %1467 = vmatprep.subr.bf16.mxu1 %v3605_v41  ;;  %s4247_s16 = scalar_select %p510_p2, 0, 7 }
 0x1b6   : > { %1456 = vmatprep.mubr.bf16.mxu0 %v3308_v4  ;;  %1497 = vmatprep.mubr.bf16.mxu1 %v3308_v4 }
 0x1b8   : > { %1427 = vmatpush1.bf16.msra.mxu0 %v3609_v42  ;;  %1468 = vmatpush1.bf16.msra.mxu1 %v3620_v45 }
 0x1b9   : > { %1428 = vmatprep.subr.bf16.mxu0 %v3615_v43  ;;  %1469 = vmatprep.subr.bf16.mxu1 %v3628_v47 }
 0x1bc   : > { %1429 = vmatpush1.bf16.msra.mxu0 %v3623_v46  ;;  %1470 = vmatpush1.bf16.msra.mxu1 %v3636_v49 }
 0x1bd   : > { %1430 = vmatprep.subr.bf16.mxu0 %v3632_v48  ;;  %1471 = vmatprep.subr.bf16.mxu1 %v3639_v50 }
 0x1c0   : > { %1431 = vmatpush1.bf16.msra.mxu0 %v3643_v51  ;;  %1472 = vmatpush1.bf16.msra.mxu1 %v3654_v53 }
 0x1c1   : > { %1432 = vmatprep.subr.bf16.mxu0 %v3649_v52  ;;  %1473 = vmatprep.subr.bf16.mxu1 %v3663_v56 }
 0x1c4   : > { %1433 = vmatpush1.bf16.msra.mxu0 %v3660_v55  ;;  %1474 = vmatpush1.bf16.msra.mxu1 %v3671_v58 }
 0x1c5   : > { %1434 = vmatprep.subr.bf16.mxu0 %v3667_v57  ;;  %1475 = vmatprep.subr.bf16.mxu1 %v3674_v59 }
 0x1c8   : > { %1435 = vmatpush1.bf16.msra.mxu0 %v3678_v60  ;;  %1476 = vmatpush1.bf16.msra.mxu1 %v3689_v62 }
 0x1c9   : > { %1436 = vmatprep.subr.bf16.mxu0 %v3684_v61  ;;  %1477 = vmatprep.subr.bf16.mxu1 %v3698_v1 }
 0x1cc   : > { %1437 = vmatpush1.bf16.msra.mxu0 %v3695_v0  ;;  %1478 = vmatpush1.bf16.msra.mxu1 %v3706_v3 }
 0x1cd   : > { %1438 = vmatprep.subr.bf16.mxu0 %v3702_v2  ;;  %1479 = vmatprep.subr.bf16.mxu1 %v3709_v5 }
 0x1d0   : > { %1439 = vmatpush1.bf16.msra.mxu0 %v3713_v6  ;;  %1480 = vmatpush1.bf16.msra.mxu1 %v3722_v8 }
 0x1d1   : > { %1559 = vmatprep.subr.bf16.mxu0 %v3587_v35  ;;  %1600 = vmatprep.subr.bf16.mxu1 %v3590_v36 }
 0x273   : > { %v1323_v10 = vpop.f32.mrf.mxu0  ;;  %v1364_v11 = vpop.f32.mrf.mxu1 }
 0x274   : > { %v1371_v12 = vadd.f32 %v1323_v10, %v1284_v7  ;;  %v1373_v30 = vadd.f32 %v1364_v11, %v1286_v28 }
 0x275   : > { %v1325_v19 = vpop.f32.mrf.mxu0  ;;  %v1366_v20 = vpop.f32.mrf.mxu1 }
 0x276   : > { %v2708_v14 = vmul.f32 -1.442695, %v1371_v12  ;;  %v1372_v15 = vadd.f32 %v1325_v19, %v1285_v13  ;;  %v1374_v26 = vadd.f32 %v1366_v20, %v1287_v25 }
 0x277   : > { %v1327_v16 = vpop.f32.mrf.mxu0  ;;  %v1368_v21 = vpop.f32.mrf.mxu1 }
 0x278   : > { %3016 = vpow2.f32 %v2708_v14  ;;  %v2709_v22 = vmul.f32 -1.442695, %v1372_v15  ;;  %v2710_v27 = vmul.f32 -1.442695, %v1374_v26 }
 0x279   : > { %v1328_v23 = vpop.f32.mrf.mxu0  ;;  %v1369_v24 = vpop.f32.mrf.mxu1 }
 0x27a   : > { %3018 = vpow2.f32 %v2709_v22  ;;  %v1420_v22 = vld [vmem:[%s1418_s1 + $0x8] sm:$0xff] }
 0x27b   : > { %3020 = vpow2.f32 %v2710_v27 }
 0x285   : > { %v3017_v29 = vpop.eup %3016 }
 0x286   : > { %v1378_v31 = vadd.f32 1.0, %v3017_v29 }
 0x287   : > { %v3019_v32 = vpop.eup %3018 }
 0x288   : > { %3022 = vrcp.f32 %v1378_v31  ;;  %v1384_v33 = vadd.f32 1.0, %v3019_v32  ;;  %v3021_v34 = vpop.eup %3020 }
 0x289   : > { %3024 = vtanh.f32 %v1373_v30  ;;  %v1391_v9 = vadd.f32 1.0, %v3021_v34  ;;  %v1422_v30 = vld [vmem:[%s1418_s1 + $0x18] sm:$0xff] }
 0x28a   : > { %3026 = vrcp.f32 %v1384_v33  ;;  %v1421_v33 = vld [vmem:[%s1418_s1 + $0x10] sm:$0xff] }
 0x28b   : > { %3028 = vrcp.f32 %v1391_v9 }
 0x295   : > { %v3023_v37 = vpop.eup %3022 }
 0x296   : > { %v3025_v17 = vpop.eup %3024 }
 0x297   : > { %v3027_v54 = vpop.eup %3026  ;;  %v1395_v7 = vmul.f32 %v3025_v17, %v3023_v37 }
 0x298   : > { %v1394_v10 = vmul.f32 %v3027_v54, %v3816_v44  ;;  %v3029_v13 = vpop.eup %3028 }
 0x29a   : > { %v1396_v11 = vadd.f32 %v1395_v7, %v1394_v10 }
 0x29c   : > { %3030 = vtanh.f32 %v1396_v11  ;;  %v3871_v12 = vsel %vm1403_vm1, %v1396_v11, %v3816_v44  ;;  %v1419_v44 = vld [vmem:[%s1418_s1] sm:$0xff]  ;;  %v1537_v11 = vstv %s1536_s28  ;;  %s1819_s1 = sshra.s32 %s2729_s17, 3 }
 0x29d   : > { %vm1538_vm2 = vcmp.eq.s32.totalorder %v1537_v11, 1  ;;  %v4044_v11 = vld [vmem:[%s3501_s23 + $0x8c] ss:$16 sps:$4 sm:$0xff]   ;;  %s2770_s2 = sshll.u32 %s1819_s1, 5 }
 0x29e   : > { %s1823_s28 = scalar_lea.vmem [#allocation4], %s2770_s2 }
 0x2a9   : > { %v3031_v19 = vpop.eup %3030 }
 0x2aa   : > { %v1398_v20 = vmul.f32 %v3031_v19, %v3029_v13 }
 0x2ac   : > { %v3874_v14 = vsel %vm1403_vm1, %v1398_v20, %v3819_v63 }
 0x2ad   : > { %1409 = vst [vmem:[%s1408_s20] sm:$0xff] %v3874_v14  ;;  %v1423_v15 = vpack.c.bf16 %v3874_v14, %v3874_v14  ;;  %s1688_s20 = scalar_lea.vmem [#allocation4], %s2769_s8  ;;  %s2741_s8 = sshll.u32 %s4247_s16, 3 }
 0x2af   : > { %1457 = vmatmul.mubr.bf16.vlgmr.msra.gmra.mxu0 %v1423_v15  ;;  %1498 = vmatmul.mubr.bf16.vlgmr.msra.gmra.mxu1 %v1423_v15 }
 0x2b0   : > { %1560 = vmatpush1.bf16.msra.mxu0 %v3594_v38  ;;  %1601 = vmatpush1.bf16.msra.mxu1 %v3602_v40 }
 0x2b1   : > { %1561 = vmatprep.subr.bf16.mxu0 %v3598_v39  ;;  %1602 = vmatprep.subr.bf16.mxu1 %v3605_v41 }
 0x2b2   : > { %1591 = vmatprep.mubr.bf16.mxu0 %v3308_v4  ;;  %1632 = vmatprep.mubr.bf16.mxu1 %v3308_v4 }
 0x2b4   : > { %1562 = vmatpush1.bf16.msra.mxu0 %v3609_v42  ;;  %1603 = vmatpush1.bf16.msra.mxu1 %v3620_v45 }
 0x2b5   : > { %1563 = vmatprep.subr.bf16.mxu0 %v3615_v43  ;;  %1604 = vmatprep.subr.bf16.mxu1 %v3628_v47 }
 0x2b8   : > { %1564 = vmatpush1.bf16.msra.mxu0 %v3623_v46  ;;  %1605 = vmatpush1.bf16.msra.mxu1 %v3636_v49 }
 0x2b9   : > { %1565 = vmatprep.subr.bf16.mxu0 %v3632_v48  ;;  %1606 = vmatprep.subr.bf16.mxu1 %v3639_v50 }
 0x2bc   : > { %1566 = vmatpush1.bf16.msra.mxu0 %v3643_v51  ;;  %1607 = vmatpush1.bf16.msra.mxu1 %v3654_v53 }
 0x2bd   : > { %1567 = vmatprep.subr.bf16.mxu0 %v3649_v52  ;;  %1608 = vmatprep.subr.bf16.mxu1 %v3663_v56 }
 0x2c0   : > { %1568 = vmatpush1.bf16.msra.mxu0 %v3660_v55  ;;  %1609 = vmatpush1.bf16.msra.mxu1 %v3671_v58 }
 0x2c1   : > { %1569 = vmatprep.subr.bf16.mxu0 %v3667_v57  ;;  %1610 = vmatprep.subr.bf16.mxu1 %v3674_v59 }
 0x2c4   : > { %1570 = vmatpush1.bf16.msra.mxu0 %v3678_v60  ;;  %1611 = vmatpush1.bf16.msra.mxu1 %v3689_v62 }
 0x2c5   : > { %1571 = vmatprep.subr.bf16.mxu0 %v3684_v61  ;;  %1612 = vmatprep.subr.bf16.mxu1 %v3698_v1 }
 0x2c8   : > { %1572 = vmatpush1.bf16.msra.mxu0 %v3695_v0  ;;  %1613 = vmatpush1.bf16.msra.mxu1 %v3706_v3 }
 0x2c9   : > { %1573 = vmatprep.subr.bf16.mxu0 %v3702_v2  ;;  %1614 = vmatprep.subr.bf16.mxu1 %v3709_v5 }
 0x2cc   : > { %1574 = vmatpush1.bf16.msra.mxu0 %v3713_v6  ;;  %1615 = vmatpush1.bf16.msra.mxu1 %v3722_v8 }
 0x2cd   : > { %1694 = vmatprep.subr.bf16.mxu0 %v3587_v35  ;;  %1735 = vmatprep.subr.bf16.mxu1 %v3590_v36 }
 0x36f   : > { %v1458_v63 = vpop.f32.mrf.mxu0  ;;  %v1499_v16 = vpop.f32.mrf.mxu1 }
 0x370   : > { %v1506_v21 = vadd.f32 %v1458_v63, %v1419_v44  ;;  %v1508_v37 = vadd.f32 %v1499_v16, %v1421_v33  ;;  %v4006_v33 = vld [vmem:[%s3501_s23 + $0xc4] ss:$16 sps:$4 sm:$0xff]  }
 0x371   : > { %v1460_v23 = vpop.f32.mrf.mxu0  ;;  %v1501_v24 = vpop.f32.mrf.mxu1 }
 0x372   : > { %v2714_v35 = vmul.f32 -1.442695, %v1506_v21  ;;  %v1507_v25 = vadd.f32 %v1460_v23, %v1420_v22  ;;  %v1509_v31 = vadd.f32 %v1501_v24, %v1422_v30 }
 0x373   : > { %v1462_v36 = vpop.f32.mrf.mxu0  ;;  %v1503_v26 = vpop.f32.mrf.mxu1 }
 0x374   : > { %3032 = vpow2.f32 %v2714_v35  ;;  %v2715_v27 = vmul.f32 -1.442695, %v1507_v25  ;;  %v2716_v32 = vmul.f32 -1.442695, %v1509_v31  ;;  %v3998_v31 = vld [vmem:[%s3501_s23 + $0xe0] ss:$16 sps:$4 sm:$0xff]  }
 0x375   : > { %v1463_v28 = vpop.f32.mrf.mxu0  ;;  %v1504_v29 = vpop.f32.mrf.mxu1 }
 0x376   : > { %3034 = vpow2.f32 %v2715_v27 }
 0x377   : > { %3036 = vpow2.f32 %v2716_v32  ;;  %v4002_v32 = vld [vmem:[%s3501_s23 + $0xe8] ss:$16 sps:$4 sm:$0xff]  }
 0x381   : > { %v3033_v34 = vpop.eup %3032 }
 0x382   : > { %v1513_v17 = vadd.f32 1.0, %v3033_v34  ;;  %v4010_v34 = vld [vmem:[%s3501_s23 + $0xcc] ss:$16 sps:$4 sm:$0xff]  }
 0x383   : > { %v3035_v18 = vpop.eup %3034 }
 0x384   : > { %3038 = vrcp.f32 %v1513_v17  ;;  %v1519_v54 = vadd.f32 1.0, %v3035_v18  ;;  %v3037_v9 = vpop.eup %3036  ;;  %v4020_v17 = vld [vmem:[%s3501_s23 + $0xc8] ss:$16 sps:$4 sm:$0xff]   ;;  %v4024_v18 = vld [vmem:[%s3501_s23 + $0xa4] ss:$16 sps:$4 sm:$0xff]  }
 0x385   : > { %3040 = vtanh.f32 %v1508_v37  ;;  %v1526_v19 = vadd.f32 1.0, %v3037_v9  ;;  %v4016_v37 = vld [vmem:[%s3501_s23 + $0xc0] ss:$16 sps:$4 sm:$0xff]  }
 0x386   : > { %3042 = vrcp.f32 %v1519_v54  ;;  %v4028_v54 = vld [vmem:[%s3501_s23 + $0xac] ss:$16 sps:$4 sm:$0xff]   ;;  %v4032_v9 = vld [vmem:[%s3501_s23 + $0xa0] ss:$16 sps:$4 sm:$0xff]  }
 0x387   : > { %3044 = vrcp.f32 %v1526_v19  ;;  %v4052_v19 = vld [vmem:[%s3501_s23 + $0x88] ss:$16 sps:$4 sm:$0xff]  }
 0x391   : > { %v3039_v7 = vpop.eup %3038 }
 0x392   : > { %v3041_v10 = vpop.eup %3040 }
 0x393   : > { %v3043_v13 = vpop.eup %3042  ;;  %v1530_v20 = vmul.f32 %v3041_v10, %v3039_v7  ;;  %v4036_v7 = vld [vmem:[%s3501_s23 + $0xa8] ss:$16 sps:$4 sm:$0xff]   ;;  %v4040_v10 = vld [vmem:[%s3501_s23 + $0x84] ss:$16 sps:$4 sm:$0xff]  }
 0x394   : > { %v1529_v15 = vmul.f32 %v3043_v13, %v3871_v12  ;;  %v3045_v16 = vpop.eup %3044  ;;  %v4048_v13 = vld [vmem:[%s3501_s23 + $0x80] ss:$16 sps:$4 sm:$0xff]  }
 0x396   : > { %v1531_v44 = vadd.f32 %v1530_v20, %v1529_v15  ;;  %v4056_v20 = vld [vmem:[%s3501_s23 + $0x64] ss:$16 sps:$4 sm:$0xff]   ;;  %v4060_v15 = vld [vmem:[%s3501_s23 + $0x6c] ss:$16 sps:$4 sm:$0xff]  }
 0x398   : > { %3046 = vtanh.f32 %v1531_v44  ;;  %v3926_v63 = vsel %vm1538_vm2, %v1531_v44, %v3871_v12  ;;  %v4064_v44 = vld [vmem:[%s3501_s23 + $0x60] ss:$16 sps:$4 sm:$0xff]  }
 0x3a5   : > { %v3047_v21 = vpop.eup %3046 }
 0x3a6   : > { %v1533_v22 = vmul.f32 %v3047_v21, %v3045_v16  ;;  %v4072_v16 = vld [vmem:[%s3501_s23 + $0x44] ss:$16 sps:$4 sm:$0xff]   ;;  %v4076_v21 = vld [vmem:[%s3501_s23 + $0x4c] ss:$16 sps:$4 sm:$0xff]  }
 0x3a8   : > { %v3929_v23 = vsel %vm1538_vm2, %v1533_v22, %v3874_v14  ;;  %v4080_v22 = vld [vmem:[%s3501_s23 + $0x40] ss:$16 sps:$4 sm:$0xff]  }
 0x3a9   : > { %1544 = vst [vmem:[%s1543_s30] sm:$0xff] %v3929_v23  ;;  %v1558_v24 = vpack.c.bf16 %v3929_v23, %v3929_v23  ;;  %s1939_s30 = sadd.s32 %s3516_s15, %s4178_s18 }
 0x3aa   : > { %p1940_p6 = scmp.lt.s32.totalorder %s1939_s30, 20 }
 0x3ab   : > { %1592 = vmatmul.mubr.bf16.vlgmr.msra.gmra.mxu0 %v1558_v24  ;;  %1633 = vmatmul.mubr.bf16.vlgmr.msra.gmra.mxu1 %v1558_v24  ;;  %v4088_v24 = vld [vmem:[%s3501_s23 + $0x24] ss:$16 sps:$4 sm:$0xff]  }
 0x3ac   : > { %1695 = vmatpush1.bf16.msra.mxu0 %v3594_v38  ;;  %1736 = vmatpush1.bf16.msra.mxu1 %v3602_v40  ;;  %v3969_v38 = vld [vmem:[%s3501_s23 + $0xe4] ss:$16 sps:$4 sm:$0xff]   ;;  %s1941_s9 = scalar_select %p1940_p6, 1, 0 }
 0x3ad   : > { %1696 = vmatprep.subr.bf16.mxu0 %v3598_v39  ;;  %1737 = vmatprep.subr.bf16.mxu1 %v3605_v41  ;;  %v3973_v39 = vld [vmem:[%s3501_s23 + $0xec] ss:$16 sps:$4 sm:$0xff]   ;;  %v1554_v40 = vld [vmem:[%s1553_s4] sm:$0xff] }
 0x3ae   : > { %1726 = vmatprep.mubr.bf16.mxu0 %v3308_v4  ;;  %1767 = vmatprep.mubr.bf16.mxu1 %v3308_v4 }
 0x3b0   : > { %1697 = vmatpush1.bf16.msra.mxu0 %v3609_v42  ;;  %1738 = vmatpush1.bf16.msra.mxu1 %v3620_v45  ;;  %v1555_v45 = vld [vmem:[%s1553_s4 + $0x8] sm:$0xff] }
 0x3b1   : > { %1698 = vmatprep.subr.bf16.mxu0 %v3615_v43  ;;  %1739 = vmatprep.subr.bf16.mxu1 %v3628_v47 }
 0x3b4   : > { %1699 = vmatpush1.bf16.msra.mxu0 %v3623_v46  ;;  %1740 = vmatpush1.bf16.msra.mxu1 %v3636_v49 }
 0x3b5   : > { %1700 = vmatprep.subr.bf16.mxu0 %v3632_v48  ;;  %1741 = vmatprep.subr.bf16.mxu1 %v3639_v50 }
 0x3b8   : > { %1701 = vmatpush1.bf16.msra.mxu0 %v3643_v51  ;;  %1742 = vmatpush1.bf16.msra.mxu1 %v3654_v53 }
 0x3b9   : > { %1702 = vmatprep.subr.bf16.mxu0 %v3649_v52  ;;  %1743 = vmatprep.subr.bf16.mxu1 %v3663_v56  ;;  %v1557_v56 = vld [vmem:[%s1553_s4 + $0x18] sm:$0xff] }
 0x3bc   : > { %1703 = vmatpush1.bf16.msra.mxu0 %v3660_v55  ;;  %1744 = vmatpush1.bf16.msra.mxu1 %v3671_v58 }
 0x3bd   : > { %1704 = vmatprep.subr.bf16.mxu0 %v3667_v57  ;;  %1745 = vmatprep.subr.bf16.mxu1 %v3674_v59  ;;  %v1556_v59 = vld [vmem:[%s1553_s4 + $0x10] sm:$0xff]  ;;  %s1954_s4 = sshra.s32 %s2735_s5, 3 }
 0x3be   : > { %s2771_s27 = sshll.u32 %s1954_s4, 5 }
 0x3c0   : > { %1705 = vmatpush1.bf16.msra.mxu0 %v3678_v60  ;;  %1746 = vmatpush1.bf16.msra.mxu1 %v3689_v62 }
 0x3c1   : > { %1706 = vmatprep.subr.bf16.mxu0 %v3684_v61  ;;  %1747 = vmatprep.subr.bf16.mxu1 %v3698_v1 }
 0x3c4   : > { %1707 = vmatpush1.bf16.msra.mxu0 %v3695_v0  ;;  %1748 = vmatpush1.bf16.msra.mxu1 %v3706_v3 }
 0x3c5   : > { %1708 = vmatprep.subr.bf16.mxu0 %v3702_v2  ;;  %1749 = vmatprep.subr.bf16.mxu1 %v3709_v5 }
 0x3c8   : > { %1709 = vmatpush1.bf16.msra.mxu0 %v3713_v6  ;;  %1750 = vmatpush1.bf16.msra.mxu1 %v3722_v8  ;;  %v1672_v6 = vstv %s1671_s24  ;;  %s1958_s24 = scalar_lea.vmem [#allocation4], %s2771_s27 }
 0x3c9   : > { %1829 = vmatprep.subr.bf16.mxu0 %v3969_v38  ;;  %1870 = vmatprep.subr.bf16.mxu1 %v3973_v39  ;;  %vm1673_vm3 = vcmp.eq.s32.totalorder %v1672_v6, 1 }
 0x46b   : > { %v1593_v41 = vpop.f32.mrf.mxu0  ;;  %v1634_v42 = vpop.f32.mrf.mxu1 }
 0x46c   : > { %v1641_v43 = vadd.f32 %v1593_v41, %v1554_v40  ;;  %v1643_v61 = vadd.f32 %v1634_v42, %v1556_v59  ;;  %v4092_v40 = vld [vmem:[%s3501_s23 + $0x2c] ss:$16 sps:$4 sm:$0xff]   ;;  %v4096_v41 = vld [vmem:[%s3501_s23 + $0x20] ss:$16 sps:$4 sm:$0xff]   ;;  %v4100_v42 = vld [vmem:[%s3501_s23 + $0x28] ss:$16 sps:$4 sm:$0xff]  }
 0x46d   : > { %v1595_v46 = vpop.f32.mrf.mxu0  ;;  %v1636_v47 = vpop.f32.mrf.mxu1 }
 0x46e   : > { %v2720_v48 = vmul.f32 -1.442695, %v1641_v43  ;;  %v1642_v49 = vadd.f32 %v1595_v46, %v1555_v45  ;;  %v1644_v57 = vadd.f32 %v1636_v47, %v1557_v56  ;;  %v4104_v43 = vld [vmem:[%s3501_s23 + $0x4] ss:$16 sps:$4 sm:$0xff]   ;;  %v4108_v45 = vld [vmem:[%s3501_s23 + $0xc] ss:$16 sps:$4 sm:$0xff]  }
 0x46f   : > { %v1597_v50 = vpop.f32.mrf.mxu0  ;;  %v1638_v51 = vpop.f32.mrf.mxu1  ;;  %v4112_v46 = vld [vmem:[%s3501_s23] ss:$16 sps:$4 sm:$0xff]   ;;  %v4116_v47 = vld [vmem:[%s3501_s23 + $0x8] ss:$16 sps:$4 sm:$0xff]  }
 0x470   : > { %3048 = vpow2.f32 %v2720_v48  ;;  %v2721_v52 = vmul.f32 -1.442695, %v1642_v49  ;;  %v2722_v58 = vmul.f32 -1.442695, %v1644_v57  ;;  %v1689_v48 = vld [vmem:[%s1688_s20] sm:$0xff] }
 0x471   : > { %v1598_v53 = vpop.f32.mrf.mxu0  ;;  %v1639_v55 = vpop.f32.mrf.mxu1 }
 0x472   : > { %3050 = vpow2.f32 %v2721_v52  ;;  %v1690_v52 = vld [vmem:[%s1688_s20 + $0x8] sm:$0xff] }
 0x473   : > { %3052 = vpow2.f32 %v2722_v58 }
 0x47d   : > { %v3049_v60 = vpop.eup %3048 }
 0x47e   : > { %v1648_v62 = vadd.f32 1.0, %v3049_v60 }
 0x47f   : > { %v3051_v0 = vpop.eup %3050 }
 0x480   : > { %3054 = vrcp.f32 %v1648_v62  ;;  %v1654_v1 = vadd.f32 1.0, %v3051_v0  ;;  %v3053_v2 = vpop.eup %3052  ;;  %v1692_v0 = vld [vmem:[%s1688_s20 + $0x18] sm:$0xff] }
 0x481   : > { %3056 = vtanh.f32 %v1643_v61  ;;  %v1661_v12 = vadd.f32 1.0, %v3053_v2 }
 0x482   : > { %3058 = vrcp.f32 %v1654_v1 }
 0x483   : > { %3060 = vrcp.f32 %v1661_v12 }
 0x48d   : > { %v3055_v3 = vpop.eup %3054 }
 0x48e   : > { %v3057_v5 = vpop.eup %3056 }
 0x48f   : > { %v3059_v8 = vpop.eup %3058  ;;  %v1665_v14 = vmul.f32 %v3057_v5, %v3055_v3  ;;  %v1691_v3 = vld [vmem:[%s1688_s20 + $0x10] sm:$0xff]  ;;  %s2089_s20 = sshra.s32 %s2741_s8, 3 }
 0x490   : > { %v1664_v35 = vmul.f32 %v3059_v8, %v3926_v63  ;;  %v3061_v26 = vpop.eup %3060 }
 0x492   : > { %v1666_v25 = vadd.f32 %v1665_v14, %v1664_v35 }
 0x494   : > { %3062 = vtanh.f32 %v1666_v25  ;;  %v3987_v36 = vsel %vm1673_vm3, %v1666_v25, %v3926_v63  ;;  %v4068_v63 = vld [vmem:[%s3501_s23 + $0x68] ss:$16 sps:$4 sm:$0xff]  }
 0x4a1   : > { %v3063_v27 = vpop.eup %3062 }
 0x4a2   : > { %v1668_v28 = vmul.f32 %v3063_v27, %v3061_v26 }
 0x4a4   : > { %v3990_v29 = vsel %vm1673_vm3, %v1668_v28, %v3929_v23  ;;  %v4084_v23 = vld [vmem:[%s3501_s23 + $0x48] ss:$16 sps:$4 sm:$0xff]   ;;  %s1804_s23 = sadd.s32 %s3516_s15, %s4123_s6 }
 0x4a5   : > { %1679 = vst [vmem:[%s1678_s29] sm:$0xff] %v3990_v29  ;;  %v1693_v30 = vpack.c.bf16 %v3990_v29, %v3990_v29  ;;  %p1805_p5 = scmp.lt.s32.totalorder %s1804_s23, 20  ;;  %s2074_s29 = sadd.s32 %s3516_s15, %s4233_s25 }
 0x4a6   : > { %p2075_p1 = scmp.lt.s32.totalorder %s2074_s29, 20  ;;  %s2772_s23 = sshll.u32 %s2089_s20, 5 }
 0x4a7   : > { %1727 = vmatmul.mubr.bf16.vlgmr.msra.gmra.mxu0 %v1693_v30  ;;  %1768 = vmatmul.mubr.bf16.vlgmr.msra.gmra.mxu1 %v1693_v30  ;;  %s1806_s21 = scalar_select %p1805_p5, 1, 0 }
 0x4a8   : > { %1830 = vmatpush1.bf16.msra.mxu0 %v3998_v31  ;;  %1871 = vmatpush1.bf16.msra.mxu1 %v4002_v32  ;;  %s2076_s6 = scalar_select %p2075_p1, 1, 0 }
 0x4a9   : > { %1831 = vmatprep.subr.bf16.mxu0 %v4006_v33  ;;  %1872 = vmatprep.subr.bf16.mxu1 %v4010_v34  ;;  %v1807_v27 = vstv %s1806_s21  ;;  %s2093_s21 = scalar_lea.vmem [#allocation4], %s2772_s23 }
 0x4aa   : > { %1861 = vmatprep.mubr.bf16.mxu0 %v3308_v4  ;;  %1902 = vmatprep.mubr.bf16.mxu1 %v3308_v4  ;;  %vm1808_vm4 = vcmp.eq.s32.totalorder %v1807_v27, 1 }
 0x4ac   : > { %1832 = vmatpush1.bf16.msra.mxu0 %v4016_v37  ;;  %1873 = vmatpush1.bf16.msra.mxu1 %v4020_v17 }
 0x4ad   : > { %1833 = vmatprep.subr.bf16.mxu0 %v4024_v18  ;;  %1874 = vmatprep.subr.bf16.mxu1 %v4028_v54 }
 0x4b0   : > { %1834 = vmatpush1.bf16.msra.mxu0 %v4032_v9  ;;  %1875 = vmatpush1.bf16.msra.mxu1 %v4036_v7 }
 0x4b1   : > { %1835 = vmatprep.subr.bf16.mxu0 %v4040_v10  ;;  %1876 = vmatprep.subr.bf16.mxu1 %v4044_v11 }
 0x4b4   : > { %1836 = vmatpush1.bf16.msra.mxu0 %v4048_v13  ;;  %1877 = vmatpush1.bf16.msra.mxu1 %v4052_v19 }
 0x4b5   : > { %1837 = vmatprep.subr.bf16.mxu0 %v4056_v20  ;;  %1878 = vmatprep.subr.bf16.mxu1 %v4060_v15 }
 0x4b8   : > { %1838 = vmatpush1.bf16.msra.mxu0 %v4064_v44  ;;  %1879 = vmatpush1.bf16.msra.mxu1 %v4068_v63 }
 0x4b9   : > { %1839 = vmatprep.subr.bf16.mxu0 %v4072_v16  ;;  %1880 = vmatprep.subr.bf16.mxu1 %v4076_v21 }
 0x4bc   : > { %1840 = vmatpush1.bf16.msra.mxu0 %v4080_v22  ;;  %1881 = vmatpush1.bf16.msra.mxu1 %v4084_v23 }
 0x4bd   : > { %1841 = vmatprep.subr.bf16.mxu0 %v4088_v24  ;;  %1882 = vmatprep.subr.bf16.mxu1 %v4092_v40 }
 0x4c0   : > { %1842 = vmatpush1.bf16.msra.mxu0 %v4096_v41  ;;  %1883 = vmatpush1.bf16.msra.mxu1 %v4100_v42 }
 0x4c1   : > { %1843 = vmatprep.subr.bf16.mxu0 %v4104_v43  ;;  %1884 = vmatprep.subr.bf16.mxu1 %v4108_v45 }
 0x4c4   : > { %1844 = vmatpush1.bf16.msra.mxu0 %v4112_v46  ;;  %1885 = vmatpush1.bf16.msra.mxu1 %v4116_v47 }
 0x4c5   : > { %1964 = vmatprep.subr.bf16.mxu0 %v3969_v38  ;;  %2005 = vmatprep.subr.bf16.mxu1 %v3973_v39 }
 0x567   : > { %v1728_v49 = vpop.f32.mrf.mxu0  ;;  %v1769_v50 = vpop.f32.mrf.mxu1 }
 0x568   : > { %v1776_v51 = vadd.f32 %v1728_v49, %v1689_v48  ;;  %v1778_v6 = vadd.f32 %v1769_v50, %v1691_v3 }
 0x569   : > { %v1730_v53 = vpop.f32.mrf.mxu0  ;;  %v1771_v55 = vpop.f32.mrf.mxu1 }
 0x56a   : > { %v2726_v56 = vmul.f32 -1.442695, %v1776_v51  ;;  %v1777_v57 = vadd.f32 %v1730_v53, %v1690_v52  ;;  %v1779_v1 = vadd.f32 %v1771_v55, %v1692_v0 }
 0x56b   : > { %v1732_v58 = vpop.f32.mrf.mxu0  ;;  %v1773_v59 = vpop.f32.mrf.mxu1 }
 0x56c   : > { %3064 = vpow2.f32 %v2726_v56  ;;  %v2727_v60 = vmul.f32 -1.442695, %v1777_v57  ;;  %v2728_v2 = vmul.f32 -1.442695, %v1779_v1 }
 0x56d   : > { %v1733_v61 = vpop.f32.mrf.mxu0  ;;  %v1774_v62 = vpop.f32.mrf.mxu1 }
 0x56e   : > { %3066 = vpow2.f32 %v2727_v60  ;;  %v1825_v60 = vld [vmem:[%s1823_s28 + $0x8] sm:$0xff] }
 0x56f   : > { %3068 = vpow2.f32 %v2728_v2 }
 0x579   : > { %v3065_v5 = vpop.eup %3064 }
 0x57a   : > { %v1783_v8 = vadd.f32 1.0, %v3065_v5 }
 0x57b   : > { %v3067_v12 = vpop.eup %3066 }
 0x57c   : > { %3070 = vrcp.f32 %v1783_v8  ;;  %v1789_v14 = vadd.f32 1.0, %v3067_v12  ;;  %v3069_v35 = vpop.eup %3068 }
 0x57d   : > { %3072 = vtanh.f32 %v1778_v6  ;;  %v1796_v30 = vadd.f32 1.0, %v3069_v35  ;;  %v1827_v6 = vld [vmem:[%s1823_s28 + $0x18] sm:$0xff] }
 0x57e   : > { %3074 = vrcp.f32 %v1789_v14  ;;  %v1826_v14 = vld [vmem:[%s1823_s28 + $0x10] sm:$0xff] }
 0x57f   : > { %3076 = vrcp.f32 %v1796_v30 }
 0x589   : > { %v3071_v25 = vpop.eup %3070 }
 0x58a   : > { %v3073_v26 = vpop.eup %3072 }
 0x58b   : > { %v3075_v28 = vpop.eup %3074  ;;  %v1800_v48 = vmul.f32 %v3073_v26, %v3071_v25 }
 0x58c   : > { %v1799_v49 = vmul.f32 %v3075_v28, %v3987_v36  ;;  %v3077_v52 = vpop.eup %3076 }
 0x58e   : > { %v1801_v50 = vadd.f32 %v1800_v48, %v1799_v49 }
 0x590   : > { %3078 = vtanh.f32 %v1801_v50  ;;  %v4132_v51 = vsel %vm1808_vm4, %v1801_v50, %v3987_v36  ;;  %v1824_v36 = vld [vmem:[%s1823_s28] sm:$0xff]  ;;  %v1942_v50 = vstv %s1941_s9 }
 0x591   : > { %vm1943_vm5 = vcmp.eq.s32.totalorder %v1942_v50, 1 }
 0x59d   : > { %v3079_v53 = vpop.eup %3078 }
 0x59e   : > { %v1803_v55 = vmul.f32 %v3079_v53, %v3077_v52 }
 0x5a0   : > { %v4135_v56 = vsel %vm1808_vm4, %v1803_v55, %v3990_v29 }
 0x5a1   : > { %1814 = vst [vmem:[%s1813_s19] sm:$0xff] %v4135_v56  ;;  %v1828_v57 = vpack.c.bf16 %v4135_v56, %v4135_v56  ;;  %s2209_s19 = sadd.s32 %s3516_s15, %s4247_s16  ;;  %s2218_s15 = scalar_lea.vmem [#allocation5], %s2741_s8 }
 0x5a2   : > { %p2210_p8 = scmp.lt.s32.totalorder %s2209_s19, 20 }
 0x5a3   : > { %1862 = vmatmul.mubr.bf16.vlgmr.msra.gmra.mxu0 %v1828_v57  ;;  %1903 = vmatmul.mubr.bf16.vlgmr.msra.gmra.mxu1 %v1828_v57 }
 0x5a4   : > { %1965 = vmatpush1.bf16.msra.mxu0 %v3998_v31  ;;  %2006 = vmatpush1.bf16.msra.mxu1 %v4002_v32  ;;  %s2211_s18 = scalar_select %p2210_p8, 1, 0 }
 0x5a5   : > { %1966 = vmatprep.subr.bf16.mxu0 %v4006_v33  ;;  %2007 = vmatprep.subr.bf16.mxu1 %v4010_v34 }
 0x5a6   : > { %1996 = vmatprep.mubr.bf16.mxu0 %v3308_v4  ;;  %2037 = vmatprep.mubr.bf16.mxu1 %v3308_v4 }
 0x5a8   : > { %1967 = vmatpush1.bf16.msra.mxu0 %v4016_v37  ;;  %2008 = vmatpush1.bf16.msra.mxu1 %v4020_v17 }
 0x5a9   : > { %1968 = vmatprep.subr.bf16.mxu0 %v4024_v18  ;;  %2009 = vmatprep.subr.bf16.mxu1 %v4028_v54 }
 0x5ac   : > { %1969 = vmatpush1.bf16.msra.mxu0 %v4032_v9  ;;  %2010 = vmatpush1.bf16.msra.mxu1 %v4036_v7 }
 0x5ad   : > { %1970 = vmatprep.subr.bf16.mxu0 %v4040_v10  ;;  %2011 = vmatprep.subr.bf16.mxu1 %v4044_v11 }
 0x5b0   : > { %1971 = vmatpush1.bf16.msra.mxu0 %v4048_v13  ;;  %2012 = vmatpush1.bf16.msra.mxu1 %v4052_v19 }
 0x5b1   : > { %1972 = vmatprep.subr.bf16.mxu0 %v4056_v20  ;;  %2013 = vmatprep.subr.bf16.mxu1 %v4060_v15 }
 0x5b4   : > { %1973 = vmatpush1.bf16.msra.mxu0 %v4064_v44  ;;  %2014 = vmatpush1.bf16.msra.mxu1 %v4068_v63 }
 0x5b5   : > { %1974 = vmatprep.subr.bf16.mxu0 %v4072_v16  ;;  %2015 = vmatprep.subr.bf16.mxu1 %v4076_v21 }
 0x5b8   : > { %1975 = vmatpush1.bf16.msra.mxu0 %v4080_v22  ;;  %2016 = vmatpush1.bf16.msra.mxu1 %v4084_v23 }
 0x5b9   : > { %1976 = vmatprep.subr.bf16.mxu0 %v4088_v24  ;;  %2017 = vmatprep.subr.bf16.mxu1 %v4092_v40 }
 0x5bc   : > { %1977 = vmatpush1.bf16.msra.mxu0 %v4096_v41  ;;  %2018 = vmatpush1.bf16.msra.mxu1 %v4100_v42 }
 0x5bd   : > { %1978 = vmatprep.subr.bf16.mxu0 %v4104_v43  ;;  %2019 = vmatprep.subr.bf16.mxu1 %v4108_v45 }
 0x5c0   : > { %1979 = vmatpush1.bf16.msra.mxu0 %v4112_v46  ;;  %2020 = vmatpush1.bf16.msra.mxu1 %v4116_v47 }
 0x5c1   : > { %2099 = vmatprep.subr.bf16.mxu0 %v3969_v38  ;;  %2140 = vmatprep.subr.bf16.mxu1 %v3973_v39 }
 0x663   : > { %v1863_v29 = vpop.f32.mrf.mxu0  ;;  %v1904_v58 = vpop.f32.mrf.mxu1 }
 0x664   : > { %v1911_v59 = vadd.f32 %v1863_v29, %v1824_v36  ;;  %v1913_v25 = vadd.f32 %v1904_v58, %v1826_v14 }
 0x665   : > { %v1865_v61 = vpop.f32.mrf.mxu0  ;;  %v1906_v62 = vpop.f32.mrf.mxu1 }
 0x666   : > { %v2732_v38 = vmul.f32 -1.442695, %v1911_v59  ;;  %v1912_v0 = vadd.f32 %v1865_v61, %v1825_v60  ;;  %v1914_v8 = vadd.f32 %v1906_v62, %v1827_v6 }
 0x667   : > { %v1867_v39 = vpop.f32.mrf.mxu0  ;;  %v1908_v1 = vpop.f32.mrf.mxu1 }
 0x668   : > { %3080 = vpow2.f32 %v2732_v38  ;;  %v2733_v2 = vmul.f32 -1.442695, %v1912_v0  ;;  %v2734_v12 = vmul.f32 -1.442695, %v1914_v8 }
 0x669   : > { %v1868_v3 = vpop.f32.mrf.mxu0  ;;  %v1909_v5 = vpop.f32.mrf.mxu1 }
 0x66a   : > { %3082 = vpow2.f32 %v2733_v2 }
 0x66b   : > { %3084 = vpow2.f32 %v2734_v12 }
 0x675   : > { %v3081_v35 = vpop.eup %3080 }
 0x676   : > { %v1918_v26 = vadd.f32 1.0, %v3081_v35  ;;  %v2094_v35 = vld [vmem:[%s2093_s21] sm:$0xff] }
 0x677   : > { %v3083_v27 = vpop.eup %3082 }
 0x678   : > { %3086 = vrcp.f32 %v1918_v26  ;;  %v1924_v28 = vadd.f32 1.0, %v3083_v27  ;;  %v3085_v30 = vpop.eup %3084 }
 0x679   : > { %3088 = vtanh.f32 %v1913_v25  ;;  %v1931_v53 = vadd.f32 1.0, %v3085_v30 }
 0x67a   : > { %3090 = vrcp.f32 %v1924_v28  ;;  %v2095_v28 = vld [vmem:[%s2093_s21 + $0x8] sm:$0xff] }
 0x67b   : > { %3092 = vrcp.f32 %v1931_v53 }
 0x685   : > { %v3087_v48 = vpop.eup %3086 }
 0x686   : > { %v3089_v49 = vpop.eup %3088 }
 0x687   : > { %v3091_v52 = vpop.eup %3090  ;;  %v1935_v55 = vmul.f32 %v3089_v49, %v3087_v48 }
 0x688   : > { %v1934_v57 = vmul.f32 %v3091_v52, %v4132_v51  ;;  %v3093_v58 = vpop.eup %3092 }
 0x68a   : > { %v1936_v36 = vadd.f32 %v1935_v55, %v1934_v57 }
 0x68c   : > { %3094 = vtanh.f32 %v1936_v36  ;;  %v4187_v29 = vsel %vm1943_vm5, %v1936_v36, %v4132_v51 }
 0x699   : > { %v3095_v59 = vpop.eup %3094 }
 0x69a   : > { %v1938_v60 = vmul.f32 %v3095_v59, %v3093_v58 }
 0x69c   : > { %v4190_v61 = vsel %vm1943_vm5, %v1938_v60, %v4135_v56  ;;  %v2096_v60 = vld [vmem:[%s2093_s21 + $0x10] sm:$0xff] }
 0x69d   : > { %1949 = vst [vmem:[%s1948_s13] sm:$0xff] %v4190_v61  ;;  %v1963_v62 = vpack.c.bf16 %v4190_v61, %v4190_v61 }
 0x69f   : > { %1997 = vmatmul.mubr.bf16.vlgmr.msra.gmra.mxu0 %v1963_v62  ;;  %2038 = vmatmul.mubr.bf16.vlgmr.msra.gmra.mxu1 %v1963_v62 }
 0x6a0   : > { %2100 = vmatpush1.bf16.msra.mxu0 %v3998_v31  ;;  %2141 = vmatpush1.bf16.msra.mxu1 %v4002_v32 }
 0x6a1   : > { %2101 = vmatprep.subr.bf16.mxu0 %v4006_v33  ;;  %2142 = vmatprep.subr.bf16.mxu1 %v4010_v34 }
 0x6a2   : > { %2131 = vmatprep.mubr.bf16.mxu0 %v3308_v4  ;;  %2172 = vmatprep.mubr.bf16.mxu1 %v3308_v4  ;;  %v1959_v4 = vld [vmem:[%s1958_s24] sm:$0xff] }
 0x6a4   : > { %v2223_v51 = vld [vmem:[#allocation5 + $0x18] sm:$0xff]  ;;  %v2224_v56 = vld [vmem:[#allocation5 + $0x20] sm:$0xff]  ;;  %v2222_v38 = vld [vmem:[#allocation5 + $0x10] sm:$0xff]  ;;  %2102 = vmatpush1.bf16.msra.mxu0 %v4016_v37  ;;  %2143 = vmatpush1.bf16.msra.mxu1 %v4020_v17 }
 0x6a5   : > { %v2225_v0 = vld [vmem:[#allocation5 + $0x28] sm:$0xff]  ;;  %v2790_v31 = vpack.c.bf16 %v2223_v51, %v2222_v38  ;;  %2103 = vmatprep.subr.bf16.mxu0 %v4024_v18  ;;  %2144 = vmatprep.subr.bf16.mxu1 %v4028_v54  ;;  %v1960_v37 = vld [vmem:[%s1958_s24 + $0x8] sm:$0xff] }
 0x6a6   : > { %v2795_v39 = vpack.c.bf16 %v2225_v0, %v2224_v56 }
 0x6a7   : > { %2802 = vst [vmem:[%s3549_s7 + $0x8] sm:$0xff] %v2790_v31  }
 0x6a8   : > { %2803 = vst [vmem:[%s3549_s7 + $0x10] sm:$0xff] %v2795_v39   ;;  %2104 = vmatpush1.bf16.msra.mxu0 %v4032_v9  ;;  %2145 = vmatpush1.bf16.msra.mxu1 %v4036_v7 }
 0x6a9   : > { %2105 = vmatprep.subr.bf16.mxu0 %v4040_v10  ;;  %2146 = vmatprep.subr.bf16.mxu1 %v4044_v11 }
 0x6ac   : > { %2106 = vmatpush1.bf16.msra.mxu0 %v4048_v13  ;;  %2147 = vmatpush1.bf16.msra.mxu1 %v4052_v19 }
 0x6ad   : > { %2107 = vmatprep.subr.bf16.mxu0 %v4056_v20  ;;  %2148 = vmatprep.subr.bf16.mxu1 %v4060_v15  ;;  %v1962_v20 = vld [vmem:[%s1958_s24 + $0x18] sm:$0xff] }
 0x6b0   : > { %2108 = vmatpush1.bf16.msra.mxu0 %v4064_v44  ;;  %2149 = vmatpush1.bf16.msra.mxu1 %v4068_v63  ;;  %v1961_v63 = vld [vmem:[%s1958_s24 + $0x10] sm:$0xff] }
 0x6b1   : > { %2109 = vmatprep.subr.bf16.mxu0 %v4072_v16  ;;  %2150 = vmatprep.subr.bf16.mxu1 %v4076_v21 }
 0x6b4   : > { %2110 = vmatpush1.bf16.msra.mxu0 %v4080_v22  ;;  %2151 = vmatpush1.bf16.msra.mxu1 %v4084_v23 }
 0x6b5   : > { %2111 = vmatprep.subr.bf16.mxu0 %v4088_v24  ;;  %2152 = vmatprep.subr.bf16.mxu1 %v4092_v40 }
 0x6b8   : > { %2112 = vmatpush1.bf16.msra.mxu0 %v4096_v41  ;;  %2153 = vmatpush1.bf16.msra.mxu1 %v4100_v42 }
 0x6b9   : > { %2113 = vmatprep.subr.bf16.mxu0 %v4104_v43  ;;  %2154 = vmatprep.subr.bf16.mxu1 %v4108_v45  ;;  %v2077_v43 = vstv %s2076_s6 }
 0x6ba   : > { %vm2078_vm6 = vcmp.eq.s32.totalorder %v2077_v43, 1 }
 0x6bc   : > { %2114 = vmatpush1.bf16.msra.mxu0 %v4112_v46  ;;  %2155 = vmatpush1.bf16.msra.mxu1 %v4116_v47 }
 0x75f   : > { %v1998_v32 = vpop.f32.mrf.mxu0  ;;  %v2039_v33 = vpop.f32.mrf.mxu1 }
 0x760   : > { %v2046_v34 = vadd.f32 %v1998_v32, %v1959_v4  ;;  %v2048_v21 = vadd.f32 %v2039_v33, %v1961_v63  ;;  %v2212_v4 = vstv %s2211_s18 }
 0x761   : > { %v2000_v17 = vpop.f32.mrf.mxu0  ;;  %v2041_v18 = vpop.f32.mrf.mxu1  ;;  %vm2213_vm7 = vcmp.eq.s32.totalorder %v2212_v4, 1 }
 0x762   : > { %v2738_v54 = vmul.f32 -1.442695, %v2046_v34  ;;  %v2047_v9 = vadd.f32 %v2000_v17, %v1960_v37  ;;  %v2049_v15 = vadd.f32 %v2041_v18, %v1962_v20 }
 0x763   : > { %v2002_v7 = vpop.f32.mrf.mxu0  ;;  %v2043_v10 = vpop.f32.mrf.mxu1 }
 0x764   : > { %3096 = vpow2.f32 %v2738_v54  ;;  %v2739_v11 = vmul.f32 -1.442695, %v2047_v9  ;;  %v2740_v44 = vmul.f32 -1.442695, %v2049_v15 }
 0x765   : > { %v2003_v13 = vpop.f32.mrf.mxu0  ;;  %v2044_v19 = vpop.f32.mrf.mxu1 }
 0x766   : > { %3098 = vpow2.f32 %v2739_v11 }
 0x767   : > { %3100 = vpow2.f32 %v2740_v44 }
 0x771   : > { %v3097_v16 = vpop.eup %3096 }
 0x772   : > { %v2053_v22 = vadd.f32 1.0, %v3097_v16 }
 0x773   : > { %v3099_v23 = vpop.eup %3098 }
 0x774   : > { %3102 = vrcp.f32 %v2053_v22  ;;  %v2059_v24 = vadd.f32 1.0, %v3099_v23  ;;  %v3101_v40 = vpop.eup %3100 }
 0x775   : > { %3104 = vtanh.f32 %v2048_v21  ;;  %v2066_v46 = vadd.f32 1.0, %v3101_v40 }
 0x776   : > { %3106 = vrcp.f32 %v2059_v24 }
 0x777   : > { %3108 = vrcp.f32 %v2066_v46 }
 0x781   : > { %v3103_v41 = vpop.eup %3102 }
 0x782   : > { %v3105_v42 = vpop.eup %3104 }
 0x783   : > { %v3107_v45 = vpop.eup %3106  ;;  %v2070_v47 = vmul.f32 %v3105_v42, %v3103_v41 }
 0x784   : > { %v2069_v1 = vmul.f32 %v3107_v45, %v4187_v29  ;;  %v3109_v5 = vpop.eup %3108 }
 0x786   : > { %v2071_v2 = vadd.f32 %v2070_v47, %v2069_v1 }
 0x788   : > { %3110 = vtanh.f32 %v2071_v2  ;;  %v2079_v3 = vsel %vm2078_vm6, %v2071_v2, %v4187_v29  ;;  %v2097_v29 = vld [vmem:[%s2093_s21 + $0x18] sm:$0xff] }
 0x795   : > { %v3111_v6 = vpop.eup %3110 }
 0x796   : > { %v2073_v8 = vmul.f32 %v3111_v6, %v3109_v5 }
 0x798   : > { %v2080_v12 = vsel %vm2078_vm6, %v2073_v8, %v4190_v61 }
 0x799   : > { %2084 = vst [vmem:[%s2083_s12] sm:$0xff] %v2080_v12  ;;  %v2098_v14 = vpack.c.bf16 %v2080_v12, %v2080_v12 }
 0x79b   : > { %2132 = vmatmul.mubr.bf16.vlgmr.msra.gmra.mxu0 %v2098_v14  ;;  %2173 = vmatmul.mubr.bf16.vlgmr.msra.gmra.mxu1 %v2098_v14 }
 0x85b   : > { %v2133_v25 = vpop.f32.mrf.mxu0  ;;  %v2174_v26 = vpop.f32.mrf.mxu1 }
 0x85c   : > { %v2181_v27 = vadd.f32 %v2133_v25, %v2094_v35  ;;  %v2183_v62 = vadd.f32 %v2174_v26, %v2096_v60 }
 0x85d   : > { %v2135_v30 = vpop.f32.mrf.mxu0  ;;  %v2176_v48 = vpop.f32.mrf.mxu1 }
 0x85e   : > { %v2744_v49 = vmul.f32 -1.442695, %v2181_v27  ;;  %v2182_v50 = vadd.f32 %v2135_v30, %v2095_v28  ;;  %v2184_v58 = vadd.f32 %v2176_v48, %v2097_v29 }
 0x85f   : > { %v2137_v52 = vpop.f32.mrf.mxu0  ;;  %v2178_v53 = vpop.f32.mrf.mxu1 }
 0x860   : > { %3112 = vpow2.f32 %v2744_v49  ;;  %v2745_v55 = vmul.f32 -1.442695, %v2182_v50  ;;  %v2746_v59 = vmul.f32 -1.442695, %v2184_v58 }
 0x861   : > { %v2138_v57 = vpop.f32.mrf.mxu0  ;;  %v2179_v36 = vpop.f32.mrf.mxu1 }
 0x862   : > { %3114 = vpow2.f32 %v2745_v55 }
 0x863   : > { %3116 = vpow2.f32 %v2746_v59 }
 0x86d   : > { %v3113_v61 = vpop.eup %3112 }
 0x86e   : > { %v2188_v51 = vadd.f32 1.0, %v3113_v61 }
 0x86f   : > { %v3115_v56 = vpop.eup %3114 }
 0x870   : > { %3118 = vrcp.f32 %v2188_v51  ;;  %v2194_v38 = vadd.f32 1.0, %v3115_v56  ;;  %v3117_v0 = vpop.eup %3116 }
 0x871   : > { %3120 = vtanh.f32 %v2183_v62  ;;  %v2201_v33 = vadd.f32 1.0, %v3117_v0 }
 0x872   : > { %3122 = vrcp.f32 %v2194_v38 }
 0x873   : > { %3124 = vrcp.f32 %v2201_v33 }
 0x87d   : > { %v3119_v31 = vpop.eup %3118 }
 0x87e   : > { %v3121_v39 = vpop.eup %3120 }
 0x87f   : > { %v3123_v32 = vpop.eup %3122  ;;  %v2205_v34 = vmul.f32 %v3121_v39, %v3119_v31 }
 0x880   : > { %v2204_v37 = vmul.f32 %v3123_v32, %v2079_v3  ;;  %v3125_v54 = vpop.eup %3124 }
 0x882   : > { %v2206_v17 = vadd.f32 %v2205_v34, %v2204_v37 }
 0x884   : > { %3126 = vtanh.f32 %v2206_v17  ;;  %v2214_v18 = vsel %vm2213_vm7, %v2206_v17, %v2079_v3 }
 0x885   : > { %2217 = vst [vmem:[#allocation3] sm:$0xff] %v2214_v18 }
 0x891   : > { %v3127_v9 = vpop.eup %3126 }
 0x892   : > { %v2208_v7 = vmul.f32 %v3127_v9, %v3125_v54 }
 0x894   : > { %v2215_v10 = vsel %vm2213_vm7, %v2208_v7, %v2080_v12 }
 0x895   : > { %2216 = vst [vmem:[#allocation2] sm:$0xff] %v2215_v10  ;;  %2219 = vst [vmem:[%s2218_s15] sm:$0xff] %v2215_v10 }
 0x89c   : > { %v2221_v11 = vld [vmem:[#allocation5 + $0x8] sm:$0xff]  ;;  %v2226_v13 = vld [vmem:[#allocation5 + $0x30] sm:$0xff]  ;;  %v2220_v19 = vld [vmem:[#allocation5] sm:$0xff]  ;;  %2271 = sbr.rel (%p2755_p9) target bundleno = 2211 (0x8a3), region = 60 }
 0x89d   : > { %v2227_v20 = vld [vmem:[#allocation5 + $0x38] sm:$0xff]  ;;  %v2785_v15 = vpack.c.bf16 %v2221_v11, %v2220_v19 }
 0x89e   : > { %v2800_v44 = vpack.c.bf16 %v2227_v20, %v2226_v13 }
 0x89f   : > { %2786 = vst [vmem:[%s3549_s7] sm:$0xff] %v2785_v15  }
 0x8a0   : > { %2804 = vst [vmem:[%s3549_s7 + $0x18] sm:$0xff] %v2800_v44  }
 0x8a1   : > { %v2272_v63 = vld [vmem:[#allocation2] sm:$0xff]  ;;  %v2274_v16 = vld [vmem:[#allocation3] sm:$0xff] }
 0x8a2   : > { %2273 = vst [vmem:[%s504_s14] sm:$0xff] %v2272_v63  ;;  %2275 = vst [vmem:[%s508_s3] sm:$0xff] %v2274_v16 }
 0x8a3 PF: > { %2290 = sbr.rel (!%p3437_p11) target bundleno = 2225 (0x8b1), region = 64  ;;  %s4367_s10 = sld [smem:[#allocation23_spill]] (%p3437_p11)  ;;  %v2320_v23 = vld [vmem:[%s3549_s7 + $0x8] sm:$0xf] (%p3437_p11)  ;;  %v2322_v24 = vld [vmem:[%s3549_s7 + $0xc] sm:$0xf] (%p3437_p11) }
 0x8a4   : > { %v2324_v40 = vld [vmem:[%s3549_s7 + $0x10] sm:$0xf] (%p3437_p11)  ;;  %v2326_v41 = vld [vmem:[%s3549_s7 + $0x14] sm:$0xf] (%p3437_p11)  ;;  %s4368_s25 = sld [smem:[#allocation29_spill]] (%p3437_p11) }
 0x8a8   : > { %v2316_v21 = vld [vmem:[%s3549_s7] sm:$0xf]  ;;  %v2318_v22 = vld [vmem:[%s3549_s7 + $0x4] sm:$0xf] }
 0x8a9   : > { %s2781_s14 = sshll.u32 %s4367_s10, 4  ;;  %v2328_v42 = vld [vmem:[%s3549_s7 + $0x18] sm:$0xf]  ;;  %v2330_v43 = vld [vmem:[%s3549_s7 + $0x1c] sm:$0xf] }
 0x8aa   : > { %s2297_s13 = sadd.s32 %s3290_s11, %s2781_s14 }
 0x8ab   : > { %s2760_s3 = sshll.u32 %s2297_s13, 2 }
 0x8ac   : > { %s2299_s5 = scalar_lea.vmem %s4368_s25, %s2760_s3 }
 0x8ad   : > { %2317 = vst [vmem:[%s2299_s5] sm:$0xf] %v2316_v21  ;;  %2319 = vst [vmem:[%s2299_s5 + $0x8] sm:$0xf] %v2318_v22 }
 0x8ae   : > { %2321 = vst [vmem:[%s2299_s5 + $0x10] sm:$0xf] %v2320_v23  ;;  %2323 = vst [vmem:[%s2299_s5 + $0x18] sm:$0xf] %v2322_v24 }
 0x8af   : > { %2325 = vst [vmem:[%s2299_s5 + $0x20] sm:$0xf] %v2324_v40  ;;  %2327 = vst [vmem:[%s2299_s5 + $0x28] sm:$0xf] %v2326_v41 }
 0x8b0   : > { %2329 = vst [vmem:[%s2299_s5 + $0x30] sm:$0xf] %v2328_v42  ;;  %2331 = vst [vmem:[%s2299_s5 + $0x38] sm:$0xf] %v2330_v43 }
 0x8b1 PF: > { %s4369_s11 = sld [smem:[#allocation18_spill]] }
 0x8b2   : > { %s4370_s27 = sld [smem:[#allocation13_spill]] }
 0x8b3   : > { %s4371_s28 = sld [smem:[#allocation22_spill]] }
 0x8b4   : > { %s4372_s29 = sld [smem:[#allocation14_spill]] }
 0x8b5   : > { %s4373_s30 = sld [smem:[#allocation15_spill]] }
 0x8b6   : > { %s4374_s9 = sld [smem:[#allocation21_spill]] }
 0x8b7   : > { %s25_s14 = sadd.s32 1, %s4369_s11   ;;  %s4375_s10 = sld [smem:[#allocation16_spill]] }
 0x8b8   : > { %p22_p11 = scmp.ge.s32.totalorder %s25_s14, 8   ;;  %s4376_s11 = sld [smem:[#allocation17_spill]] }
 0x8b9   : > { %s4377_s12 = sld [smem:[#allocation19_spill]] }
 0x8ba   : > { %s4378_s13 = sld [smem:[#allocation20_spill]]  ;;  %24 = sbr.rel (!%p22_p11) target bundleno = 17 (0x11), region = 198 }
 0x8bf   :  { %2401 = vsyncpa [#allocation7], 1 }
 0x8c0   :  { %2403 = vsyncpa [#allocation7 + $0x1], 1 }
 0x8c1   :  { %2404 = vsyncpa [#allocation9], 1 }
 0x8c2   :  { %2406 = vsyncpa [#allocation9 + $0x1], 1 }

// kernel: rnn_forward.5
= control target key start
LH: loop header
LB: loop body
LE: loop exit
PB: predicated region body
PF: predicated region fallthrough
CT: control target
= control target key end

     0   :  { %s1040_s1 = inlined_call_operand.vmem [shape: bf16[256,128], index: 1, kind: input, shape index: {}]   ;;  %s1041_s0 = inlined_call_operand.vmem [shape: bf16[192,256], index: 0, kind: input, shape index: {}]   ;;  %s1042_s2 = inlined_call_operand.vmem [shape: f32[1,128], index: 2, kind: input, shape index: {}]   ;;  %s1043_s3 = inlined_call_operand.vmem [shape: f32[192,128], index: 3, kind: output, shape index: {}]  }
   0x1   :  { %v747_v0 = vld [vmem:[%s1040_s1 + $0x78] sm:$0xff]   ;;  %v749_v2 = vld [vmem:[%s1040_s1 + $0x70] sm:$0xff]   ;;  %v751_v4 = vld [vmem:[%s1040_s1 + $0x68] sm:$0xff]  }
   0x2   :  { %v748_v1 = vld [vmem:[%s1040_s1 + $0x38] sm:$0xff]   ;;  %643 = vmatprep.subr.bf16.mxu0 %v747_v0  ;;  %731 = vmatprep.subr.bf16.mxu1 %v747_v0  ;;  %v750_v3 = vld [vmem:[%s1040_s1 + $0x30] sm:$0xff]   ;;  %v752_v5 = vld [vmem:[%s1040_s1 + $0x28] sm:$0xff]  }
   0x3   :  { %644 = vmatpush3.bf16.msra.mxu0 %v748_v1  ;;  %739 = vmatpush3.bf16.msra.mxu1 %v748_v1  ;;  %v753_v6 = vld [vmem:[%s1040_s1 + $0x60] sm:$0xff]   ;;  %v755_v8 = vld [vmem:[%s1040_s1 + $0x58] sm:$0xff]   ;;  %v757_v10 = vld [vmem:[%s1040_s1 + $0x50] sm:$0xff]  }
   0x4   :  { %645 = vmatprep.subr.bf16.mxu0 %v749_v2  ;;  %732 = vmatprep.subr.bf16.mxu1 %v749_v2  ;;  %v754_v7 = vld [vmem:[%s1040_s1 + $0x20] sm:$0xff]   ;;  %v756_v9 = vld [vmem:[%s1040_s1 + $0x18] sm:$0xff]   ;;  %v758_v13 = vld [vmem:[%s1040_s1 + $0x10] sm:$0xff]  }
   0x5   :  { %v765_v11 = vld [vmem:[%s1041_s0 + $0x4] ss:$8 sps:$4 sm:$0xff]   ;;  %v763_v18 = vld [vmem:[%s1041_s0] ss:$8 sps:$4 sm:$0xff]   ;;  %v769_v20 = vld [vmem:[%s1041_s0 + $0x14] ss:$8 sps:$4 sm:$0xff]  }
   0x6   :  { %v768_v12 = vld [vmem:[%s1041_s0 + $0x64] ss:$8 sps:$4 sm:$0xff]   ;;  %371 = vmatprep.mubr.bf16.mxu0 %v765_v11  ;;  %v766_v19 = vld [vmem:[%s1041_s0 + $0x60] ss:$8 sps:$4 sm:$0xff]   ;;  %v771_v21 = vld [vmem:[%s1041_s0 + $0x74] ss:$8 sps:$4 sm:$0xff]  }
   0x7   :  { %646 = vmatpush3.bf16.msra.mxu0 %v750_v3  ;;  %740 = vmatpush3.bf16.msra.mxu1 %v750_v3  ;;  %v759_v14 = vld [vmem:[%s1040_s1 + $0x48] sm:$0xff]   ;;  %v761_v16 = vld [vmem:[%s1040_s1 + $0x40] sm:$0xff]   ;;  %v773_v22 = vld [vmem:[%s1041_s0 + $0x10] ss:$8 sps:$4 sm:$0xff]  }
   0x8   :  { %647 = vmatprep.subr.bf16.mxu0 %v751_v4  ;;  %733 = vmatprep.subr.bf16.mxu1 %v751_v4  ;;  %v760_v15 = vld [vmem:[%s1040_s1 + $0x8] sm:$0xff]   ;;  %v762_v17 = vld [vmem:[%s1040_s1] sm:$0xff]   ;;  %v774_v23 = vld [vmem:[%s1041_s0 + $0x70] ss:$8 sps:$4 sm:$0xff]  }
   0x9   :  { %419 = vmatprep.mubr.bf16.mxu1 %v768_v12  ;;  %v775_v24 = vld [vmem:[%s1041_s0 + $0x24] ss:$8 sps:$4 sm:$0xff]   ;;  %v779_v26 = vld [vmem:[%s1041_s0 + $0x20] ss:$8 sps:$4 sm:$0xff]   ;;  %v781_v28 = vld [vmem:[%s1041_s0 + $0x34] ss:$8 sps:$4 sm:$0xff]  }
   0xa   :  { %v777_v25 = vld [vmem:[%s1041_s0 + $0x84] ss:$8 sps:$4 sm:$0xff]   ;;  %v780_v27 = vld [vmem:[%s1041_s0 + $0x80] ss:$8 sps:$4 sm:$0xff]   ;;  %v783_v29 = vld [vmem:[%s1041_s0 + $0x94] ss:$8 sps:$4 sm:$0xff]  }
   0xb   :  { %648 = vmatpush3.bf16.msra.mxu0 %v752_v5  ;;  %741 = vmatpush3.bf16.msra.mxu1 %v752_v5  ;;  %v785_v30 = vld [vmem:[%s1041_s0 + $0x30] ss:$8 sps:$4 sm:$0xff]   ;;  %v787_v32 = vld [vmem:[%s1041_s0 + $0x44] ss:$8 sps:$4 sm:$0xff]   ;;  %v791_v34 = vld [vmem:[%s1041_s0 + $0x40] ss:$8 sps:$4 sm:$0xff]  }
   0xc   :  { %649 = vmatprep.subr.bf16.mxu0 %v753_v6  ;;  %734 = vmatprep.subr.bf16.mxu1 %v753_v6  ;;  %v786_v31 = vld [vmem:[%s1041_s0 + $0x90] ss:$8 sps:$4 sm:$0xff]   ;;  %v789_v33 = vld [vmem:[%s1041_s0 + $0xa4] ss:$8 sps:$4 sm:$0xff]   ;;  %v792_v35 = vld [vmem:[%s1041_s0 + $0xa0] ss:$8 sps:$4 sm:$0xff]  }
   0xd   :  { %v793_v36 = vld [vmem:[%s1041_s0 + $0x54] ss:$8 sps:$4 sm:$0xff]   ;;  %v797_v38 = vld [vmem:[%s1041_s0 + $0x50] ss:$8 sps:$4 sm:$0xff]   ;;  %v942_v43 = vld [vmem:[%s1042_s2] ss:$0 sm:$0xff] }
   0xe   :  { %v795_v37 = vld [vmem:[%s1041_s0 + $0xb4] ss:$8 sps:$4 sm:$0xff]   ;;  %v798_v39 = vld [vmem:[%s1041_s0 + $0xb0] ss:$8 sps:$4 sm:$0xff]  }
   0xf   :  { %650 = vmatpush3.bf16.msra.mxu0 %v754_v7  ;;  %742 = vmatpush3.bf16.msra.mxu1 %v754_v7 }
  0x10   :  { %651 = vmatprep.subr.bf16.mxu0 %v755_v8  ;;  %735 = vmatprep.subr.bf16.mxu1 %v755_v8 }
  0x13   :  { %652 = vmatpush3.bf16.msra.mxu0 %v756_v9  ;;  %743 = vmatpush3.bf16.msra.mxu1 %v756_v9 }
  0x14   :  { %653 = vmatprep.subr.bf16.mxu0 %v757_v10  ;;  %736 = vmatprep.subr.bf16.mxu1 %v757_v10 }
  0x17   :  { %654 = vmatpush3.bf16.msra.mxu0 %v758_v13  ;;  %744 = vmatpush3.bf16.msra.mxu1 %v758_v13 }
  0x18   :  { %655 = vmatprep.subr.bf16.mxu0 %v759_v14  ;;  %737 = vmatprep.subr.bf16.mxu1 %v759_v14 }
  0x1b   :  { %656 = vmatpush3.bf16.msra.mxu0 %v760_v15  ;;  %745 = vmatpush3.bf16.msra.mxu1 %v760_v15 }
  0x1c   :  { %657 = vmatprep.subr.bf16.mxu0 %v761_v16  ;;  %738 = vmatprep.subr.bf16.mxu1 %v761_v16 }
  0x1f   :  { %658 = vmatpush3.bf16.msra.mxu0 %v762_v17  ;;  %746 = vmatpush3.bf16.msra.mxu1 %v762_v17 }
  0x22   :  { %372 = vmatmul.mubr.bf16.vlgmr.msra.gmra.mxu0 %v763_v18  ;;  %420 = vmatmul.mubr.bf16.vlgmr.msra.gmra.mxu1 %v766_v19 }
  0x23   :  { %379 = vmatprep.mubr.bf16.mxu0 %v769_v20  ;;  %427 = vmatprep.mubr.bf16.mxu1 %v771_v21 }
  0x2a   :  { %380 = vmatmul.mubr.bf16.gmra.mxu0 %v773_v22  ;;  %428 = vmatmul.mubr.bf16.gmra.mxu1 %v774_v23 }
  0x2b   :  { %387 = vmatprep.mubr.bf16.mxu0 %v775_v24  ;;  %435 = vmatprep.mubr.bf16.mxu1 %v777_v25 }
  0x32   :  { %388 = vmatmul.mubr.bf16.gmra.mxu0 %v779_v26  ;;  %436 = vmatmul.mubr.bf16.gmra.mxu1 %v780_v27 }
  0x33   :  { %395 = vmatprep.mubr.bf16.mxu0 %v781_v28  ;;  %443 = vmatprep.mubr.bf16.mxu1 %v783_v29 }
  0x3a   :  { %396 = vmatmul.mubr.bf16.gmra.mxu0 %v785_v30  ;;  %444 = vmatmul.mubr.bf16.gmra.mxu1 %v786_v31 }
  0x3b   :  { %403 = vmatprep.mubr.bf16.mxu0 %v787_v32  ;;  %451 = vmatprep.mubr.bf16.mxu1 %v789_v33 }
  0x42   :  { %404 = vmatmul.mubr.bf16.gmra.mxu0 %v791_v34  ;;  %452 = vmatmul.mubr.bf16.gmra.mxu1 %v792_v35 }
  0x43   :  { %411 = vmatprep.mubr.bf16.mxu0 %v793_v36  ;;  %459 = vmatprep.mubr.bf16.mxu1 %v795_v37 }
  0x4a   :  { %412 = vmatmul.mubr.bf16.gmra.mxu0 %v797_v38  ;;  %460 = vmatmul.mubr.bf16.gmra.mxu1 %v798_v39 }
  0xe2   :  { %v659_v40 = vpop.f32.mrf.mxu0  ;;  %v695_v41 = vpop.f32.mrf.mxu1 }
  0xe4   :  { %v660_v42 = vpop.f32.mrf.mxu0  ;;  %v696_v44 = vpop.f32.mrf.mxu1 }
  0xe5   :  { %v661_v45 = vadd.f32 %v660_v42, %v659_v40  ;;  %v697_v46 = vadd.f32 %v696_v44, %v695_v41 }
  0xe6   :  { %v662_v47 = vpop.f32.mrf.mxu0  ;;  %v698_v48 = vpop.f32.mrf.mxu1 }
  0xe7   :  { %v550_v49 = vadd.f32 %v661_v45, %v942_v43  ;;  %v562_v50 = vadd.f32 %v697_v46, %v942_v43 }
  0xe8   :  { %v663_v51 = vpop.f32.mrf.mxu0  ;;  %v699_v52 = vpop.f32.mrf.mxu1 }
  0xe9   :  { %574 = vst [vmem:[%s1043_s3] sm:$0xff] %v550_v49  ;;  %586 = vst [vmem:[%s1043_s3 + $0x60] sm:$0xff] %v562_v50  ;;  %v664_v53 = vadd.f32 %v663_v51, %v662_v47  ;;  %v700_v54 = vadd.f32 %v699_v52, %v698_v48 }
  0xea   :  { %v665_v55 = vpop.f32.mrf.mxu0  ;;  %v701_v56 = vpop.f32.mrf.mxu1 }
  0xeb   :  { %v551_v57 = vadd.f32 %v664_v53, %v942_v43  ;;  %v563_v58 = vadd.f32 %v700_v54, %v942_v43 }
  0xec   :  { %v666_v59 = vpop.f32.mrf.mxu0  ;;  %v702_v60 = vpop.f32.mrf.mxu1 }
  0xed   :  { %575 = vst [vmem:[%s1043_s3 + $0x8] sm:$0xff] %v551_v57  ;;  %587 = vst [vmem:[%s1043_s3 + $0x68] sm:$0xff] %v563_v58  ;;  %v667_v61 = vadd.f32 %v666_v59, %v665_v55  ;;  %v703_v62 = vadd.f32 %v702_v60, %v701_v56 }
  0xee   :  { %v668_v63 = vpop.f32.mrf.mxu0  ;;  %v704_v0 = vpop.f32.mrf.mxu1 }
  0xef   :  { %v552_v1 = vadd.f32 %v667_v61, %v942_v43  ;;  %v564_v2 = vadd.f32 %v703_v62, %v942_v43 }
  0xf0   :  { %v669_v3 = vpop.f32.mrf.mxu0  ;;  %v705_v4 = vpop.f32.mrf.mxu1 }
  0xf1   :  { %576 = vst [vmem:[%s1043_s3 + $0x10] sm:$0xff] %v552_v1  ;;  %588 = vst [vmem:[%s1043_s3 + $0x70] sm:$0xff] %v564_v2  ;;  %v670_v5 = vadd.f32 %v669_v3, %v668_v63  ;;  %v706_v6 = vadd.f32 %v705_v4, %v704_v0 }
  0xf2   :  { %v671_v7 = vpop.f32.mrf.mxu0  ;;  %v707_v8 = vpop.f32.mrf.mxu1 }
  0xf3   :  { %v553_v9 = vadd.f32 %v670_v5, %v942_v43  ;;  %v565_v10 = vadd.f32 %v706_v6, %v942_v43 }
  0xf4   :  { %v672_v11 = vpop.f32.mrf.mxu0  ;;  %v708_v12 = vpop.f32.mrf.mxu1 }
  0xf5   :  { %577 = vst [vmem:[%s1043_s3 + $0x18] sm:$0xff] %v553_v9  ;;  %589 = vst [vmem:[%s1043_s3 + $0x78] sm:$0xff] %v565_v10  ;;  %v673_v13 = vadd.f32 %v672_v11, %v671_v7  ;;  %v709_v14 = vadd.f32 %v708_v12, %v707_v8 }
  0xf6   :  { %v674_v15 = vpop.f32.mrf.mxu0  ;;  %v710_v16 = vpop.f32.mrf.mxu1 }
  0xf7   :  { %v554_v17 = vadd.f32 %v673_v13, %v942_v43  ;;  %v566_v18 = vadd.f32 %v709_v14, %v942_v43 }
  0xf8   :  { %v675_v19 = vpop.f32.mrf.mxu0  ;;  %v711_v20 = vpop.f32.mrf.mxu1 }
  0xf9   :  { %578 = vst [vmem:[%s1043_s3 + $0x20] sm:$0xff] %v554_v17  ;;  %590 = vst [vmem:[%s1043_s3 + $0x80] sm:$0xff] %v566_v18  ;;  %v676_v21 = vadd.f32 %v675_v19, %v674_v15  ;;  %v712_v22 = vadd.f32 %v711_v20, %v710_v16 }
  0xfa   :  { %v677_v23 = vpop.f32.mrf.mxu0  ;;  %v713_v24 = vpop.f32.mrf.mxu1 }
  0xfb   :  { %v555_v25 = vadd.f32 %v676_v21, %v942_v43  ;;  %v567_v26 = vadd.f32 %v712_v22, %v942_v43 }
  0xfc   :  { %v678_v27 = vpop.f32.mrf.mxu0  ;;  %v714_v28 = vpop.f32.mrf.mxu1 }
  0xfd   :  { %579 = vst [vmem:[%s1043_s3 + $0x28] sm:$0xff] %v555_v25  ;;  %591 = vst [vmem:[%s1043_s3 + $0x88] sm:$0xff] %v567_v26  ;;  %v679_v29 = vadd.f32 %v678_v27, %v677_v23  ;;  %v715_v30 = vadd.f32 %v714_v28, %v713_v24 }
  0xfe   :  { %v680_v31 = vpop.f32.mrf.mxu0  ;;  %v716_v32 = vpop.f32.mrf.mxu1 }
  0xff   :  { %v556_v33 = vadd.f32 %v679_v29, %v942_v43  ;;  %v568_v34 = vadd.f32 %v715_v30, %v942_v43 }
 0x100   :  { %v681_v35 = vpop.f32.mrf.mxu0  ;;  %v717_v36 = vpop.f32.mrf.mxu1 }
 0x101   :  { %580 = vst [vmem:[%s1043_s3 + $0x30] sm:$0xff] %v556_v33  ;;  %592 = vst [vmem:[%s1043_s3 + $0x90] sm:$0xff] %v568_v34  ;;  %v682_v37 = vadd.f32 %v681_v35, %v680_v31  ;;  %v718_v38 = vadd.f32 %v717_v36, %v716_v32 }
 0x102   :  { %v683_v39 = vpop.f32.mrf.mxu0  ;;  %v719_v40 = vpop.f32.mrf.mxu1 }
 0x103   :  { %v557_v41 = vadd.f32 %v682_v37, %v942_v43  ;;  %v569_v42 = vadd.f32 %v718_v38, %v942_v43 }
 0x104   :  { %v684_v44 = vpop.f32.mrf.mxu0  ;;  %v720_v45 = vpop.f32.mrf.mxu1 }
 0x105   :  { %581 = vst [vmem:[%s1043_s3 + $0x38] sm:$0xff] %v557_v41  ;;  %593 = vst [vmem:[%s1043_s3 + $0x98] sm:$0xff] %v569_v42  ;;  %v685_v46 = vadd.f32 %v684_v44, %v683_v39  ;;  %v721_v47 = vadd.f32 %v720_v45, %v719_v40 }
 0x106   :  { %v686_v48 = vpop.f32.mrf.mxu0  ;;  %v722_v49 = vpop.f32.mrf.mxu1 }
 0x107   :  { %v558_v50 = vadd.f32 %v685_v46, %v942_v43  ;;  %v570_v51 = vadd.f32 %v721_v47, %v942_v43 }
 0x108   :  { %v687_v52 = vpop.f32.mrf.mxu0  ;;  %v723_v53 = vpop.f32.mrf.mxu1 }
 0x109   :  { %582 = vst [vmem:[%s1043_s3 + $0x40] sm:$0xff] %v558_v50  ;;  %594 = vst [vmem:[%s1043_s3 + $0xa0] sm:$0xff] %v570_v51  ;;  %v688_v54 = vadd.f32 %v687_v52, %v686_v48  ;;  %v724_v55 = vadd.f32 %v723_v53, %v722_v49 }
 0x10a   :  { %v689_v56 = vpop.f32.mrf.mxu0  ;;  %v725_v57 = vpop.f32.mrf.mxu1 }
 0x10b   :  { %v559_v58 = vadd.f32 %v688_v54, %v942_v43  ;;  %v571_v59 = vadd.f32 %v724_v55, %v942_v43 }
 0x10c   :  { %v690_v60 = vpop.f32.mrf.mxu0  ;;  %v726_v61 = vpop.f32.mrf.mxu1 }
 0x10d   :  { %583 = vst [vmem:[%s1043_s3 + $0x48] sm:$0xff] %v559_v58  ;;  %595 = vst [vmem:[%s1043_s3 + $0xa8] sm:$0xff] %v571_v59  ;;  %v691_v62 = vadd.f32 %v690_v60, %v689_v56  ;;  %v727_v63 = vadd.f32 %v726_v61, %v725_v57 }
 0x10e   :  { %v692_v0 = vpop.f32.mrf.mxu0  ;;  %v728_v1 = vpop.f32.mrf.mxu1 }
 0x10f   :  { %v560_v2 = vadd.f32 %v691_v62, %v942_v43  ;;  %v572_v3 = vadd.f32 %v727_v63, %v942_v43 }
 0x110   :  { %v693_v4 = vpop.f32.mrf.mxu0  ;;  %v729_v5 = vpop.f32.mrf.mxu1 }
 0x111   :  { %584 = vst [vmem:[%s1043_s3 + $0x50] sm:$0xff] %v560_v2  ;;  %596 = vst [vmem:[%s1043_s3 + $0xb0] sm:$0xff] %v572_v3  ;;  %v694_v6 = vadd.f32 %v693_v4, %v692_v0  ;;  %v730_v7 = vadd.f32 %v729_v5, %v728_v1 }
 0x113   :  { %v561_v8 = vadd.f32 %v694_v6, %v942_v43  ;;  %v573_v9 = vadd.f32 %v730_v7, %v942_v43 }
 0x115   :  { %585 = vst [vmem:[%s1043_s3 + $0x58] sm:$0xff] %v561_v8  ;;  %597 = vst [vmem:[%s1043_s3 + $0xb8] sm:$0xff] %v573_v9 }

// kernel: rnn_forward.4
= control target key start
LH: loop header
LB: loop body
LE: loop exit
PB: predicated region body
PF: predicated region fallthrough
CT: control target
= control target key end

     0   :  { %s4545_s0 = inlined_call_operand.vmem [shape: bf16[192,256], index: 0, kind: input, shape index: {}]   ;;  %s4546_s1 = inlined_call_operand.vmem [shape: bf16[2,256,512], index: 1, kind: input, shape index: {}]   ;;  %s4547_s2 = inlined_call_operand.hbm [shape: bf16[2,128,512], index: 2, kind: input, shape index: {}]   ;;  %s4548_s3 = inlined_call_operand.vmem [shape: f32[2,1,512], index: 3, kind: input, shape index: {}]   ;;  %s4549_s4 = inlined_call_operand.vmem [shape: f32[2,8,128], index: 4, kind: input, shape index: {}, may-alias: {4,5}]   ;;  %s4550_s5 = inlined_call_operand.vmem [shape: f32[2,8,128], index: 5, kind: input, shape index: {}, may-alias: {4,5}]   ;;  %s4551_s6 = inlined_call_operand.vmem [shape: bf16[192,256], index: 6, kind: output, shape index: {0}]   ;;  %s4552_s7 = inlined_call_operand.vmem [shape: f32[2,8,128], index: 7, kind: output, shape index: {1}]   ;;  %s4553_s8 = inlined_call_operand.vmem [shape: f32[2,8,128], index: 8, kind: output, shape index: {2}]  }
   0x1   :  { %4560 = sst [smem:[#allocation17_spill]] %s4545_s0 }
   0x2   :  { %4561 = sst [smem:[#allocation18_spill]] %s4546_s1 }
   0x3   :  { %4562 = sst [smem:[#allocation19_spill]] %s4547_s2 }
   0x4   :  { %4563 = sst [smem:[#allocation20_spill]] %s4548_s3 }
   0x5   :  { %4564 = sst [smem:[#allocation21_spill]] %s4549_s4 }
   0x6   :  { %4565 = sst [smem:[#allocation22_spill]] %s4550_s5 }
   0x7   :  { %4566 = sst [smem:[#allocation23_spill]] %s4551_s6 }
   0x8   :  { %4567 = sst [smem:[#allocation24_spill]] %s4552_s7 }
   0x9   :  { %4568 = sst [smem:[#allocation25_spill]] %s4553_s8 }
   0xa   :  { %14 = vsyncpa [#allocation7], 0 }
   0xb   :  { %16 = vsyncpa [#allocation7 + $0x1], 0  ;;  %s3588_s27 = smov 0   ;;  %s3590_s28 = smov 0  }
   0xc   :  { %s3592_s29 = smov 0   ;;  %s3594_s30 = smov 0  }
   0xd   :  { %s3596_s9 = smov 0   ;;  %s3598_s10 = smov 0  }
   0xe   :  { %s3600_s11 = smov 0   ;;  %s3602_s12 = smov 0  }
   0xf   :  { %s3604_s13 = smov 0   ;;  %s3606_s14 = smov 0  }
  0x10 LB: > { %4569 = sst [smem:[#allocation10_spill]] %s3513_s30  ;;  %s2782_s15 = sadd.s32 4294967295, %s3537_s14   ;;  %s3537_s14 = sphi %s3606_s14, %s22_s14   ;;  %s3533_s13 = sphi %s3604_s13, %s4597_s13   ;;  %s3529_s12 = sphi %s3602_s12, %s4596_s12   ;;  %s3525_s11 = sphi %s3600_s11, %s4595_s11   ;;  %s3521_s10 = sphi %s3598_s10, %s4594_s10   ;;  %s3517_s9 = sphi %s3596_s9, %s4593_s9   ;;  %s3513_s30 = sphi %s3594_s30, %s4592_s30   ;;  %s3509_s29 = sphi %s3592_s29, %s4591_s29   ;;  %s3505_s28 = sphi %s3590_s28, %s4599_s28   ;;  %s3501_s27 = sphi %s3588_s27, %s4598_s27  }
  0x11   : > { %4570 = sst [smem:[#allocation11_spill]] %s3517_s9  ;;  %s31_s16 = sadd.s32 1, %s3529_s12 }
  0x12   : > { %4571 = sst [smem:[#allocation12_spill]] %s3529_s12  ;;  %p32_p0 = scmp.ge.s32.totalorder %s31_s16, 3 }
  0x13   : > { %4572 = sst [smem:[#allocation13_spill]] %s3533_s13  ;;  %s34_s17 = sadd.s32 1, %s3533_s13 }
  0x14   : > { %s101_s18 = sadd.s32 1, %s3517_s9  ;;  %p108_p1 = scmp.ne.s32.totalorder %s3517_s9, %s3513_s30 }
  0x15   : > { %s4601_s16 = smov (%p32_p0, %s31_s16), 0  ;;  %s4603_s17 = smov (!%p32_p0, %s34_s17), %s3533_s13 }
  0x16   : > { %4573 = sst [smem:[#allocation14_spill]] %s4601_s16  ;;  %p109_p2 = scmp.eq.s32.totalorder %s3537_s14, 0 }
  0x17   : > { %p114_p3 = scmp.ne.s32.totalorder %s3513_s30, %s3509_s29  ;;  %p36_p4 = scmp.ge.s32.totalorder %s4603_s17, 2 }
  0x18   : > { %p115_p5 = scmp.eq.s32.totalorder %s2782_s15, 0  ;;  %p3647_p6 = por %p109_p2, %p108_p1 }
  0x19   : > { %s2786_s20 = sshll.u32 %s3529_s12, 1  ;;  %s4605_s17 = smov (%p36_p4, %s4603_s17), 0 }
  0x1a   : > { %4575 = sst [smem:[#allocation15_spill]] %s4605_s17  ;;  %p3654_p7 = por %p115_p5, %p114_p3 }
  0x1b   : > { %s203_s22 = ssub.s32 2, %s2786_s20  ;;  %s98_s23 = ssub.s32 %s3533_s13, %s4605_s17 }
  0x1c   : > { %s204_s24 = smul.u32 %s3533_s13, %s203_s22  ;;  %p99_p8 = scmp.eq.s32.totalorder %s98_s23, 0 }
  0x1d   : > { %s2787_s25 = sshll.u32 %s4601_s16, 1  ;;  %s215_s7 = sadd.s32 1, %s3505_s28 }
  0x1e   : > { %s205_s26 = sadd.s32 %s3529_s12, %s204_s24  ;;  %s207_s29 = ssub.s32 2, %s2787_s25 }
  0x1f   : > { %s3664_s6 = scalar_select %p99_p8, %s3517_s9, %s101_s18  }
  0x20   : > { %s208_s8 = smul.u32 %s207_s29, %s4605_s17  ;;  %p225_p9 = scmp.ne.s32.totalorder %s3505_s28, %s3501_s27 }
  0x21   : > { %4577 = sst [smem:[#allocation16_spill]] %s3664_s6  ;;  %p226_p10 = scmp.eq.s32.totalorder %s2782_s15, 5 }
  0x22   : > { %s209_s5 = sadd.s32 %s208_s8, %s4601_s16  ;;  %p3027_p12 = scmp.lt.s32.totalorder %s3537_s14, 6 }
  0x23   : > { %s210_s20 = ssub.s32 %s205_s26, %s209_s5  ;;  %p3671_p11 = por %p226_p10, %p225_p9 }
  0x24   : > { %s212_s22 = sor.u32 %s210_s20, %s98_s23  ;;  %s330_s24 = sand.u32 1, %s3517_s9  }
  0x25   : > { %p213_p13 = scmp.eq.s32.totalorder %s212_s22, 0  ;;  %s2790_s12 = sshll.u32 %s330_s24, 8 }
  0x26   : > { %s2978_s18 = sshll.u32 %s3533_s13, 12  ;;  %s4579_s2 = sld [smem:[#allocation19_spill]] }
  0x27   : > { %s3678_s25 = scalar_select %p213_p13, %s3505_s28, %s215_s7  }
  0x28   : > { %s334_s15 = scalar_lea.vmem [#allocation6], %s2790_s12  ;;  %p3686_p0 = pnand %p3027_p12, %p3647_p6 }
  0x29   : > { %s341_s3 = sshll.u32 %s334_s15, 4  ;;  %p2793_p1 = scmp.ge.s32.totalorder %s3537_s14, 1  ;;  %s342_s3 = int_to_ptr.vmem [resolvable:$true] %s341_s3 }
  0x2a   : > { %s331_s8 = scalar_lea.sflag [#allocation7], %s330_s24  ;;  %p3429_p2 = pneg %p3686_p0 }
  0x2b   : > { %s3440_s7 = scalar_lea.vmem %s342_s3, 4096  ;;  %s3539_s23 = smov [#allocation6]  }
  0x2c   : > { %s340_s6 = scalar_lea.hbm %s4579_s2, %s2978_s18  ;;  %p3441_p3 = scmp.ne.s32.totalorder %s342_s3, %s3440_s7 }
  0x2d   : > { %s3445_s17 = sshll.u32 %s3539_s23, 4  ;;  %s3446_s17 = int_to_ptr.vmem [resolvable:$false] %s3445_s17 }
  0x2e   : > { %p3443_p4 = pnand %p3441_p3, %p3429_p2  ;;  %s3447_s12 = scalar_lea.vmem %s3446_s17, 8192 }
  0x2f   : > { %p3448_p8 = scmp.lt.s32.totalorder %s342_s3, %s3446_s17  ;;  %p3449_p9 = scmp.lt.s32.totalorder %s3447_s12, %s3440_s7 }
  0x30   : > { %p3444_p5 = pneg %p3443_p4 }
  0x31   : > { %p3450_p10 = por %p3449_p9, %p3448_p8 }
  0x33   : > { %p3451_p6 = pnand %p3450_p10, %p3444_p5 }
  0x35   : > { %3454 = shalt.err (!%p3451_p6)
}
  0x36   : > { %s3540_s19 = smov 256   ;;  %s3541_s26 = smov 16  }
  0x37   : > { %3026 = dma.hbm_to_vmem [thread:$0]  (!%p3686_p0), %s340_s6, 4096, %s342_s3, %s331_s8, %s3540_s19, %s3540_s19, %s3541_s26  }
  0x38   : > { %p370_p12 = scmp.lt.s32.totalorder %s3537_s14, 7 }
  0x3a   : > { %p371_p13 = pnand %p2793_p1, %p370_p12 }
  0x3b   : > { %s376_s20 = sand.u32 (!%p371_p13), 1, %s3513_s30  }
  0x3c   : > { %374 = sbr.rel (%p371_p13) target bundleno = 2236 (0x8bc), region = 44  ;;  %s2794_s22 = sshll.u32 (!%p371_p13), %s376_s20, 8 }
  0x3d   : > { %s377_s24 = scalar_lea.sflag (!%p371_p13), [#allocation7], %s376_s20  ;;  %s3699_s18 = scalar_lea.vmem (!%p371_p13), [#allocation6], %s2794_s22 }
  0x41   : > { %3496 = dma.done.wait (%p3654_p7), %s377_s24, 4096  }
  0x42   : > { %3498 = vsyncadd (%p3654_p7), %s377_s24, 4294963200  ;;  %s432_s3 = sand.u32 1, %s3501_s27   ;;  %s2796_s6 = sshll.u32 %s3521_s10, 1 }
  0x43   : > { %s2795_s29 = sshll.u32 %s432_s3, 5  ;;  %s448_s15 = ssub.s32 2, %s2796_s6 }
  0x44   : > { %s449_s5 = smul.u32 %s3525_s11, %s448_s15  ;;  %p462_p0 = scmp.lt.s32.totalorder %s3525_s11, 1 }
  0x45   : > { %p493_p1 = scmp.eq.s32.totalorder %s3525_s11, 1  ;;  %s4581_s1 = sld [smem:[#allocation18_spill]] }
  0x46   : > { %s3711_s8 = sadd.s32 %s3521_s10, %s449_s5  ;;  %s4582_s0 = sld [smem:[#allocation17_spill]] }
  0x47   : > { %s3714_s7 = sshll.u32 %s3711_s8, 3  ;;  %s4583_s5 = sld [smem:[#allocation20_spill]] }
  0x48   : > { %p452_p7 = scmp.lt.s32.totalorder %s3714_s7, 23  ;;  %s4584_s9 = sld [smem:[#allocation21_spill]] }
  0x49   : > { %s463_s21 = scalar_select %p462_p0, %s3525_s11, 1 }
  0x4a   : > { %s453_s23 = scalar_select %p452_p7, %s3714_s7, 23 }
  0x4b   : > { %s2980_s17 = sshll.u32 %s463_s21, 9  ;;  %s2802_s12 = sshll.u32 %s463_s21, 2 }
  0x4c   : > { %s2979_s19 = sshll.u32 %s453_s23, 3  ;;  %s3722_s20 = scalar_lea.vmem %s4581_s1, %s2980_s17 }
  0x4d   : > { %s3727_s3 = scalar_lea.vmem %s4582_s0, %s2979_s19  ;;  %s3732_s2 = scalar_lea.vmem %s4583_s5, %s2802_s12 }
  0x4e   : > { %s3734_s16 = sshll.u32 %s463_s21, 3  ;;  %s4585_s22 = sld [smem:[#allocation22_spill]] }
  0x4f   : > { %s474_s17 = scalar_lea.vmem %s4584_s9, %s3734_s16  ;;  %s4586_s1 = sld [smem:[#allocation24_spill]] }
  0x50   : > { %s4587_s21 = sld [smem:[#allocation25_spill]]  ;;  %s3752_s30 = scalar_lea.vmem [#allocation8], %s2795_s29 }
  0x51   : > { %p2807_p2 = scmp.ne.s32.totalorder %s3521_s10, 0 }
  0x53   : > { %497 = sbr.rel (%p2807_p2) target bundleno = 91 (0x5b), region = 52 }
  0x54   : > { %s478_s19 = scalar_lea.vmem %s4585_s22, %s3734_s16 }
  0x55   : > { %s487_s6 = scalar_lea.vmem %s4586_s1, %s3734_s16 }
  0x56   : > { %s491_s5 = scalar_lea.vmem %s4587_s21, %s3734_s16 }
  0x58   : > { %v498_v0 = vld [vmem:[%s474_s17] sm:$0xff] }
  0x59   : > { %v500_v1 = vld [vmem:[%s478_s19] sm:$0xff]  ;;  %499 = vst [vmem:[#allocation2] sm:$0xff] %v498_v0 }
  0x5a   : > { %501 = vst [vmem:[#allocation3] sm:$0xff] %v500_v1 }
  0x5b PF: > { %v3111_v2 = vld [vmem:[%s3722_s20 + $0xe4] ss:$16 sps:$4 sm:$0xff]   ;;  %v3113_v3 = vld [vmem:[%s3722_s20 + $0xec] ss:$16 sps:$4 sm:$0xff]   ;;  %v3115_v4 = vld [vmem:[%s3722_s20 + $0xe0] ss:$16 sps:$4 sm:$0xff]  }
  0x5c   : > { %956 = vmatprep.subr.bf16.mxu0 %v3111_v2  ;;  %v3116_v5 = vld [vmem:[%s3722_s20 + $0xe8] ss:$16 sps:$4 sm:$0xff]   ;;  %1029 = vmatprep.subr.bf16.mxu1 %v3113_v3  ;;  %v3117_v6 = vld [vmem:[%s3722_s20 + $0xc4] ss:$16 sps:$4 sm:$0xff]   ;;  %v3119_v7 = vld [vmem:[%s3722_s20 + $0xcc] ss:$16 sps:$4 sm:$0xff]  }
  0x5d   : > { %957 = vmatpush1.bf16.msra.mxu0 %v3115_v4  ;;  %1030 = vmatpush1.bf16.msra.mxu1 %v3116_v5  ;;  %v3121_v8 = vld [vmem:[%s3722_s20 + $0xc0] ss:$16 sps:$4 sm:$0xff]   ;;  %v3122_v9 = vld [vmem:[%s3722_s20 + $0xc8] ss:$16 sps:$4 sm:$0xff]   ;;  %v3123_v10 = vld [vmem:[%s3722_s20 + $0xa4] ss:$16 sps:$4 sm:$0xff]  }
  0x5e   : > { %958 = vmatprep.subr.bf16.mxu0 %v3117_v6  ;;  %1031 = vmatprep.subr.bf16.mxu1 %v3119_v7  ;;  %v3125_v11 = vld [vmem:[%s3722_s20 + $0xac] ss:$16 sps:$4 sm:$0xff]   ;;  %v3127_v12 = vld [vmem:[%s3722_s20 + $0xa0] ss:$16 sps:$4 sm:$0xff]   ;;  %v3128_v13 = vld [vmem:[%s3722_s20 + $0xa8] ss:$16 sps:$4 sm:$0xff]  }
  0x5f   : > { %v3129_v14 = vld [vmem:[%s3722_s20 + $0x84] ss:$16 sps:$4 sm:$0xff]   ;;  %v3131_v15 = vld [vmem:[%s3722_s20 + $0x8c] ss:$16 sps:$4 sm:$0xff]   ;;  %v3133_v16 = vld [vmem:[%s3722_s20 + $0x80] ss:$16 sps:$4 sm:$0xff]  }
  0x60   : > { %v3134_v17 = vld [vmem:[%s3722_s20 + $0x88] ss:$16 sps:$4 sm:$0xff]   ;;  %v3135_v18 = vld [vmem:[%s3722_s20 + $0x64] ss:$16 sps:$4 sm:$0xff]   ;;  %v3137_v19 = vld [vmem:[%s3722_s20 + $0x6c] ss:$16 sps:$4 sm:$0xff]  }
  0x61   : > { %959 = vmatpush1.bf16.msra.mxu0 %v3121_v8  ;;  %1032 = vmatpush1.bf16.msra.mxu1 %v3122_v9  ;;  %v3139_v20 = vld [vmem:[%s3722_s20 + $0x60] ss:$16 sps:$4 sm:$0xff]   ;;  %v3140_v21 = vld [vmem:[%s3722_s20 + $0x68] ss:$16 sps:$4 sm:$0xff]   ;;  %v3141_v22 = vld [vmem:[%s3722_s20 + $0x44] ss:$16 sps:$4 sm:$0xff]  }
  0x62   : > { %960 = vmatprep.subr.bf16.mxu0 %v3123_v10  ;;  %1033 = vmatprep.subr.bf16.mxu1 %v3125_v11  ;;  %v3143_v23 = vld [vmem:[%s3722_s20 + $0x4c] ss:$16 sps:$4 sm:$0xff]   ;;  %v3145_v24 = vld [vmem:[%s3722_s20 + $0x40] ss:$16 sps:$4 sm:$0xff]   ;;  %v3146_v25 = vld [vmem:[%s3722_s20 + $0x48] ss:$16 sps:$4 sm:$0xff]  }
  0x63   : > { %v3147_v26 = vld [vmem:[%s3722_s20 + $0x24] ss:$16 sps:$4 sm:$0xff]   ;;  %v3149_v27 = vld [vmem:[%s3722_s20 + $0x2c] ss:$16 sps:$4 sm:$0xff]   ;;  %v3151_v28 = vld [vmem:[%s3722_s20 + $0x20] ss:$16 sps:$4 sm:$0xff]  }
  0x64   : > { %v3152_v29 = vld [vmem:[%s3722_s20 + $0x28] ss:$16 sps:$4 sm:$0xff]   ;;  %v3153_v30 = vld [vmem:[%s3722_s20 + $0x4] ss:$16 sps:$4 sm:$0xff]   ;;  %v3155_v31 = vld [vmem:[%s3722_s20 + $0xc] ss:$16 sps:$4 sm:$0xff]  }
  0x65   : > { %961 = vmatpush1.bf16.msra.mxu0 %v3127_v12  ;;  %1034 = vmatpush1.bf16.msra.mxu1 %v3128_v13  ;;  %v3157_v32 = vld [vmem:[%s3722_s20] ss:$16 sps:$4 sm:$0xff]   ;;  %v3158_v33 = vld [vmem:[%s3722_s20 + $0x8] ss:$16 sps:$4 sm:$0xff]   ;;  %v3159_v34 = vld [vmem:[%s3722_s20 + $0x1e4] ss:$16 sps:$4 sm:$0xff]  }
  0x66   : > { %962 = vmatprep.subr.bf16.mxu0 %v3129_v14  ;;  %1035 = vmatprep.subr.bf16.mxu1 %v3131_v15  ;;  %v3161_v35 = vld [vmem:[%s3722_s20 + $0x1ec] ss:$16 sps:$4 sm:$0xff]   ;;  %v3163_v36 = vld [vmem:[%s3722_s20 + $0x1e0] ss:$16 sps:$4 sm:$0xff]   ;;  %v3164_v37 = vld [vmem:[%s3722_s20 + $0x1e8] ss:$16 sps:$4 sm:$0xff]  }
  0x67   : > { %v3165_v38 = vld [vmem:[%s3722_s20 + $0x1c4] ss:$16 sps:$4 sm:$0xff]   ;;  %v3167_v39 = vld [vmem:[%s3722_s20 + $0x1cc] ss:$16 sps:$4 sm:$0xff]   ;;  %v3169_v40 = vld [vmem:[%s3722_s20 + $0x1c0] ss:$16 sps:$4 sm:$0xff]  }
  0x68   : > { %v3170_v41 = vld [vmem:[%s3722_s20 + $0x1c8] ss:$16 sps:$4 sm:$0xff]   ;;  %v3171_v42 = vld [vmem:[%s3722_s20 + $0x1a4] ss:$16 sps:$4 sm:$0xff]   ;;  %v3173_v43 = vld [vmem:[%s3722_s20 + $0x1ac] ss:$16 sps:$4 sm:$0xff]  }
  0x69   : > { %963 = vmatpush1.bf16.msra.mxu0 %v3133_v16  ;;  %1036 = vmatpush1.bf16.msra.mxu1 %v3134_v17  ;;  %v3175_v44 = vld [vmem:[%s3722_s20 + $0x1a0] ss:$16 sps:$4 sm:$0xff]   ;;  %v3176_v45 = vld [vmem:[%s3722_s20 + $0x1a8] ss:$16 sps:$4 sm:$0xff]   ;;  %v3177_v46 = vld [vmem:[%s3722_s20 + $0x184] ss:$16 sps:$4 sm:$0xff]  }
  0x6a   : > { %964 = vmatprep.subr.bf16.mxu0 %v3135_v18  ;;  %1037 = vmatprep.subr.bf16.mxu1 %v3137_v19  ;;  %v3179_v47 = vld [vmem:[%s3722_s20 + $0x18c] ss:$16 sps:$4 sm:$0xff]   ;;  %v3181_v48 = vld [vmem:[%s3722_s20 + $0x180] ss:$16 sps:$4 sm:$0xff]   ;;  %v3182_v49 = vld [vmem:[%s3722_s20 + $0x188] ss:$16 sps:$4 sm:$0xff]  }
  0x6b   : > { %v3209_v50 = vld [vmem:[%s3727_s3 + $0x4] ss:$8 sps:$4 sm:$0xff]   ;;  %v3187_v53 = vld [vmem:[%s3722_s20 + $0x160] ss:$16 sps:$4 sm:$0xff]   ;;  %v3188_v54 = vld [vmem:[%s3722_s20 + $0x168] ss:$16 sps:$4 sm:$0xff]  }
  0x6c   : > { %v3183_v51 = vld [vmem:[%s3722_s20 + $0x164] ss:$16 sps:$4 sm:$0xff]   ;;  %v3185_v52 = vld [vmem:[%s3722_s20 + $0x16c] ss:$16 sps:$4 sm:$0xff]   ;;  %988 = vmatprep.mubr.bf16.mxu0 %v3209_v50  ;;  %1061 = vmatprep.mubr.bf16.mxu1 %v3209_v50  ;;  %v3193_v57 = vld [vmem:[%s3722_s20 + $0x140] ss:$16 sps:$4 sm:$0xff]  }
  0x6d   : > { %965 = vmatpush1.bf16.msra.mxu0 %v3139_v20  ;;  %1038 = vmatpush1.bf16.msra.mxu1 %v3140_v21  ;;  %v3189_v55 = vld [vmem:[%s3722_s20 + $0x144] ss:$16 sps:$4 sm:$0xff]   ;;  %v3191_v56 = vld [vmem:[%s3722_s20 + $0x14c] ss:$16 sps:$4 sm:$0xff]   ;;  %v3194_v58 = vld [vmem:[%s3722_s20 + $0x148] ss:$16 sps:$4 sm:$0xff]  }
  0x6e   : > { %966 = vmatprep.subr.bf16.mxu0 %v3141_v22  ;;  %1039 = vmatprep.subr.bf16.mxu1 %v3143_v23  ;;  %v3195_v59 = vld [vmem:[%s3722_s20 + $0x124] ss:$16 sps:$4 sm:$0xff]   ;;  %v3197_v60 = vld [vmem:[%s3722_s20 + $0x12c] ss:$16 sps:$4 sm:$0xff]   ;;  %v3199_v61 = vld [vmem:[%s3722_s20 + $0x120] ss:$16 sps:$4 sm:$0xff]  }
  0x6f   : > { %v3200_v62 = vld [vmem:[%s3722_s20 + $0x128] ss:$16 sps:$4 sm:$0xff]   ;;  %v3201_v63 = vld [vmem:[%s3722_s20 + $0x104] ss:$16 sps:$4 sm:$0xff]   ;;  %v3203_v0 = vld [vmem:[%s3722_s20 + $0x10c] ss:$16 sps:$4 sm:$0xff]  }
  0x70   : > { %v3205_v1 = vld [vmem:[%s3722_s20 + $0x100] ss:$16 sps:$4 sm:$0xff]   ;;  %v3206_v2 = vld [vmem:[%s3722_s20 + $0x108] ss:$16 sps:$4 sm:$0xff]   ;;  %v3821_v3 = vld [vmem:[%s3699_s18 + $0xe4] ss:$16 sps:$4 sm:$0xff]  }
  0x71   : > { %967 = vmatpush1.bf16.msra.mxu0 %v3145_v24  ;;  %1040 = vmatpush1.bf16.msra.mxu1 %v3146_v25  ;;  %v3824_v4 = vld [vmem:[%s3699_s18 + $0xec] ss:$16 sps:$4 sm:$0xff]   ;;  %v3207_v5 = vld [vmem:[%s3727_s3] ss:$8 sps:$4 sm:$0xff]   ;;  %v3833_v8 = vld [vmem:[%s3699_s18 + $0xc4] ss:$16 sps:$4 sm:$0xff]  }
  0x72   : > { %968 = vmatprep.subr.bf16.mxu0 %v3147_v26  ;;  %1041 = vmatprep.subr.bf16.mxu1 %v3149_v27  ;;  %v3828_v6 = vld [vmem:[%s3699_s18 + $0xe0] ss:$16 sps:$4 sm:$0xff]   ;;  %v3218_v7 = vld [vmem:[%s3727_s3 + $0x14] ss:$8 sps:$4 sm:$0xff]   ;;  %v3837_v9 = vld [vmem:[%s3699_s18 + $0xe8] ss:$16 sps:$4 sm:$0xff]  }
  0x73   : > { %v3840_v10 = vld [vmem:[%s3699_s18 + $0xcc] ss:$16 sps:$4 sm:$0xff]   ;;  %v3844_v11 = vld [vmem:[%s3699_s18 + $0xc0] ss:$16 sps:$4 sm:$0xff]   ;;  %v3848_v12 = vld [vmem:[%s3699_s18 + $0xa4] ss:$16 sps:$4 sm:$0xff]  }
  0x74   : > { %v3852_v13 = vld [vmem:[%s3699_s18 + $0xc8] ss:$16 sps:$4 sm:$0xff]   ;;  %v3858_v15 = vld [vmem:[%s3699_s18 + $0xa0] ss:$16 sps:$4 sm:$0xff]   ;;  %v3861_v16 = vld [vmem:[%s3699_s18 + $0xac] ss:$16 sps:$4 sm:$0xff]  }
  0x75   : > { %969 = vmatpush1.bf16.msra.mxu0 %v3151_v28  ;;  %1042 = vmatpush1.bf16.msra.mxu1 %v3152_v29  ;;  %v3221_v14 = vld [vmem:[%s3727_s3 + $0x10] ss:$8 sps:$4 sm:$0xff]   ;;  %v3865_v17 = vld [vmem:[%s3699_s18 + $0x84] ss:$16 sps:$4 sm:$0xff]   ;;  %v3873_v20 = vld [vmem:[%s3699_s18 + $0x8c] ss:$16 sps:$4 sm:$0xff]  }
  0x76   : > { %970 = vmatprep.subr.bf16.mxu0 %v3153_v30  ;;  %1043 = vmatprep.subr.bf16.mxu1 %v3155_v31  ;;  %v3233_v18 = vld [vmem:[%s3727_s3 + $0x24] ss:$8 sps:$4 sm:$0xff]   ;;  %v3870_v19 = vld [vmem:[%s3699_s18 + $0xa8] ss:$16 sps:$4 sm:$0xff]   ;;  %v3877_v21 = vld [vmem:[%s3699_s18 + $0x80] ss:$16 sps:$4 sm:$0xff]  }
  0x77   : > { %v3882_v22 = vld [vmem:[%s3699_s18 + $0x64] ss:$16 sps:$4 sm:$0xff]   ;;  %v3886_v23 = vld [vmem:[%s3699_s18 + $0x88] ss:$16 sps:$4 sm:$0xff]   ;;  %v3892_v25 = vld [vmem:[%s3699_s18 + $0x60] ss:$16 sps:$4 sm:$0xff]  }
  0x78   : > { %v3236_v24 = vld [vmem:[%s3727_s3 + $0x20] ss:$8 sps:$4 sm:$0xff]   ;;  %v3895_v26 = vld [vmem:[%s3699_s18 + $0x6c] ss:$16 sps:$4 sm:$0xff]   ;;  %v3899_v27 = vld [vmem:[%s3699_s18 + $0x44] ss:$16 sps:$4 sm:$0xff]  }
  0x79   : > { %971 = vmatpush1.bf16.msra.mxu0 %v3157_v32  ;;  %1044 = vmatpush1.bf16.msra.mxu1 %v3158_v33  ;;  %v3248_v28 = vld [vmem:[%s3727_s3 + $0x34] ss:$8 sps:$4 sm:$0xff]   ;;  %v3904_v29 = vld [vmem:[%s3699_s18 + $0x68] ss:$16 sps:$4 sm:$0xff]   ;;  %v3911_v31 = vld [vmem:[%s3699_s18 + $0x40] ss:$16 sps:$4 sm:$0xff]  }
  0x7a   : > { %972 = vmatprep.subr.bf16.mxu0 %v3159_v34  ;;  %1045 = vmatprep.subr.bf16.mxu1 %v3161_v35  ;;  %v3907_v30 = vld [vmem:[%s3699_s18 + $0x4c] ss:$16 sps:$4 sm:$0xff]   ;;  %v3916_v32 = vld [vmem:[%s3699_s18 + $0x24] ss:$16 sps:$4 sm:$0xff]   ;;  %v3920_v33 = vld [vmem:[%s3699_s18 + $0x48] ss:$16 sps:$4 sm:$0xff]  }
  0x7b   : > { %v3251_v34 = vld [vmem:[%s3727_s3 + $0x30] ss:$8 sps:$4 sm:$0xff]   ;;  %s4030_s0 = scalar_select %p493_p1, 7, 0 }
  0x7c   : > { %v3926_v35 = vld [vmem:[%s3699_s18 + $0x20] ss:$16 sps:$4 sm:$0xff]   ;;  %s4093_s23 = scalar_select %p493_p1, 6, 1 }
  0x7d   : > { %973 = vmatpush2.bf16.msra.mxu0 %v3163_v36  ;;  %1046 = vmatpush2.bf16.msra.mxu1 %v3164_v37  ;;  %v3929_v36 = vld [vmem:[%s3699_s18 + $0x2c] ss:$16 sps:$4 sm:$0xff]   ;;  %v3933_v37 = vld [vmem:[%s3699_s18 + $0x4] ss:$16 sps:$4 sm:$0xff]   ;;  %s2881_s1 = sshll.u32 %s4030_s0, 3  ;;  %s1455_s29 = sadd.s32 %s3714_s7, %s4030_s0 }
  0x7e   : > { %974 = vmatprep.subr.bf16.mxu0 %v3165_v38  ;;  %1047 = vmatprep.subr.bf16.mxu1 %v3167_v39  ;;  %v3937_v38 = vld [vmem:[%s3699_s18 + $0x28] ss:$16 sps:$4 sm:$0xff]   ;;  %v3940_v39 = vld [vmem:[%s3699_s18 + $0xc] ss:$16 sps:$4 sm:$0xff]   ;;  %p1456_p3 = scmp.lt.s32.totalorder %s1455_s29, 20  ;;  %s1464_s3 = scalar_lea.vmem [#allocation5], %s2881_s1 }
  0x7f   : > { %s2920_s17 = sshll.u32 %s4093_s23, 3  ;;  %s1590_s19 = sadd.s32 %s3714_s7, %s4093_s23 }
  0x80   : > { %s1457_s20 = scalar_select %p1456_p3, 1, 0 }
  0x81   : > { %975 = vmatpush2.bf16.msra.mxu0 %v3169_v40  ;;  %1048 = vmatpush2.bf16.msra.mxu1 %v3170_v41  ;;  %v3944_v40 = vld [vmem:[%s3699_s18] ss:$16 sps:$4 sm:$0xff]   ;;  %s1470_s27 = sshra.s32 %s2920_s17, 3  ;;  %p1591_p4 = scmp.lt.s32.totalorder %s1590_s19, 20 }
  0x82   : > { %976 = vmatprep.subr.bf16.mxu0 %v3171_v42  ;;  %1049 = vmatprep.subr.bf16.mxu1 %v3173_v43  ;;  %v3947_v41 = vld [vmem:[#allocation2] sm:$0xff]  ;;  %v3542_v42 = vmov 0   ;;  %v3953_v43 = vld [vmem:[%s3699_s18 + $0x8] ss:$16 sps:$4 sm:$0xff]   ;;  %s2982_s26 = sshll.u32 %s1470_s27, 5  ;;  %s1599_s12 = scalar_lea.vmem [#allocation5], %s2920_s17 }
  0x83   : > { %s1474_s22 = scalar_lea.vmem [#allocation4], %s2982_s26  ;;  %p2970_p13 = scmp.ne.s32.totalorder %s3521_s10, 2 }
  0x84   : > { %s1592_s24 = scalar_select %p1591_p4, 1, 0 }
  0x85   : > { %977 = vmatpush2.bf16.msra.mxu0 %v3175_v44  ;;  %1050 = vmatpush2.bf16.msra.mxu1 %v3176_v45  ;;  %v1183_v44 = vpack.c.bf16 %v3947_v41, %v3947_v41  ;;  %v576_v45 = vlaneseq  ;;  %s4148_s15 = scalar_select %p493_p1, 5, 2 }
  0x86   : > { %978 = vmatprep.subr.bf16.mxu0 %v3177_v46  ;;  %1051 = vmatprep.subr.bf16.mxu1 %v3179_v47 }
  0x87   : > { %v577_v46 = vshrl.u32 %v576_v45, 7  ;;  %s2926_s21 = sshll.u32 %s4148_s15, 3 }
  0x88   : > { %s1605_s0 = sshra.s32 %s2926_s21, 3  ;;  %s1734_s29 = scalar_lea.vmem [#allocation5], %s2926_s21 }
  0x89   : > { %979 = vmatpush2.bf16.msra.mxu0 %v3181_v48  ;;  %1052 = vmatpush2.bf16.msra.mxu1 %v3182_v49  ;;  %v578_v47 = vsub.s32 0, %v577_v46  ;;  %v586_v48 = vsub.s32 2, %v577_v46  ;;  %v574_v49 = vld [vmem:[%s3732_s2] sm:$0xf]  ;;  %v582_v50 = vsub.s32 1, %v577_v46  ;;  %s1174_s2 = sshra.s32 %s2881_s1, 3 }
  0x8a   : > { %980 = vmatprep.subr.bf16.mxu0 %v3183_v51  ;;  %1053 = vmatprep.subr.bf16.mxu1 %v3185_v52  ;;  %v590_v51 = vsub.s32 3, %v577_v46  ;;  %s2981_s9 = sshll.u32 %s1174_s2, 5  ;;  %s2983_s1 = sshll.u32 %s1605_s0, 5 }
  0x8b   : > { %v3998_v52 = vrot.slane %v574_v49, %v578_v47  ;;  %s1178_s13 = scalar_lea.vmem [#allocation4], %s2981_s9  ;;  %s1609_s2 = scalar_lea.vmem [#allocation4], %s2983_s1 }
  0x8c   : > { %s1725_s9 = sadd.s32 %s3714_s7, %s4148_s15 }
  0x8d   : > { %981 = vmatpush2.bf16.msra.mxu0 %v3187_v53  ;;  %1054 = vmatpush2.bf16.msra.mxu1 %v3188_v54  ;;  %v4000_v53 = vrot.slane %v574_v49, %v586_v48  ;;  %v4002_v54 = vrot.slane %v574_v49, %v582_v50  ;;  %p1726_p5 = scmp.lt.s32.totalorder %s1725_s9, 20 }
  0x8e   : > { %982 = vmatprep.subr.bf16.mxu0 %v3189_v55  ;;  %1055 = vmatprep.subr.bf16.mxu1 %v3191_v56  ;;  %v4004_v55 = vrot.slane %v574_v49, %v590_v51  ;;  %s4409_s9 = scalar_select %p493_p1, 2, 5 }
  0x91   : > { %983 = vmatpush2.bf16.msra.mxu0 %v3193_v57  ;;  %1056 = vmatpush2.bf16.msra.mxu1 %v3194_v58 }
  0x92   : > { %984 = vmatprep.subr.bf16.mxu0 %v3195_v59  ;;  %1057 = vmatprep.subr.bf16.mxu1 %v3197_v60 }
  0x95   : > { %985 = vmatpush2.bf16.msra.mxu0 %v3199_v61  ;;  %1058 = vmatpush2.bf16.msra.mxu1 %v3200_v62 }
  0x96   : > { %986 = vmatprep.subr.bf16.mxu0 %v3201_v63  ;;  %1059 = vmatprep.subr.bf16.mxu1 %v3203_v0 }
  0x99   : > { %987 = vmatpush2.bf16.msra.mxu0 %v3205_v1  ;;  %1060 = vmatpush2.bf16.msra.mxu1 %v3206_v2 }
  0x9a   : > { %1344 = vmatprep.subr.bf16.mxu0 %v3821_v3  ;;  %1385 = vmatprep.subr.bf16.mxu1 %v3824_v4 }
  0x9c   : > { %989 = vmatmul.mubr.bf16.vlgmr.msra.gmra.mxu0 %v3207_v5  ;;  %1062 = vmatmul.mubr.bf16.vlgmr.msra.gmra.mxu1 %v3207_v5 }
  0x9d   : > { %1345 = vmatpush1.bf16.msra.mxu0 %v3828_v6  ;;  %998 = vmatprep.mubr.bf16.mxu0 %v3218_v7 }
  0x9e   : > { %1346 = vmatprep.subr.bf16.mxu0 %v3833_v8  ;;  %1071 = vmatprep.mubr.bf16.mxu1 %v3218_v7 }
  0x9f   : > { %1386 = vmatpush1.bf16.msra.mxu1 %v3837_v9 }
  0xa0   : > { %1387 = vmatprep.subr.bf16.mxu1 %v3840_v10 }
  0xa1   : > { %1347 = vmatpush1.bf16.msra.mxu0 %v3844_v11 }
  0xa2   : > { %1348 = vmatprep.subr.bf16.mxu0 %v3848_v12 }
  0xa3   : > { %1388 = vmatpush1.bf16.msra.mxu1 %v3852_v13 }
  0xa4   : > { %999 = vmatmul.mubr.bf16.gmra.mxu0 %v3221_v14  ;;  %1072 = vmatmul.mubr.bf16.gmra.mxu1 %v3221_v14 }
  0xa5   : > { %1349 = vmatpush1.bf16.msra.mxu0 %v3858_v15  ;;  %1389 = vmatprep.subr.bf16.mxu1 %v3861_v16 }
  0xa6   : > { %1350 = vmatprep.subr.bf16.mxu0 %v3865_v17  ;;  %1008 = vmatprep.mubr.bf16.mxu0 %v3233_v18 }
  0xa7   : > { %1081 = vmatprep.mubr.bf16.mxu1 %v3233_v18  ;;  %1390 = vmatpush1.bf16.msra.mxu1 %v3870_v19 }
  0xa8   : > { %1391 = vmatprep.subr.bf16.mxu1 %v3873_v20 }
  0xa9   : > { %1351 = vmatpush1.bf16.msra.mxu0 %v3877_v21 }
  0xaa   : > { %1352 = vmatprep.subr.bf16.mxu0 %v3882_v22 }
  0xab   : > { %1392 = vmatpush1.bf16.msra.mxu1 %v3886_v23 }
  0xac   : > { %1009 = vmatmul.mubr.bf16.gmra.mxu0 %v3236_v24  ;;  %1082 = vmatmul.mubr.bf16.gmra.mxu1 %v3236_v24 }
  0xad   : > { %1353 = vmatpush1.bf16.msra.mxu0 %v3892_v25  ;;  %1393 = vmatprep.subr.bf16.mxu1 %v3895_v26 }
  0xae   : > { %1354 = vmatprep.subr.bf16.mxu0 %v3899_v27  ;;  %1018 = vmatprep.mubr.bf16.mxu0 %v3248_v28 }
  0xaf   : > { %1091 = vmatprep.mubr.bf16.mxu1 %v3248_v28  ;;  %1394 = vmatpush1.bf16.msra.mxu1 %v3904_v29 }
  0xb0   : > { %1395 = vmatprep.subr.bf16.mxu1 %v3907_v30 }
  0xb1   : > { %1355 = vmatpush1.bf16.msra.mxu0 %v3911_v31 }
  0xb2   : > { %1356 = vmatprep.subr.bf16.mxu0 %v3916_v32 }
  0xb3   : > { %1396 = vmatpush1.bf16.msra.mxu1 %v3920_v33 }
  0xb4   : > { %1019 = vmatmul.mubr.bf16.gmra.mxu0 %v3251_v34  ;;  %1092 = vmatmul.mubr.bf16.gmra.mxu1 %v3251_v34 }
  0xb5   : > { %1357 = vmatpush1.bf16.msra.mxu0 %v3926_v35  ;;  %1397 = vmatprep.subr.bf16.mxu1 %v3929_v36 }
  0xb6   : > { %1358 = vmatprep.subr.bf16.mxu0 %v3933_v37  ;;  %1376 = vmatprep.mubr.bf16.mxu0 %v3542_v42 }
  0xb7   : > { %1398 = vmatpush1.bf16.msra.mxu1 %v3937_v38  ;;  %1417 = vmatprep.mubr.bf16.mxu1 %v3542_v42 }
  0xb8   : > { %1399 = vmatprep.subr.bf16.mxu1 %v3940_v39 }
  0xb9   : > { %1359 = vmatpush1.bf16.msra.mxu0 %v3944_v40 }
  0xba   : > { %1480 = vmatprep.subr.bf16.mxu0 %v3821_v3 }
  0xbb   : > { %1400 = vmatpush1.bf16.msra.mxu1 %v3953_v43 }
  0xbc   : > { %1377 = vmatmul.mubr.bf16.vlgmr.msra.gmra.mxu0 %v1183_v44  ;;  %1521 = vmatprep.subr.bf16.mxu1 %v3824_v4 }
  0xbd   : > { %1481 = vmatpush1.bf16.msra.mxu0 %v3828_v6  ;;  %1512 = vmatprep.mubr.bf16.mxu0 %v3542_v42 }
  0xbe   : > { %1418 = vmatmul.mubr.bf16.vlgmr.msra.gmra.mxu1 %v1183_v44  ;;  %1482 = vmatprep.subr.bf16.mxu0 %v3833_v8 }
  0xbf   : > { %1522 = vmatpush1.bf16.msra.mxu1 %v3837_v9  ;;  %1553 = vmatprep.mubr.bf16.mxu1 %v3542_v42 }
  0xc0   : > { %1523 = vmatprep.subr.bf16.mxu1 %v3840_v10 }
  0xc1   : > { %1483 = vmatpush1.bf16.msra.mxu0 %v3844_v11 }
  0xc2   : > { %1484 = vmatprep.subr.bf16.mxu0 %v3848_v12 }
  0xc3   : > { %1524 = vmatpush1.bf16.msra.mxu1 %v3852_v13 }
  0xc4   : > { %1525 = vmatprep.subr.bf16.mxu1 %v3861_v16 }
  0xc5   : > { %1485 = vmatpush1.bf16.msra.mxu0 %v3858_v15 }
  0xc6   : > { %1486 = vmatprep.subr.bf16.mxu0 %v3865_v17 }
  0xc7   : > { %1526 = vmatpush1.bf16.msra.mxu1 %v3870_v19 }
  0xc8   : > { %1527 = vmatprep.subr.bf16.mxu1 %v3873_v20 }
  0xc9   : > { %1487 = vmatpush1.bf16.msra.mxu0 %v3877_v21 }
  0xca   : > { %1488 = vmatprep.subr.bf16.mxu0 %v3882_v22 }
  0xcb   : > { %1528 = vmatpush1.bf16.msra.mxu1 %v3886_v23 }
  0xcc   : > { %1529 = vmatprep.subr.bf16.mxu1 %v3895_v26 }
  0xcd   : > { %1489 = vmatpush1.bf16.msra.mxu0 %v3892_v25 }
  0xce   : > { %1490 = vmatprep.subr.bf16.mxu0 %v3899_v27 }
  0xcf   : > { %1530 = vmatpush1.bf16.msra.mxu1 %v3904_v29 }
  0xd0   : > { %1531 = vmatprep.subr.bf16.mxu1 %v3907_v30 }
  0xd1   : > { %1491 = vmatpush1.bf16.msra.mxu0 %v3911_v31 }
  0xd2   : > { %1492 = vmatprep.subr.bf16.mxu0 %v3916_v32 }
  0xd3   : > { %1532 = vmatpush1.bf16.msra.mxu1 %v3920_v33 }
  0xd4   : > { %1533 = vmatprep.subr.bf16.mxu1 %v3929_v36 }
  0xd5   : > { %1493 = vmatpush1.bf16.msra.mxu0 %v3926_v35 }
  0xd6   : > { %1494 = vmatprep.subr.bf16.mxu0 %v3933_v37 }
  0xd7   : > { %1534 = vmatpush1.bf16.msra.mxu1 %v3937_v38 }
  0xd8   : > { %1535 = vmatprep.subr.bf16.mxu1 %v3940_v39 }
  0xd9   : > { %1495 = vmatpush1.bf16.msra.mxu0 %v3944_v40 }
  0xda   : > { %1615 = vmatprep.subr.bf16.mxu0 %v3821_v3 }
  0xdb   : > { %1536 = vmatpush1.bf16.msra.mxu1 %v3953_v43 }
  0xdc   : > { %1656 = vmatprep.subr.bf16.mxu1 %v3824_v4 }
 0x15c   : > { %v990_v56 = vpop.f32.mrf.mxu0  ;;  %v1063_v57 = vpop.f32.mrf.mxu1 }
 0x15d   : > { %v991_v58 = vadd.f32 %v990_v56, %v3998_v52  ;;  %v1064_v59 = vadd.f32 %v1063_v57, %v4000_v53 }
 0x15e   : > { %v992_v60 = vpop.f32.mrf.mxu0  ;;  %v1065_v61 = vpop.f32.mrf.mxu1 }
 0x15f   : > { %1102 = vst [vmem:[#allocation4] sm:$0xff] %v991_v58  ;;  %1104 = vst [vmem:[#allocation4 + $0x10] sm:$0xff] %v1064_v59  ;;  %v993_v62 = vadd.f32 %v992_v60, %v4002_v54  ;;  %v1066_v63 = vadd.f32 %v1065_v61, %v4004_v55 }
 0x160   : > { %v994_v0 = vpop.f32.mrf.mxu0  ;;  %v1067_v1 = vpop.f32.mrf.mxu1 }
 0x161   : > { %1103 = vst [vmem:[#allocation4 + $0x8] sm:$0xff] %v993_v62  ;;  %1105 = vst [vmem:[#allocation4 + $0x18] sm:$0xff] %v1066_v63  ;;  %v995_v2 = vadd.f32 %v994_v0, %v3998_v52  ;;  %v1068_v5 = vadd.f32 %v1067_v1, %v4000_v53 }
 0x162   : > { %v996_v7 = vpop.f32.mrf.mxu0  ;;  %v1069_v14 = vpop.f32.mrf.mxu1 }
 0x163   : > { %1106 = vst [vmem:[#allocation4 + $0x20] sm:$0xff] %v995_v2  ;;  %1108 = vst [vmem:[#allocation4 + $0x30] sm:$0xff] %v1068_v5  ;;  %v997_v18 = vadd.f32 %v996_v7, %v4002_v54  ;;  %v1070_v24 = vadd.f32 %v1069_v14, %v4004_v55 }
 0x164   : > { %v1000_v28 = vpop.f32.mrf.mxu0  ;;  %v1073_v34 = vpop.f32.mrf.mxu1 }
 0x165   : > { %1107 = vst [vmem:[#allocation4 + $0x28] sm:$0xff] %v997_v18  ;;  %1109 = vst [vmem:[#allocation4 + $0x38] sm:$0xff] %v1070_v24  ;;  %v1001_v44 = vadd.f32 %v1000_v28, %v3998_v52  ;;  %v1074_v45 = vadd.f32 %v1073_v34, %v4000_v53 }
 0x166   : > { %v1002_v46 = vpop.f32.mrf.mxu0  ;;  %v1075_v47 = vpop.f32.mrf.mxu1 }
 0x167   : > { %1110 = vst [vmem:[#allocation4 + $0x40] sm:$0xff] %v1001_v44  ;;  %1112 = vst [vmem:[#allocation4 + $0x50] sm:$0xff] %v1074_v45  ;;  %v1003_v48 = vadd.f32 %v1002_v46, %v4002_v54  ;;  %v1076_v49 = vadd.f32 %v1075_v47, %v4004_v55 }
 0x168   : > { %v1004_v50 = vpop.f32.mrf.mxu0  ;;  %v1077_v51 = vpop.f32.mrf.mxu1 }
 0x169   : > { %1111 = vst [vmem:[#allocation4 + $0x48] sm:$0xff] %v1003_v48  ;;  %1113 = vst [vmem:[#allocation4 + $0x58] sm:$0xff] %v1076_v49  ;;  %v1005_v56 = vadd.f32 %v1004_v50, %v3998_v52  ;;  %v1078_v57 = vadd.f32 %v1077_v51, %v4000_v53 }
 0x16a   : > { %v1006_v58 = vpop.f32.mrf.mxu0  ;;  %v1079_v59 = vpop.f32.mrf.mxu1 }
 0x16b   : > { %1114 = vst [vmem:[#allocation4 + $0x60] sm:$0xff] %v1005_v56  ;;  %1116 = vst [vmem:[#allocation4 + $0x70] sm:$0xff] %v1078_v57  ;;  %v1007_v60 = vadd.f32 %v1006_v58, %v4002_v54  ;;  %v1080_v61 = vadd.f32 %v1079_v59, %v4004_v55 }
 0x16c   : > { %v1010_v62 = vpop.f32.mrf.mxu0  ;;  %v1083_v63 = vpop.f32.mrf.mxu1 }
 0x16d   : > { %1115 = vst [vmem:[#allocation4 + $0x68] sm:$0xff] %v1007_v60  ;;  %1117 = vst [vmem:[#allocation4 + $0x78] sm:$0xff] %v1080_v61  ;;  %v1011_v0 = vadd.f32 %v1010_v62, %v3998_v52  ;;  %v1084_v1 = vadd.f32 %v1083_v63, %v4000_v53 }
 0x16e   : > { %v1012_v2 = vpop.f32.mrf.mxu0  ;;  %v1085_v5 = vpop.f32.mrf.mxu1 }
 0x16f   : > { %1118 = vst [vmem:[#allocation4 + $0x80] sm:$0xff] %v1011_v0  ;;  %1120 = vst [vmem:[#allocation4 + $0x90] sm:$0xff] %v1084_v1  ;;  %v1013_v7 = vadd.f32 %v1012_v2, %v4002_v54  ;;  %v1086_v14 = vadd.f32 %v1085_v5, %v4004_v55 }
 0x170   : > { %v1014_v18 = vpop.f32.mrf.mxu0  ;;  %v1087_v24 = vpop.f32.mrf.mxu1 }
 0x171   : > { %1119 = vst [vmem:[#allocation4 + $0x88] sm:$0xff] %v1013_v7  ;;  %1121 = vst [vmem:[#allocation4 + $0x98] sm:$0xff] %v1086_v14  ;;  %v1015_v28 = vadd.f32 %v1014_v18, %v3998_v52  ;;  %v1088_v34 = vadd.f32 %v1087_v24, %v4000_v53 }
 0x172   : > { %v1016_v44 = vpop.f32.mrf.mxu0  ;;  %v1089_v45 = vpop.f32.mrf.mxu1 }
 0x173   : > { %1122 = vst [vmem:[#allocation4 + $0xa0] sm:$0xff] %v1015_v28  ;;  %1124 = vst [vmem:[#allocation4 + $0xb0] sm:$0xff] %v1088_v34  ;;  %v1017_v46 = vadd.f32 %v1016_v44, %v4002_v54  ;;  %v1090_v47 = vadd.f32 %v1089_v45, %v4004_v55 }
 0x174   : > { %v1020_v48 = vpop.f32.mrf.mxu0  ;;  %v1093_v49 = vpop.f32.mrf.mxu1 }
 0x175   : > { %1123 = vst [vmem:[#allocation4 + $0xa8] sm:$0xff] %v1017_v46  ;;  %1125 = vst [vmem:[#allocation4 + $0xb8] sm:$0xff] %v1090_v47  ;;  %v1021_v50 = vadd.f32 %v1020_v48, %v3998_v52  ;;  %v1094_v51 = vadd.f32 %v1093_v49, %v4000_v53 }
 0x176   : > { %v1022_v56 = vpop.f32.mrf.mxu0  ;;  %v1095_v57 = vpop.f32.mrf.mxu1 }
 0x177   : > { %1126 = vst [vmem:[#allocation4 + $0xc0] sm:$0xff] %v1021_v50  ;;  %1128 = vst [vmem:[#allocation4 + $0xd0] sm:$0xff] %v1094_v51  ;;  %v1023_v58 = vadd.f32 %v1022_v56, %v4002_v54  ;;  %v1096_v59 = vadd.f32 %v1095_v57, %v4004_v55 }
 0x178   : > { %v1024_v60 = vpop.f32.mrf.mxu0  ;;  %v1097_v61 = vpop.f32.mrf.mxu1 }
 0x179   : > { %1127 = vst [vmem:[#allocation4 + $0xc8] sm:$0xff] %v1023_v58  ;;  %1129 = vst [vmem:[#allocation4 + $0xd8] sm:$0xff] %v1096_v59  ;;  %v1025_v62 = vadd.f32 %v1024_v60, %v3998_v52  ;;  %v1098_v63 = vadd.f32 %v1097_v61, %v4000_v53 }
 0x17a   : > { %v1026_v0 = vpop.f32.mrf.mxu0  ;;  %v1099_v1 = vpop.f32.mrf.mxu1 }
 0x17b   : > { %1130 = vst [vmem:[#allocation4 + $0xe0] sm:$0xff] %v1025_v62  ;;  %1132 = vst [vmem:[#allocation4 + $0xf0] sm:$0xff] %v1098_v63  ;;  %v1027_v2 = vadd.f32 %v1026_v0, %v4002_v54  ;;  %v1100_v5 = vadd.f32 %v1099_v1, %v4004_v55  ;;  %v1173_v63 = vld [vmem:[#allocation3] sm:$0xff]  ;;  %v1458_v1 = vstv %s1457_s20  ;;  %s4209_s20 = scalar_select %p493_p1, 4, 3 }
 0x17c   : > { %v1378_v7 = vpop.f32.mrf.mxu0  ;;  %vm1459_vm0 = vcmp.eq.s32.totalorder %v1458_v1, 1 }
 0x17d   : > { %1131 = vst [vmem:[#allocation4 + $0xe8] sm:$0xff] %v1027_v2  ;;  %1133 = vst [vmem:[#allocation4 + $0xf8] sm:$0xff] %v1100_v5  ;;  %s1860_s26 = sadd.s32 %s3714_s7, %s4209_s20 }
 0x17e   : > { %v1380_v14 = vpop.f32.mrf.mxu0  ;;  %v1419_v18 = vpop.f32.mrf.mxu1  ;;  %p1861_p8 = scmp.lt.s32.totalorder %s1860_s26, 20 }
 0x17f   : > { %s4464_s26 = scalar_select %p493_p1, 1, 6 }
 0x180   : > { %v1382_v24 = vpop.f32.mrf.mxu0  ;;  %v1421_v52 = vpop.f32.mrf.mxu1 }
 0x182   : > { %v1383_v28 = vpop.f32.mrf.mxu0  ;;  %v1423_v34 = vpop.f32.mrf.mxu1 }
 0x184   : > { %v1179_v53 = vld [vmem:[%s1178_s13] sm:$0xff]  ;;  %v1180_v45 = vld [vmem:[%s1178_s13 + $0x8] sm:$0xff]  ;;  %v1424_v46 = vpop.f32.mrf.mxu1  ;;  %v1182_v55 = vld [vmem:[%s1178_s13 + $0x18] sm:$0xff] }
 0x185   : > { %v1426_v44 = vadd.f32 %v1378_v7, %v1179_v53  ;;  %v1427_v48 = vadd.f32 %v1380_v14, %v1180_v45  ;;  %v1429_v49 = vadd.f32 %v1421_v52, %v1182_v55  ;;  %v1181_v50 = vld [vmem:[%s1178_s13 + $0x10] sm:$0xff]  ;;  %s1727_s13 = scalar_select %p1726_p5, 1, 0 }
 0x186   : > { %v1428_v57 = vadd.f32 %v1419_v18, %v1181_v50 }
 0x187   : > { %v2916_v47 = vmul.f32 -1.442695, %v1426_v44  ;;  %v2917_v54 = vmul.f32 -1.442695, %v1427_v48  ;;  %v2918_v51 = vmul.f32 -1.442695, %v1429_v49 }
 0x188   : > { %v1476_v48 = vld [vmem:[%s1474_s22 + $0x8] sm:$0xff] }
 0x189   : > { %3267 = vpow2.f32 %v2916_v47 }
 0x18a   : > { %3269 = vpow2.f32 %v2917_v54 }
 0x18b   : > { %3271 = vpow2.f32 %v2918_v51 }
 0x196   : > { %v3268_v56 = vpop.eup %3267 }
 0x197   : > { %v1433_v58 = vadd.f32 1.0, %v3268_v56  ;;  %v3270_v59 = vpop.eup %3269 }
 0x198   : > { %v1439_v60 = vadd.f32 1.0, %v3270_v59  ;;  %v3272_v61 = vpop.eup %3271 }
 0x199   : > { %3273 = vrcp.f32 %v1433_v58  ;;  %v1446_v5 = vadd.f32 1.0, %v3272_v61 }
 0x19a   : > { %3275 = vtanh.f32 %v1428_v57 }
 0x19b   : > { %3277 = vrcp.f32 %v1439_v60  ;;  %v1478_v60 = vld [vmem:[%s1474_s22 + $0x18] sm:$0xff] }
 0x19c   : > { %3279 = vrcp.f32 %v1446_v5 }
 0x1a6   : > { %v3274_v62 = vpop.eup %3273 }
 0x1a7   : > { %v3276_v0 = vpop.eup %3275 }
 0x1a8   : > { %v3278_v2 = vpop.eup %3277  ;;  %v1450_v14 = vmul.f32 %v3276_v0, %v3274_v62 }
 0x1a9   : > { %v1449_v7 = vmul.f32 %v3278_v2, %v1173_v63  ;;  %v3280_v52 = vpop.eup %3279 }
 0x1ab   : > { %v1451_v18 = vadd.f32 %v1450_v14, %v1449_v7 }
 0x1ad   : > { %3281 = vtanh.f32 %v1451_v18  ;;  %v4047_v24 = vsel %vm1459_vm0, %v1451_v18, %v1173_v63  ;;  %v1477_v63 = vld [vmem:[%s1474_s22 + $0x10] sm:$0xff] }
 0x1ba   : > { %v3282_v53 = vpop.eup %3281 }
 0x1bb   : > { %v1453_v28 = vmul.f32 %v3282_v53, %v3280_v52  ;;  %v1593_v53 = vstv %s1592_s24  ;;  %s4354_s24 = scalar_select %p493_p1, 3, 4 }
 0x1bc   : > { %vm1594_vm1 = vcmp.eq.s32.totalorder %v1593_v53, 1 }
 0x1bd   : > { %v4050_v34 = vsel %vm1459_vm0, %v1453_v28, %v3947_v41  ;;  %v1475_v41 = vld [vmem:[%s1474_s22] sm:$0xff]  ;;  %s1862_s22 = scalar_select %p1861_p8, 1, 0 }
 0x1be   : > { %1465 = vst [vmem:[%s1464_s3] sm:$0xff] %v4050_v34  ;;  %v1479_v44 = vpack.c.bf16 %v4050_v34, %v4050_v34  ;;  %s2932_s3 = sshll.u32 %s4209_s20, 3 }
 0x1bf   : > { %s1740_s23 = sshra.s32 %s2932_s3, 3  ;;  %s1869_s19 = scalar_lea.vmem [#allocation5], %s2932_s3 }
 0x1c0   : > { %1513 = vmatmul.mubr.bf16.vlgmr.msra.gmra.mxu0 %v1479_v44  ;;  %1554 = vmatmul.mubr.bf16.vlgmr.msra.gmra.mxu1 %v1479_v44  ;;  %s2984_s17 = sshll.u32 %s1740_s23, 5  ;;  %s2130_s23 = sadd.s32 %s3714_s7, %s4409_s9 }
 0x1c1   : > { %1616 = vmatpush1.bf16.msra.mxu0 %v3828_v6  ;;  %1657 = vmatpush1.bf16.msra.mxu1 %v3837_v9  ;;  %s1744_s27 = scalar_lea.vmem [#allocation4], %s2984_s17  ;;  %p2131_p10 = scmp.lt.s32.totalorder %s2130_s23, 20 }
 0x1c2   : > { %1617 = vmatprep.subr.bf16.mxu0 %v3833_v8  ;;  %1658 = vmatprep.subr.bf16.mxu1 %v3840_v10 }
 0x1c3   : > { %1647 = vmatprep.mubr.bf16.mxu0 %v3542_v42  ;;  %1688 = vmatprep.mubr.bf16.mxu1 %v3542_v42  ;;  %s2132_s17 = scalar_select %p2131_p10, 1, 0 }
 0x1c5   : > { %1618 = vmatpush1.bf16.msra.mxu0 %v3844_v11  ;;  %1659 = vmatpush1.bf16.msra.mxu1 %v3852_v13 }
 0x1c6   : > { %1619 = vmatprep.subr.bf16.mxu0 %v3848_v12  ;;  %1660 = vmatprep.subr.bf16.mxu1 %v3861_v16 }
 0x1c9   : > { %1620 = vmatpush1.bf16.msra.mxu0 %v3858_v15  ;;  %1661 = vmatpush1.bf16.msra.mxu1 %v3870_v19 }
 0x1ca   : > { %1621 = vmatprep.subr.bf16.mxu0 %v3865_v17  ;;  %1662 = vmatprep.subr.bf16.mxu1 %v3873_v20 }
 0x1cd   : > { %1622 = vmatpush1.bf16.msra.mxu0 %v3877_v21  ;;  %1663 = vmatpush1.bf16.msra.mxu1 %v3886_v23 }
 0x1ce   : > { %1623 = vmatprep.subr.bf16.mxu0 %v3882_v22  ;;  %1664 = vmatprep.subr.bf16.mxu1 %v3895_v26 }
 0x1d1   : > { %1624 = vmatpush1.bf16.msra.mxu0 %v3892_v25  ;;  %1665 = vmatpush1.bf16.msra.mxu1 %v3904_v29 }
 0x1d2   : > { %1625 = vmatprep.subr.bf16.mxu0 %v3899_v27  ;;  %1666 = vmatprep.subr.bf16.mxu1 %v3907_v30 }
 0x1d5   : > { %1626 = vmatpush1.bf16.msra.mxu0 %v3911_v31  ;;  %1667 = vmatpush1.bf16.msra.mxu1 %v3920_v33 }
 0x1d6   : > { %1627 = vmatprep.subr.bf16.mxu0 %v3916_v32  ;;  %1668 = vmatprep.subr.bf16.mxu1 %v3929_v36 }
 0x1d9   : > { %1628 = vmatpush1.bf16.msra.mxu0 %v3926_v35  ;;  %1669 = vmatpush1.bf16.msra.mxu1 %v3937_v38 }
 0x1da   : > { %1629 = vmatprep.subr.bf16.mxu0 %v3933_v37  ;;  %1670 = vmatprep.subr.bf16.mxu1 %v3940_v39 }
 0x1dd   : > { %1630 = vmatpush1.bf16.msra.mxu0 %v3944_v40  ;;  %1671 = vmatpush1.bf16.msra.mxu1 %v3953_v43 }
 0x1de   : > { %1750 = vmatprep.subr.bf16.mxu0 %v3821_v3  ;;  %1791 = vmatprep.subr.bf16.mxu1 %v3824_v4 }
 0x280   : > { %v1514_v45 = vpop.f32.mrf.mxu0  ;;  %v1555_v46 = vpop.f32.mrf.mxu1 }
 0x281   : > { %v1562_v47 = vadd.f32 %v1514_v45, %v1475_v41  ;;  %v1564_v1 = vadd.f32 %v1555_v46, %v1477_v63 }
 0x282   : > { %v1516_v54 = vpop.f32.mrf.mxu0  ;;  %v1557_v55 = vpop.f32.mrf.mxu1 }
 0x283   : > { %v2923_v49 = vmul.f32 -1.442695, %v1562_v47  ;;  %v1563_v50 = vadd.f32 %v1516_v54, %v1476_v48  ;;  %v1565_v61 = vadd.f32 %v1557_v55, %v1478_v60 }
 0x284   : > { %v1518_v51 = vpop.f32.mrf.mxu0  ;;  %v1559_v56 = vpop.f32.mrf.mxu1 }
 0x285   : > { %3283 = vpow2.f32 %v2923_v49  ;;  %v2924_v57 = vmul.f32 -1.442695, %v1563_v50  ;;  %v2925_v62 = vmul.f32 -1.442695, %v1565_v61 }
 0x286   : > { %v1519_v58 = vpop.f32.mrf.mxu0  ;;  %v1560_v59 = vpop.f32.mrf.mxu1 }
 0x287   : > { %3285 = vpow2.f32 %v2924_v57  ;;  %v1611_v57 = vld [vmem:[%s1609_s2 + $0x8] sm:$0xff] }
 0x288   : > { %3287 = vpow2.f32 %v2925_v62 }
 0x292   : > { %v3284_v0 = vpop.eup %3283 }
 0x293   : > { %v1569_v2 = vadd.f32 1.0, %v3284_v0 }
 0x294   : > { %v3286_v5 = vpop.eup %3285 }
 0x295   : > { %3289 = vrcp.f32 %v1569_v2  ;;  %v1575_v7 = vadd.f32 1.0, %v3286_v5  ;;  %v3288_v14 = vpop.eup %3287 }
 0x296   : > { %3291 = vtanh.f32 %v1564_v1  ;;  %v1582_v44 = vadd.f32 1.0, %v3288_v14  ;;  %v1613_v1 = vld [vmem:[%s1609_s2 + $0x18] sm:$0xff] }
 0x297   : > { %3293 = vrcp.f32 %v1575_v7  ;;  %v1612_v7 = vld [vmem:[%s1609_s2 + $0x10] sm:$0xff] }
 0x298   : > { %3295 = vrcp.f32 %v1582_v44 }
 0x2a2   : > { %v3290_v18 = vpop.eup %3289 }
 0x2a3   : > { %v3292_v52 = vpop.eup %3291 }
 0x2a4   : > { %v3294_v28 = vpop.eup %3293  ;;  %v1586_v41 = vmul.f32 %v3292_v52, %v3290_v18 }
 0x2a5   : > { %v1585_v45 = vmul.f32 %v3294_v28, %v4047_v24  ;;  %v3296_v48 = vpop.eup %3295 }
 0x2a7   : > { %v1587_v46 = vadd.f32 %v1586_v41, %v1585_v45 }
 0x2a9   : > { %3297 = vtanh.f32 %v1587_v46  ;;  %v4102_v47 = vsel %vm1594_vm1, %v1587_v46, %v4047_v24  ;;  %v1610_v24 = vld [vmem:[%s1609_s2] sm:$0xff]  ;;  %v1728_v46 = vstv %s1727_s13  ;;  %s2944_s13 = sshll.u32 %s4409_s9, 3 }
 0x2aa   : > { %vm1729_vm2 = vcmp.eq.s32.totalorder %v1728_v46, 1  ;;  %v4275_v46 = vld [vmem:[%s3699_s18 + $0x8c] ss:$16 sps:$4 sm:$0xff]  }
 0x2b6   : > { %v3298_v54 = vpop.eup %3297 }
 0x2b7   : > { %v1589_v55 = vmul.f32 %v3298_v54, %v3296_v48 }
 0x2b9   : > { %v4105_v49 = vsel %vm1594_vm1, %v1589_v55, %v4050_v34 }
 0x2ba   : > { %1600 = vst [vmem:[%s1599_s12] sm:$0xff] %v4105_v49  ;;  %v1614_v50 = vpack.c.bf16 %v4105_v49, %v4105_v49  ;;  %s2938_s12 = sshll.u32 %s4354_s24, 3 }
 0x2bb   : > { %s1875_s15 = sshra.s32 %s2938_s12, 3  ;;  %s2004_s2 = scalar_lea.vmem [#allocation5], %s2938_s12 }
 0x2bc   : > { %1648 = vmatmul.mubr.bf16.vlgmr.msra.gmra.mxu0 %v1614_v50  ;;  %1689 = vmatmul.mubr.bf16.vlgmr.msra.gmra.mxu1 %v1614_v50  ;;  %s2985_s21 = sshll.u32 %s1875_s15, 5  ;;  %s2265_s15 = sadd.s32 %s3714_s7, %s4464_s26 }
 0x2bd   : > { %1751 = vmatpush1.bf16.msra.mxu0 %v3828_v6  ;;  %1792 = vmatpush1.bf16.msra.mxu1 %v3837_v9  ;;  %s1879_s0 = scalar_lea.vmem [#allocation4], %s2985_s21  ;;  %p2266_p6 = scmp.lt.s32.totalorder %s2265_s15, 20 }
 0x2be   : > { %1752 = vmatprep.subr.bf16.mxu0 %v3833_v8  ;;  %1793 = vmatprep.subr.bf16.mxu1 %v3840_v10 }
 0x2bf   : > { %1782 = vmatprep.mubr.bf16.mxu0 %v3542_v42  ;;  %1823 = vmatprep.mubr.bf16.mxu1 %v3542_v42  ;;  %s2267_s21 = scalar_select %p2266_p6, 1, 0 }
 0x2c1   : > { %1753 = vmatpush1.bf16.msra.mxu0 %v3844_v11  ;;  %1794 = vmatpush1.bf16.msra.mxu1 %v3852_v13 }
 0x2c2   : > { %1754 = vmatprep.subr.bf16.mxu0 %v3848_v12  ;;  %1795 = vmatprep.subr.bf16.mxu1 %v3861_v16 }
 0x2c5   : > { %1755 = vmatpush1.bf16.msra.mxu0 %v3858_v15  ;;  %1796 = vmatpush1.bf16.msra.mxu1 %v3870_v19 }
 0x2c6   : > { %1756 = vmatprep.subr.bf16.mxu0 %v3865_v17  ;;  %1797 = vmatprep.subr.bf16.mxu1 %v3873_v20 }
 0x2c9   : > { %1757 = vmatpush1.bf16.msra.mxu0 %v3877_v21  ;;  %1798 = vmatpush1.bf16.msra.mxu1 %v3886_v23 }
 0x2ca   : > { %1758 = vmatprep.subr.bf16.mxu0 %v3882_v22  ;;  %1799 = vmatprep.subr.bf16.mxu1 %v3895_v26 }
 0x2cd   : > { %1759 = vmatpush1.bf16.msra.mxu0 %v3892_v25  ;;  %1800 = vmatpush1.bf16.msra.mxu1 %v3904_v29 }
 0x2ce   : > { %1760 = vmatprep.subr.bf16.mxu0 %v3899_v27  ;;  %1801 = vmatprep.subr.bf16.mxu1 %v3907_v30 }
 0x2d1   : > { %1761 = vmatpush1.bf16.msra.mxu0 %v3911_v31  ;;  %1802 = vmatpush1.bf16.msra.mxu1 %v3920_v33 }
 0x2d2   : > { %1762 = vmatprep.subr.bf16.mxu0 %v3916_v32  ;;  %1803 = vmatprep.subr.bf16.mxu1 %v3929_v36 }
 0x2d5   : > { %1763 = vmatpush1.bf16.msra.mxu0 %v3926_v35  ;;  %1804 = vmatpush1.bf16.msra.mxu1 %v3937_v38 }
 0x2d6   : > { %1764 = vmatprep.subr.bf16.mxu0 %v3933_v37  ;;  %1805 = vmatprep.subr.bf16.mxu1 %v3940_v39 }
 0x2d9   : > { %1765 = vmatpush1.bf16.msra.mxu0 %v3944_v40  ;;  %1806 = vmatpush1.bf16.msra.mxu1 %v3953_v43 }
 0x2da   : > { %1885 = vmatprep.subr.bf16.mxu0 %v3821_v3  ;;  %1926 = vmatprep.subr.bf16.mxu1 %v3824_v4 }
 0x37c   : > { %v1649_v34 = vpop.f32.mrf.mxu0  ;;  %v1690_v51 = vpop.f32.mrf.mxu1 }
 0x37d   : > { %v1697_v56 = vadd.f32 %v1649_v34, %v1610_v24  ;;  %v1699_v18 = vadd.f32 %v1690_v51, %v1612_v7  ;;  %v4237_v7 = vld [vmem:[%s3699_s18 + $0xc4] ss:$16 sps:$4 sm:$0xff]  }
 0x37e   : > { %v1651_v58 = vpop.f32.mrf.mxu0  ;;  %v1692_v59 = vpop.f32.mrf.mxu1 }
 0x37f   : > { %v2929_v3 = vmul.f32 -1.442695, %v1697_v56  ;;  %v1698_v60 = vadd.f32 %v1651_v58, %v1611_v57  ;;  %v1700_v2 = vadd.f32 %v1692_v59, %v1613_v1 }
 0x380   : > { %v1653_v4 = vpop.f32.mrf.mxu0  ;;  %v1694_v61 = vpop.f32.mrf.mxu1 }
 0x381   : > { %3299 = vpow2.f32 %v2929_v3  ;;  %v2930_v62 = vmul.f32 -1.442695, %v1698_v60  ;;  %v2931_v5 = vmul.f32 -1.442695, %v1700_v2  ;;  %v4229_v2 = vld [vmem:[%s3699_s18 + $0xe0] ss:$16 sps:$4 sm:$0xff]  }
 0x382   : > { %v1654_v63 = vpop.f32.mrf.mxu0  ;;  %v1695_v0 = vpop.f32.mrf.mxu1 }
 0x383   : > { %3301 = vpow2.f32 %v2930_v62 }
 0x384   : > { %3303 = vpow2.f32 %v2931_v5  ;;  %v4233_v5 = vld [vmem:[%s3699_s18 + $0xe8] ss:$16 sps:$4 sm:$0xff]  }
 0x38e   : > { %v3300_v14 = vpop.eup %3299 }
 0x38f   : > { %v1704_v52 = vadd.f32 1.0, %v3300_v14  ;;  %v4241_v14 = vld [vmem:[%s3699_s18 + $0xcc] ss:$16 sps:$4 sm:$0xff]  }
 0x390   : > { %v3302_v53 = vpop.eup %3301 }
 0x391   : > { %3305 = vrcp.f32 %v1704_v52  ;;  %v1710_v28 = vadd.f32 1.0, %v3302_v53  ;;  %v3304_v44 = vpop.eup %3303  ;;  %v4251_v52 = vld [vmem:[%s3699_s18 + $0xc8] ss:$16 sps:$4 sm:$0xff]   ;;  %v4255_v53 = vld [vmem:[%s3699_s18 + $0xa4] ss:$16 sps:$4 sm:$0xff]  }
 0x392   : > { %3307 = vtanh.f32 %v1699_v18  ;;  %v1717_v54 = vadd.f32 1.0, %v3304_v44  ;;  %v4247_v18 = vld [vmem:[%s3699_s18 + $0xc0] ss:$16 sps:$4 sm:$0xff]  }
 0x393   : > { %3309 = vrcp.f32 %v1710_v28  ;;  %v4259_v28 = vld [vmem:[%s3699_s18 + $0xac] ss:$16 sps:$4 sm:$0xff]   ;;  %v4263_v44 = vld [vmem:[%s3699_s18 + $0xa0] ss:$16 sps:$4 sm:$0xff]  }
 0x394   : > { %3311 = vrcp.f32 %v1717_v54  ;;  %v4283_v54 = vld [vmem:[%s3699_s18 + $0x88] ss:$16 sps:$4 sm:$0xff]  }
 0x39e   : > { %v3306_v41 = vpop.eup %3305 }
 0x39f   : > { %v3308_v45 = vpop.eup %3307 }
 0x3a0   : > { %v3310_v48 = vpop.eup %3309  ;;  %v1721_v55 = vmul.f32 %v3308_v45, %v3306_v41  ;;  %v4267_v41 = vld [vmem:[%s3699_s18 + $0xa8] ss:$16 sps:$4 sm:$0xff]   ;;  %v4271_v45 = vld [vmem:[%s3699_s18 + $0x84] ss:$16 sps:$4 sm:$0xff]  }
 0x3a1   : > { %v1720_v50 = vmul.f32 %v3310_v48, %v4102_v47  ;;  %v3312_v51 = vpop.eup %3311  ;;  %v4279_v48 = vld [vmem:[%s3699_s18 + $0x80] ss:$16 sps:$4 sm:$0xff]  }
 0x3a3   : > { %v1722_v24 = vadd.f32 %v1721_v55, %v1720_v50  ;;  %v4287_v55 = vld [vmem:[%s3699_s18 + $0x64] ss:$16 sps:$4 sm:$0xff]   ;;  %v4291_v50 = vld [vmem:[%s3699_s18 + $0x6c] ss:$16 sps:$4 sm:$0xff]  }
 0x3a5   : > { %3313 = vtanh.f32 %v1722_v24  ;;  %v4157_v34 = vsel %vm1729_vm2, %v1722_v24, %v4102_v47  ;;  %v4295_v24 = vld [vmem:[%s3699_s18 + $0x60] ss:$16 sps:$4 sm:$0xff]  }
 0x3b2   : > { %v3314_v56 = vpop.eup %3313 }
 0x3b3   : > { %v1724_v57 = vmul.f32 %v3314_v56, %v3312_v51  ;;  %v4303_v51 = vld [vmem:[%s3699_s18 + $0x44] ss:$16 sps:$4 sm:$0xff]   ;;  %v4307_v56 = vld [vmem:[%s3699_s18 + $0x4c] ss:$16 sps:$4 sm:$0xff]  }
 0x3b5   : > { %v4160_v58 = vsel %vm1729_vm2, %v1724_v57, %v4105_v49  ;;  %v4311_v57 = vld [vmem:[%s3699_s18 + $0x40] ss:$16 sps:$4 sm:$0xff]  }
 0x3b6   : > { %1735 = vst [vmem:[%s1734_s29] sm:$0xff] %v4160_v58  ;;  %v1749_v59 = vpack.c.bf16 %v4160_v58, %v4160_v58  ;;  %s2010_s29 = sshra.s32 %s2944_s13, 3 }
 0x3b7   : > { %s2986_s20 = sshll.u32 %s2010_s29, 5 }
 0x3b8   : > { %1783 = vmatmul.mubr.bf16.vlgmr.msra.gmra.mxu0 %v1749_v59  ;;  %1824 = vmatmul.mubr.bf16.vlgmr.msra.gmra.mxu1 %v1749_v59  ;;  %v4319_v59 = vld [vmem:[%s3699_s18 + $0x24] ss:$16 sps:$4 sm:$0xff]   ;;  %s2014_s3 = scalar_lea.vmem [#allocation4], %s2986_s20 }
 0x3b9   : > { %1886 = vmatpush1.bf16.msra.mxu0 %v3828_v6  ;;  %1927 = vmatpush1.bf16.msra.mxu1 %v3837_v9  ;;  %v4200_v6 = vld [vmem:[%s3699_s18 + $0xe4] ss:$16 sps:$4 sm:$0xff]  }
 0x3ba   : > { %1887 = vmatprep.subr.bf16.mxu0 %v3833_v8  ;;  %1928 = vmatprep.subr.bf16.mxu1 %v3840_v10  ;;  %v4204_v8 = vld [vmem:[%s3699_s18 + $0xec] ss:$16 sps:$4 sm:$0xff]   ;;  %v1745_v9 = vld [vmem:[%s1744_s27] sm:$0xff] }
 0x3bb   : > { %1917 = vmatprep.mubr.bf16.mxu0 %v3542_v42  ;;  %1958 = vmatprep.mubr.bf16.mxu1 %v3542_v42 }
 0x3bd   : > { %1888 = vmatpush1.bf16.msra.mxu0 %v3844_v11  ;;  %1929 = vmatpush1.bf16.msra.mxu1 %v3852_v13  ;;  %v1746_v13 = vld [vmem:[%s1744_s27 + $0x8] sm:$0xff] }
 0x3be   : > { %1889 = vmatprep.subr.bf16.mxu0 %v3848_v12  ;;  %1930 = vmatprep.subr.bf16.mxu1 %v3861_v16 }
 0x3c1   : > { %1890 = vmatpush1.bf16.msra.mxu0 %v3858_v15  ;;  %1931 = vmatpush1.bf16.msra.mxu1 %v3870_v19 }
 0x3c2   : > { %1891 = vmatprep.subr.bf16.mxu0 %v3865_v17  ;;  %1932 = vmatprep.subr.bf16.mxu1 %v3873_v20 }
 0x3c5   : > { %1892 = vmatpush1.bf16.msra.mxu0 %v3877_v21  ;;  %1933 = vmatpush1.bf16.msra.mxu1 %v3886_v23 }
 0x3c6   : > { %1893 = vmatprep.subr.bf16.mxu0 %v3882_v22  ;;  %1934 = vmatprep.subr.bf16.mxu1 %v3895_v26  ;;  %v1748_v26 = vld [vmem:[%s1744_s27 + $0x18] sm:$0xff] }
 0x3c9   : > { %1894 = vmatpush1.bf16.msra.mxu0 %v3892_v25  ;;  %1935 = vmatpush1.bf16.msra.mxu1 %v3904_v29 }
 0x3ca   : > { %1895 = vmatprep.subr.bf16.mxu0 %v3899_v27  ;;  %1936 = vmatprep.subr.bf16.mxu1 %v3907_v30  ;;  %v1747_v30 = vld [vmem:[%s1744_s27 + $0x10] sm:$0xff]  ;;  %s2139_s27 = scalar_lea.vmem [#allocation5], %s2944_s13 }
 0x3cd   : > { %1896 = vmatpush1.bf16.msra.mxu0 %v3911_v31  ;;  %1937 = vmatpush1.bf16.msra.mxu1 %v3920_v33 }
 0x3ce   : > { %1897 = vmatprep.subr.bf16.mxu0 %v3916_v32  ;;  %1938 = vmatprep.subr.bf16.mxu1 %v3929_v36 }
 0x3d1   : > { %1898 = vmatpush1.bf16.msra.mxu0 %v3926_v35  ;;  %1939 = vmatpush1.bf16.msra.mxu1 %v3937_v38 }
 0x3d2   : > { %1899 = vmatprep.subr.bf16.mxu0 %v3933_v37  ;;  %1940 = vmatprep.subr.bf16.mxu1 %v3940_v39 }
 0x3d5   : > { %1900 = vmatpush1.bf16.msra.mxu0 %v3944_v40  ;;  %1941 = vmatpush1.bf16.msra.mxu1 %v3953_v43  ;;  %v1863_v40 = vstv %s1862_s22  ;;  %s2950_s22 = sshll.u32 %s4464_s26, 3 }
 0x3d6   : > { %2020 = vmatprep.subr.bf16.mxu0 %v4200_v6  ;;  %2061 = vmatprep.subr.bf16.mxu1 %v4204_v8  ;;  %vm1864_vm3 = vcmp.eq.s32.totalorder %v1863_v40, 1 }
 0x478   : > { %v1784_v10 = vpop.f32.mrf.mxu0  ;;  %v1825_v11 = vpop.f32.mrf.mxu1 }
 0x479   : > { %v1832_v12 = vadd.f32 %v1784_v10, %v1745_v9  ;;  %v1834_v32 = vadd.f32 %v1825_v11, %v1747_v30  ;;  %v4323_v9 = vld [vmem:[%s3699_s18 + $0x2c] ss:$16 sps:$4 sm:$0xff]   ;;  %v4327_v10 = vld [vmem:[%s3699_s18 + $0x20] ss:$16 sps:$4 sm:$0xff]   ;;  %v4331_v11 = vld [vmem:[%s3699_s18 + $0x28] ss:$16 sps:$4 sm:$0xff]  }
 0x47a   : > { %v1786_v15 = vpop.f32.mrf.mxu0  ;;  %v1827_v16 = vpop.f32.mrf.mxu1 }
 0x47b   : > { %v2935_v17 = vmul.f32 -1.442695, %v1832_v12  ;;  %v1833_v19 = vadd.f32 %v1786_v15, %v1746_v13  ;;  %v1835_v27 = vadd.f32 %v1827_v16, %v1748_v26  ;;  %v4335_v12 = vld [vmem:[%s3699_s18 + $0x4] ss:$16 sps:$4 sm:$0xff]   ;;  %v4339_v13 = vld [vmem:[%s3699_s18 + $0xc] ss:$16 sps:$4 sm:$0xff]  }
 0x47c   : > { %v1788_v20 = vpop.f32.mrf.mxu0  ;;  %v1829_v21 = vpop.f32.mrf.mxu1  ;;  %v4343_v15 = vld [vmem:[%s3699_s18] ss:$16 sps:$4 sm:$0xff]   ;;  %v4347_v16 = vld [vmem:[%s3699_s18 + $0x8] ss:$16 sps:$4 sm:$0xff]  }
 0x47d   : > { %3315 = vpow2.f32 %v2935_v17  ;;  %v2936_v22 = vmul.f32 -1.442695, %v1833_v19  ;;  %v2937_v29 = vmul.f32 -1.442695, %v1835_v27  ;;  %v1880_v17 = vld [vmem:[%s1879_s0] sm:$0xff] }
 0x47e   : > { %v1789_v23 = vpop.f32.mrf.mxu0  ;;  %v1830_v25 = vpop.f32.mrf.mxu1 }
 0x47f   : > { %3317 = vpow2.f32 %v2936_v22  ;;  %v1881_v22 = vld [vmem:[%s1879_s0 + $0x8] sm:$0xff] }
 0x480   : > { %3319 = vpow2.f32 %v2937_v29 }
 0x48a   : > { %v3316_v31 = vpop.eup %3315 }
 0x48b   : > { %v1839_v33 = vadd.f32 1.0, %v3316_v31 }
 0x48c   : > { %v3318_v35 = vpop.eup %3317 }
 0x48d   : > { %3321 = vrcp.f32 %v1839_v33  ;;  %v1845_v36 = vadd.f32 1.0, %v3318_v35  ;;  %v3320_v37 = vpop.eup %3319  ;;  %v1883_v35 = vld [vmem:[%s1879_s0 + $0x18] sm:$0xff] }
 0x48e   : > { %3323 = vtanh.f32 %v1834_v32  ;;  %v1852_v47 = vadd.f32 1.0, %v3320_v37 }
 0x48f   : > { %3325 = vrcp.f32 %v1845_v36 }
 0x490   : > { %3327 = vrcp.f32 %v1852_v47 }
 0x49a   : > { %v3322_v38 = vpop.eup %3321 }
 0x49b   : > { %v3324_v39 = vpop.eup %3323 }
 0x49c   : > { %v3326_v43 = vpop.eup %3325  ;;  %v1856_v49 = vmul.f32 %v3324_v39, %v3322_v38  ;;  %v1882_v38 = vld [vmem:[%s1879_s0 + $0x10] sm:$0xff]  ;;  %s2274_s0 = scalar_lea.vmem [#allocation5], %s2950_s22 }
 0x49d   : > { %v1855_v3 = vmul.f32 %v3326_v43, %v4157_v34  ;;  %v3328_v61 = vpop.eup %3327 }
 0x49f   : > { %v1857_v60 = vadd.f32 %v1856_v49, %v1855_v3 }
 0x4a1   : > { %3329 = vtanh.f32 %v1857_v60  ;;  %v4218_v4 = vsel %vm1864_vm3, %v1857_v60, %v4157_v34  ;;  %v4299_v34 = vld [vmem:[%s3699_s18 + $0x68] ss:$16 sps:$4 sm:$0xff]  }
 0x4ae   : > { %v3330_v62 = vpop.eup %3329 }
 0x4af   : > { %v1859_v63 = vmul.f32 %v3330_v62, %v3328_v61 }
 0x4b1   : > { %v4221_v0 = vsel %vm1864_vm3, %v1859_v63, %v4160_v58  ;;  %v4315_v58 = vld [vmem:[%s3699_s18 + $0x48] ss:$16 sps:$4 sm:$0xff]   ;;  %s1995_s18 = sadd.s32 %s3714_s7, %s4354_s24 }
 0x4b2   : > { %1870 = vst [vmem:[%s1869_s19] sm:$0xff] %v4221_v0  ;;  %v1884_v1 = vpack.c.bf16 %v4221_v0, %v4221_v0  ;;  %p1996_p9 = scmp.lt.s32.totalorder %s1995_s18, 20  ;;  %s2145_s19 = sshra.s32 %s2950_s22, 3 }
 0x4b3   : > { %s2987_s24 = sshll.u32 %s2145_s19, 5 }
 0x4b4   : > { %1918 = vmatmul.mubr.bf16.vlgmr.msra.gmra.mxu0 %v1884_v1  ;;  %1959 = vmatmul.mubr.bf16.vlgmr.msra.gmra.mxu1 %v1884_v1  ;;  %s1997_s1 = scalar_select %p1996_p9, 1, 0 }
 0x4b5   : > { %2021 = vmatpush1.bf16.msra.mxu0 %v4229_v2  ;;  %2062 = vmatpush1.bf16.msra.mxu1 %v4233_v5  ;;  %s2149_s12 = scalar_lea.vmem [#allocation4], %s2987_s24 }
 0x4b6   : > { %2022 = vmatprep.subr.bf16.mxu0 %v4237_v7  ;;  %2063 = vmatprep.subr.bf16.mxu1 %v4241_v14  ;;  %v1998_v62 = vstv %s1997_s1  ;;  %s4478_s18 = scalar_select %p493_p1, 0, 7 }
 0x4b7   : > { %2052 = vmatprep.mubr.bf16.mxu0 %v3542_v42  ;;  %2093 = vmatprep.mubr.bf16.mxu1 %v3542_v42  ;;  %vm1999_vm4 = vcmp.eq.s32.totalorder %v1998_v62, 1 }
 0x4b8   : > { %s2956_s1 = sshll.u32 %s4478_s18, 3  ;;  %s2400_s29 = sadd.s32 %s3714_s7, %s4478_s18 }
 0x4b9   : > { %2023 = vmatpush1.bf16.msra.mxu0 %v4247_v18  ;;  %2064 = vmatpush1.bf16.msra.mxu1 %v4251_v52  ;;  %p2401_p12 = scmp.lt.s32.totalorder %s2400_s29, 20  ;;  %s2409_s7 = scalar_lea.vmem [#allocation5], %s2956_s1 }
 0x4ba   : > { %2024 = vmatprep.subr.bf16.mxu0 %v4255_v53  ;;  %2065 = vmatprep.subr.bf16.mxu1 %v4259_v28 }
 0x4bb   : > { %s2402_s20 = scalar_select %p2401_p12, 1, 0 }
 0x4bd   : > { %2025 = vmatpush1.bf16.msra.mxu0 %v4263_v44  ;;  %2066 = vmatpush1.bf16.msra.mxu1 %v4267_v41 }
 0x4be   : > { %2026 = vmatprep.subr.bf16.mxu0 %v4271_v45  ;;  %2067 = vmatprep.subr.bf16.mxu1 %v4275_v46 }
 0x4c1   : > { %2027 = vmatpush1.bf16.msra.mxu0 %v4279_v48  ;;  %2068 = vmatpush1.bf16.msra.mxu1 %v4283_v54 }
 0x4c2   : > { %2028 = vmatprep.subr.bf16.mxu0 %v4287_v55  ;;  %2069 = vmatprep.subr.bf16.mxu1 %v4291_v50 }
 0x4c5   : > { %2029 = vmatpush1.bf16.msra.mxu0 %v4295_v24  ;;  %2070 = vmatpush1.bf16.msra.mxu1 %v4299_v34 }
 0x4c6   : > { %2030 = vmatprep.subr.bf16.mxu0 %v4303_v51  ;;  %2071 = vmatprep.subr.bf16.mxu1 %v4307_v56 }
 0x4c9   : > { %2031 = vmatpush1.bf16.msra.mxu0 %v4311_v57  ;;  %2072 = vmatpush1.bf16.msra.mxu1 %v4315_v58 }
 0x4ca   : > { %2032 = vmatprep.subr.bf16.mxu0 %v4319_v59  ;;  %2073 = vmatprep.subr.bf16.mxu1 %v4323_v9 }
 0x4cd   : > { %2033 = vmatpush1.bf16.msra.mxu0 %v4327_v10  ;;  %2074 = vmatpush1.bf16.msra.mxu1 %v4331_v11 }
 0x4ce   : > { %2034 = vmatprep.subr.bf16.mxu0 %v4335_v12  ;;  %2075 = vmatprep.subr.bf16.mxu1 %v4339_v13 }
 0x4d1   : > { %2035 = vmatpush1.bf16.msra.mxu0 %v4343_v15  ;;  %2076 = vmatpush1.bf16.msra.mxu1 %v4347_v16 }
 0x4d2   : > { %2155 = vmatprep.subr.bf16.mxu0 %v4200_v6  ;;  %2196 = vmatprep.subr.bf16.mxu1 %v4204_v8 }
 0x574   : > { %v1919_v19 = vpop.f32.mrf.mxu0  ;;  %v1960_v20 = vpop.f32.mrf.mxu1 }
 0x575   : > { %v1967_v21 = vadd.f32 %v1919_v19, %v1880_v17  ;;  %v1969_v40 = vadd.f32 %v1960_v20, %v1882_v38 }
 0x576   : > { %v1921_v23 = vpop.f32.mrf.mxu0  ;;  %v1962_v25 = vpop.f32.mrf.mxu1 }
 0x577   : > { %v2941_v26 = vmul.f32 -1.442695, %v1967_v21  ;;  %v1968_v27 = vadd.f32 %v1921_v23, %v1881_v22  ;;  %v1970_v36 = vadd.f32 %v1962_v25, %v1883_v35 }
 0x578   : > { %v1923_v29 = vpop.f32.mrf.mxu0  ;;  %v1964_v30 = vpop.f32.mrf.mxu1 }
 0x579   : > { %3331 = vpow2.f32 %v2941_v26  ;;  %v2942_v31 = vmul.f32 -1.442695, %v1968_v27  ;;  %v2943_v37 = vmul.f32 -1.442695, %v1970_v36 }
 0x57a   : > { %v1924_v32 = vpop.f32.mrf.mxu0  ;;  %v1965_v33 = vpop.f32.mrf.mxu1 }
 0x57b   : > { %3333 = vpow2.f32 %v2942_v31  ;;  %v2016_v31 = vld [vmem:[%s2014_s3 + $0x8] sm:$0xff] }
 0x57c   : > { %3335 = vpow2.f32 %v2943_v37 }
 0x586   : > { %v3332_v39 = vpop.eup %3331 }
 0x587   : > { %v1974_v43 = vadd.f32 1.0, %v3332_v39 }
 0x588   : > { %v3334_v47 = vpop.eup %3333 }
 0x589   : > { %3337 = vrcp.f32 %v1974_v43  ;;  %v1980_v49 = vadd.f32 1.0, %v3334_v47  ;;  %v3336_v3 = vpop.eup %3335 }
 0x58a   : > { %3339 = vtanh.f32 %v1969_v40  ;;  %v1987_v1 = vadd.f32 1.0, %v3336_v3  ;;  %v2018_v40 = vld [vmem:[%s2014_s3 + $0x18] sm:$0xff] }
 0x58b   : > { %3341 = vrcp.f32 %v1980_v49  ;;  %v2017_v49 = vld [vmem:[%s2014_s3 + $0x10] sm:$0xff] }
 0x58c   : > { %3343 = vrcp.f32 %v1987_v1 }
 0x596   : > { %v3338_v60 = vpop.eup %3337 }
 0x597   : > { %v3340_v61 = vpop.eup %3339 }
 0x598   : > { %v3342_v63 = vpop.eup %3341  ;;  %v1991_v17 = vmul.f32 %v3340_v61, %v3338_v60 }
 0x599   : > { %v1990_v19 = vmul.f32 %v3342_v63, %v4218_v4  ;;  %v3344_v22 = vpop.eup %3343 }
 0x59b   : > { %v1992_v20 = vadd.f32 %v1991_v17, %v1990_v19 }
 0x59d   : > { %3345 = vtanh.f32 %v1992_v20  ;;  %v4363_v21 = vsel %vm1999_vm4, %v1992_v20, %v4218_v4  ;;  %v2015_v4 = vld [vmem:[%s2014_s3] sm:$0xff]  ;;  %v2133_v20 = vstv %s2132_s17 }
 0x59e   : > { %vm2134_vm5 = vcmp.eq.s32.totalorder %v2133_v20, 1 }
 0x5aa   : > { %v3346_v23 = vpop.eup %3345 }
 0x5ab   : > { %v1994_v25 = vmul.f32 %v3346_v23, %v3344_v22 }
 0x5ad   : > { %v4366_v26 = vsel %vm1999_vm4, %v1994_v25, %v4221_v0 }
 0x5ae   : > { %2005 = vst [vmem:[%s2004_s2] sm:$0xff] %v4366_v26  ;;  %v2019_v27 = vpack.c.bf16 %v4366_v26, %v4366_v26  ;;  %s2280_s2 = sshra.s32 %s2956_s1, 3 }
 0x5af   : > { %s2988_s9 = sshll.u32 %s2280_s2, 5 }
 0x5b0   : > { %2053 = vmatmul.mubr.bf16.vlgmr.msra.gmra.mxu0 %v2019_v27  ;;  %2094 = vmatmul.mubr.bf16.vlgmr.msra.gmra.mxu1 %v2019_v27  ;;  %s2284_s13 = scalar_lea.vmem [#allocation4], %s2988_s9 }
 0x5b1   : > { %2156 = vmatpush1.bf16.msra.mxu0 %v4229_v2  ;;  %2197 = vmatpush1.bf16.msra.mxu1 %v4233_v5 }
 0x5b2   : > { %2157 = vmatprep.subr.bf16.mxu0 %v4237_v7  ;;  %2198 = vmatprep.subr.bf16.mxu1 %v4241_v14 }
 0x5b3   : > { %2187 = vmatprep.mubr.bf16.mxu0 %v3542_v42  ;;  %2228 = vmatprep.mubr.bf16.mxu1 %v3542_v42 }
 0x5b5   : > { %2158 = vmatpush1.bf16.msra.mxu0 %v4247_v18  ;;  %2199 = vmatpush1.bf16.msra.mxu1 %v4251_v52 }
 0x5b6   : > { %2159 = vmatprep.subr.bf16.mxu0 %v4255_v53  ;;  %2200 = vmatprep.subr.bf16.mxu1 %v4259_v28 }
 0x5b9   : > { %2160 = vmatpush1.bf16.msra.mxu0 %v4263_v44  ;;  %2201 = vmatpush1.bf16.msra.mxu1 %v4267_v41 }
 0x5ba   : > { %2161 = vmatprep.subr.bf16.mxu0 %v4271_v45  ;;  %2202 = vmatprep.subr.bf16.mxu1 %v4275_v46 }
 0x5bd   : > { %2162 = vmatpush1.bf16.msra.mxu0 %v4279_v48  ;;  %2203 = vmatpush1.bf16.msra.mxu1 %v4283_v54 }
 0x5be   : > { %2163 = vmatprep.subr.bf16.mxu0 %v4287_v55  ;;  %2204 = vmatprep.subr.bf16.mxu1 %v4291_v50 }
 0x5c1   : > { %2164 = vmatpush1.bf16.msra.mxu0 %v4295_v24  ;;  %2205 = vmatpush1.bf16.msra.mxu1 %v4299_v34 }
 0x5c2   : > { %2165 = vmatprep.subr.bf16.mxu0 %v4303_v51  ;;  %2206 = vmatprep.subr.bf16.mxu1 %v4307_v56 }
 0x5c5   : > { %2166 = vmatpush1.bf16.msra.mxu0 %v4311_v57  ;;  %2207 = vmatpush1.bf16.msra.mxu1 %v4315_v58 }
 0x5c6   : > { %2167 = vmatprep.subr.bf16.mxu0 %v4319_v59  ;;  %2208 = vmatprep.subr.bf16.mxu1 %v4323_v9 }
 0x5c9   : > { %2168 = vmatpush1.bf16.msra.mxu0 %v4327_v10  ;;  %2209 = vmatpush1.bf16.msra.mxu1 %v4331_v11 }
 0x5ca   : > { %2169 = vmatprep.subr.bf16.mxu0 %v4335_v12  ;;  %2210 = vmatprep.subr.bf16.mxu1 %v4339_v13 }
 0x5cd   : > { %2170 = vmatpush1.bf16.msra.mxu0 %v4343_v15  ;;  %2211 = vmatpush1.bf16.msra.mxu1 %v4347_v16 }
 0x5ce   : > { %2290 = vmatprep.subr.bf16.mxu0 %v4200_v6  ;;  %2331 = vmatprep.subr.bf16.mxu1 %v4204_v8 }
 0x670   : > { %v2054_v0 = vpop.f32.mrf.mxu0  ;;  %v2095_v29 = vpop.f32.mrf.mxu1 }
 0x671   : > { %v2102_v30 = vadd.f32 %v2054_v0, %v2015_v4  ;;  %v2104_v60 = vadd.f32 %v2095_v29, %v2017_v49 }
 0x672   : > { %v2056_v32 = vpop.f32.mrf.mxu0  ;;  %v2097_v33 = vpop.f32.mrf.mxu1 }
 0x673   : > { %v2947_v6 = vmul.f32 -1.442695, %v2102_v30  ;;  %v2103_v35 = vadd.f32 %v2056_v32, %v2016_v31  ;;  %v2105_v43 = vadd.f32 %v2097_v33, %v2018_v40 }
 0x674   : > { %v2058_v8 = vpop.f32.mrf.mxu0  ;;  %v2099_v36 = vpop.f32.mrf.mxu1 }
 0x675   : > { %3347 = vpow2.f32 %v2947_v6  ;;  %v2948_v37 = vmul.f32 -1.442695, %v2103_v35  ;;  %v2949_v47 = vmul.f32 -1.442695, %v2105_v43 }
 0x676   : > { %v2059_v38 = vpop.f32.mrf.mxu0  ;;  %v2100_v39 = vpop.f32.mrf.mxu1 }
 0x677   : > { %3349 = vpow2.f32 %v2948_v37 }
 0x678   : > { %3351 = vpow2.f32 %v2949_v47 }
 0x682   : > { %v3348_v3 = vpop.eup %3347 }
 0x683   : > { %v2109_v61 = vadd.f32 1.0, %v3348_v3  ;;  %v2285_v3 = vld [vmem:[%s2284_s13] sm:$0xff] }
 0x684   : > { %v3350_v62 = vpop.eup %3349 }
 0x685   : > { %3353 = vrcp.f32 %v2109_v61  ;;  %v2115_v63 = vadd.f32 1.0, %v3350_v62  ;;  %v3352_v1 = vpop.eup %3351 }
 0x686   : > { %3355 = vtanh.f32 %v2104_v60  ;;  %v2122_v23 = vadd.f32 1.0, %v3352_v1 }
 0x687   : > { %3357 = vrcp.f32 %v2115_v63  ;;  %v2286_v63 = vld [vmem:[%s2284_s13 + $0x8] sm:$0xff] }
 0x688   : > { %3359 = vrcp.f32 %v2122_v23 }
 0x692   : > { %v3354_v17 = vpop.eup %3353 }
 0x693   : > { %v3356_v19 = vpop.eup %3355 }
 0x694   : > { %v3358_v22 = vpop.eup %3357  ;;  %v2126_v25 = vmul.f32 %v3356_v19, %v3354_v17 }
 0x695   : > { %v2125_v27 = vmul.f32 %v3358_v22, %v4363_v21  ;;  %v3360_v29 = vpop.eup %3359 }
 0x697   : > { %v2127_v4 = vadd.f32 %v2126_v25, %v2125_v27 }
 0x699   : > { %3361 = vtanh.f32 %v2127_v4  ;;  %v4418_v0 = vsel %vm2134_vm5, %v2127_v4, %v4363_v21 }
 0x6a6   : > { %v3362_v30 = vpop.eup %3361 }
 0x6a7   : > { %v2129_v31 = vmul.f32 %v3362_v30, %v3360_v29 }
 0x6a9   : > { %v4421_v32 = vsel %vm2134_vm5, %v2129_v31, %v4366_v26  ;;  %v2287_v31 = vld [vmem:[%s2284_s13 + $0x10] sm:$0xff] }
 0x6aa   : > { %2140 = vst [vmem:[%s2139_s27] sm:$0xff] %v4421_v32  ;;  %v2154_v33 = vpack.c.bf16 %v4421_v32, %v4421_v32 }
 0x6ac   : > { %2188 = vmatmul.mubr.bf16.vlgmr.msra.gmra.mxu0 %v2154_v33  ;;  %2229 = vmatmul.mubr.bf16.vlgmr.msra.gmra.mxu1 %v2154_v33 }
 0x6ad   : > { %2291 = vmatpush1.bf16.msra.mxu0 %v4229_v2  ;;  %2332 = vmatpush1.bf16.msra.mxu1 %v4233_v5 }
 0x6ae   : > { %2292 = vmatprep.subr.bf16.mxu0 %v4237_v7  ;;  %2333 = vmatprep.subr.bf16.mxu1 %v4241_v14 }
 0x6af   : > { %2322 = vmatprep.mubr.bf16.mxu0 %v3542_v42  ;;  %2363 = vmatprep.mubr.bf16.mxu1 %v3542_v42  ;;  %v2150_v42 = vld [vmem:[%s2149_s12] sm:$0xff] }
 0x6b1   : > { %v2414_v21 = vld [vmem:[#allocation5 + $0x18] sm:$0xff]  ;;  %v2415_v26 = vld [vmem:[#allocation5 + $0x20] sm:$0xff]  ;;  %v2413_v6 = vld [vmem:[#allocation5 + $0x10] sm:$0xff]  ;;  %2293 = vmatpush1.bf16.msra.mxu0 %v4247_v18  ;;  %2334 = vmatpush1.bf16.msra.mxu1 %v4251_v52 }
 0x6b2   : > { %v2416_v35 = vld [vmem:[#allocation5 + $0x28] sm:$0xff]  ;;  %v3006_v2 = vpack.c.bf16 %v2414_v21, %v2413_v6  ;;  %2294 = vmatprep.subr.bf16.mxu0 %v4255_v53  ;;  %2335 = vmatprep.subr.bf16.mxu1 %v4259_v28  ;;  %v2151_v18 = vld [vmem:[%s2149_s12 + $0x8] sm:$0xff] }
 0x6b3   : > { %v3011_v8 = vpack.c.bf16 %v2416_v35, %v2415_v26 }
 0x6b4   : > { %3018 = vst [vmem:[%s3752_s30 + $0x8] sm:$0xff] %v3006_v2  }
 0x6b5   : > { %3019 = vst [vmem:[%s3752_s30 + $0x10] sm:$0xff] %v3011_v8   ;;  %2295 = vmatpush1.bf16.msra.mxu0 %v4263_v44  ;;  %2336 = vmatpush1.bf16.msra.mxu1 %v4267_v41 }
 0x6b6   : > { %2296 = vmatprep.subr.bf16.mxu0 %v4271_v45  ;;  %2337 = vmatprep.subr.bf16.mxu1 %v4275_v46 }
 0x6b9   : > { %2297 = vmatpush1.bf16.msra.mxu0 %v4279_v48  ;;  %2338 = vmatpush1.bf16.msra.mxu1 %v4283_v54 }
 0x6ba   : > { %2298 = vmatprep.subr.bf16.mxu0 %v4287_v55  ;;  %2339 = vmatprep.subr.bf16.mxu1 %v4291_v50  ;;  %v2153_v55 = vld [vmem:[%s2149_s12 + $0x18] sm:$0xff] }
 0x6bd   : > { %2299 = vmatpush1.bf16.msra.mxu0 %v4295_v24  ;;  %2340 = vmatpush1.bf16.msra.mxu1 %v4299_v34  ;;  %v2152_v34 = vld [vmem:[%s2149_s12 + $0x10] sm:$0xff] }
 0x6be   : > { %2300 = vmatprep.subr.bf16.mxu0 %v4303_v51  ;;  %2341 = vmatprep.subr.bf16.mxu1 %v4307_v56 }
 0x6c1   : > { %2301 = vmatpush1.bf16.msra.mxu0 %v4311_v57  ;;  %2342 = vmatpush1.bf16.msra.mxu1 %v4315_v58 }
 0x6c2   : > { %2302 = vmatprep.subr.bf16.mxu0 %v4319_v59  ;;  %2343 = vmatprep.subr.bf16.mxu1 %v4323_v9 }
 0x6c5   : > { %2303 = vmatpush1.bf16.msra.mxu0 %v4327_v10  ;;  %2344 = vmatpush1.bf16.msra.mxu1 %v4331_v11 }
 0x6c6   : > { %2304 = vmatprep.subr.bf16.mxu0 %v4335_v12  ;;  %2345 = vmatprep.subr.bf16.mxu1 %v4339_v13  ;;  %v2268_v12 = vstv %s2267_s21 }
 0x6c7   : > { %vm2269_vm6 = vcmp.eq.s32.totalorder %v2268_v12, 1 }
 0x6c9   : > { %2305 = vmatpush1.bf16.msra.mxu0 %v4343_v15  ;;  %2346 = vmatpush1.bf16.msra.mxu1 %v4347_v16 }
 0x76c   : > { %v2189_v5 = vpop.f32.mrf.mxu0  ;;  %v2230_v7 = vpop.f32.mrf.mxu1 }
 0x76d   : > { %v2237_v14 = vadd.f32 %v2189_v5, %v2150_v42  ;;  %v2239_v56 = vadd.f32 %v2230_v7, %v2152_v34  ;;  %v2403_v42 = vstv %s2402_s20 }
 0x76e   : > { %v2191_v52 = vpop.f32.mrf.mxu0  ;;  %v2232_v53 = vpop.f32.mrf.mxu1  ;;  %vm2404_vm7 = vcmp.eq.s32.totalorder %v2403_v42, 1 }
 0x76f   : > { %v2953_v28 = vmul.f32 -1.442695, %v2237_v14  ;;  %v2238_v44 = vadd.f32 %v2191_v52, %v2151_v18  ;;  %v2240_v50 = vadd.f32 %v2232_v53, %v2153_v55 }
 0x770   : > { %v2193_v41 = vpop.f32.mrf.mxu0  ;;  %v2234_v45 = vpop.f32.mrf.mxu1 }
 0x771   : > { %3363 = vpow2.f32 %v2953_v28  ;;  %v2954_v46 = vmul.f32 -1.442695, %v2238_v44  ;;  %v2955_v24 = vmul.f32 -1.442695, %v2240_v50 }
 0x772   : > { %v2194_v48 = vpop.f32.mrf.mxu0  ;;  %v2235_v54 = vpop.f32.mrf.mxu1 }
 0x773   : > { %3365 = vpow2.f32 %v2954_v46 }
 0x774   : > { %3367 = vpow2.f32 %v2955_v24 }
 0x77e   : > { %v3364_v51 = vpop.eup %3363 }
 0x77f   : > { %v2244_v57 = vadd.f32 1.0, %v3364_v51 }
 0x780   : > { %v3366_v58 = vpop.eup %3365 }
 0x781   : > { %3369 = vrcp.f32 %v2244_v57  ;;  %v2250_v59 = vadd.f32 1.0, %v3366_v58  ;;  %v3368_v9 = vpop.eup %3367 }
 0x782   : > { %3371 = vtanh.f32 %v2239_v56  ;;  %v2257_v15 = vadd.f32 1.0, %v3368_v9 }
 0x783   : > { %3373 = vrcp.f32 %v2250_v59 }
 0x784   : > { %3375 = vrcp.f32 %v2257_v15 }
 0x78e   : > { %v3370_v10 = vpop.eup %3369 }
 0x78f   : > { %v3372_v11 = vpop.eup %3371 }
 0x790   : > { %v3374_v13 = vpop.eup %3373  ;;  %v2261_v16 = vmul.f32 %v3372_v11, %v3370_v10 }
 0x791   : > { %v2260_v36 = vmul.f32 %v3374_v13, %v4418_v0  ;;  %v3376_v39 = vpop.eup %3375 }
 0x793   : > { %v2262_v37 = vadd.f32 %v2261_v16, %v2260_v36 }
 0x795   : > { %3377 = vtanh.f32 %v2262_v37  ;;  %v2270_v38 = vsel %vm2269_vm6, %v2262_v37, %v4418_v0  ;;  %v2288_v0 = vld [vmem:[%s2284_s13 + $0x18] sm:$0xff] }
 0x7a2   : > { %v3378_v40 = vpop.eup %3377 }
 0x7a3   : > { %v2264_v43 = vmul.f32 %v3378_v40, %v3376_v39 }
 0x7a5   : > { %v2271_v47 = vsel %vm2269_vm6, %v2264_v43, %v4421_v32 }
 0x7a6   : > { %2275 = vst [vmem:[%s2274_s0] sm:$0xff] %v2271_v47  ;;  %v2289_v49 = vpack.c.bf16 %v2271_v47, %v2271_v47 }
 0x7a8   : > { %2323 = vmatmul.mubr.bf16.vlgmr.msra.gmra.mxu0 %v2289_v49  ;;  %2364 = vmatmul.mubr.bf16.vlgmr.msra.gmra.mxu1 %v2289_v49 }
 0x868   : > { %v2324_v60 = vpop.f32.mrf.mxu0  ;;  %v2365_v61 = vpop.f32.mrf.mxu1 }
 0x869   : > { %v2372_v62 = vadd.f32 %v2324_v60, %v2285_v3  ;;  %v2374_v33 = vadd.f32 %v2365_v61, %v2287_v31 }
 0x86a   : > { %v2326_v1 = vpop.f32.mrf.mxu0  ;;  %v2367_v17 = vpop.f32.mrf.mxu1 }
 0x86b   : > { %v2959_v19 = vmul.f32 -1.442695, %v2372_v62  ;;  %v2373_v20 = vadd.f32 %v2326_v1, %v2286_v63  ;;  %v2375_v29 = vadd.f32 %v2367_v17, %v2288_v0 }
 0x86c   : > { %v2328_v22 = vpop.f32.mrf.mxu0  ;;  %v2369_v23 = vpop.f32.mrf.mxu1 }
 0x86d   : > { %3379 = vpow2.f32 %v2959_v19  ;;  %v2960_v25 = vmul.f32 -1.442695, %v2373_v20  ;;  %v2961_v30 = vmul.f32 -1.442695, %v2375_v29 }
 0x86e   : > { %v2329_v27 = vpop.f32.mrf.mxu0  ;;  %v2370_v4 = vpop.f32.mrf.mxu1 }
 0x86f   : > { %3381 = vpow2.f32 %v2960_v25 }
 0x870   : > { %3383 = vpow2.f32 %v2961_v30 }
 0x87a   : > { %v3380_v32 = vpop.eup %3379 }
 0x87b   : > { %v2379_v21 = vadd.f32 1.0, %v3380_v32 }
 0x87c   : > { %v3382_v26 = vpop.eup %3381 }
 0x87d   : > { %3385 = vrcp.f32 %v2379_v21  ;;  %v2385_v6 = vadd.f32 1.0, %v3382_v26  ;;  %v3384_v35 = vpop.eup %3383 }
 0x87e   : > { %3387 = vtanh.f32 %v2374_v33  ;;  %v2392_v7 = vadd.f32 1.0, %v3384_v35 }
 0x87f   : > { %3389 = vrcp.f32 %v2385_v6 }
 0x880   : > { %3391 = vrcp.f32 %v2392_v7 }
 0x88a   : > { %v3386_v2 = vpop.eup %3385 }
 0x88b   : > { %v3388_v8 = vpop.eup %3387 }
 0x88c   : > { %v3390_v5 = vpop.eup %3389  ;;  %v2396_v14 = vmul.f32 %v3388_v8, %v3386_v2 }
 0x88d   : > { %v2395_v18 = vmul.f32 %v3390_v5, %v2270_v38  ;;  %v3392_v28 = vpop.eup %3391 }
 0x88f   : > { %v2397_v52 = vadd.f32 %v2396_v14, %v2395_v18 }
 0x891   : > { %3393 = vtanh.f32 %v2397_v52  ;;  %v2405_v53 = vsel %vm2404_vm7, %v2397_v52, %v2270_v38 }
 0x892   : > { %2408 = vst [vmem:[#allocation3] sm:$0xff] %v2405_v53 }
 0x89e   : > { %v3394_v44 = vpop.eup %3393 }
 0x89f   : > { %v2399_v41 = vmul.f32 %v3394_v44, %v3392_v28 }
 0x8a1   : > { %v2406_v45 = vsel %vm2404_vm7, %v2399_v41, %v2271_v47 }
 0x8a2   : > { %2407 = vst [vmem:[#allocation2] sm:$0xff] %v2406_v45  ;;  %2410 = vst [vmem:[%s2409_s7] sm:$0xff] %v2406_v45 }
 0x8a9   : > { %v2412_v46 = vld [vmem:[#allocation5 + $0x8] sm:$0xff]  ;;  %v2417_v48 = vld [vmem:[#allocation5 + $0x30] sm:$0xff]  ;;  %v2411_v54 = vld [vmem:[#allocation5] sm:$0xff]  ;;  %2462 = sbr.rel (%p2970_p13) target bundleno = 2224 (0x8b0), region = 56 }
 0x8aa   : > { %v2418_v55 = vld [vmem:[#allocation5 + $0x38] sm:$0xff]  ;;  %v3001_v50 = vpack.c.bf16 %v2412_v46, %v2411_v54 }
 0x8ab   : > { %v3016_v24 = vpack.c.bf16 %v2418_v55, %v2417_v48 }
 0x8ac   : > { %3002 = vst [vmem:[%s3752_s30] sm:$0xff] %v3001_v50  }
 0x8ad   : > { %3020 = vst [vmem:[%s3752_s30 + $0x18] sm:$0xff] %v3016_v24  }
 0x8ae   : > { %v2463_v34 = vld [vmem:[#allocation2] sm:$0xff]  ;;  %v2465_v51 = vld [vmem:[#allocation3] sm:$0xff] }
 0x8af   : > { %2464 = vst [vmem:[%s487_s6] sm:$0xff] %v2463_v34  ;;  %2466 = vst [vmem:[%s491_s5] sm:$0xff] %v2465_v51 }
 0x8b0 PF: > { %2481 = sbr.rel (!%p3671_p11) target bundleno = 2236 (0x8bc), region = 60  ;;  %s2997_s10 = sshll.u32 (%p3671_p11), %s3711_s8, 4  ;;  %v2511_v58 = vld [vmem:[%s3752_s30 + $0x8] sm:$0xf] (%p3671_p11)  ;;  %v2513_v59 = vld [vmem:[%s3752_s30 + $0xc] sm:$0xf] (%p3671_p11) }
 0x8b1   : > { %s2488_s6 = sadd.s32 (%p3671_p11), %s3525_s11, %s2997_s10  ;;  %v2515_v9 = vld [vmem:[%s3752_s30 + $0x10] sm:$0xf] (%p3671_p11)  ;;  %v2517_v10 = vld [vmem:[%s3752_s30 + $0x14] sm:$0xf] (%p3671_p11)  ;;  %s4590_s19 = sld [smem:[#allocation23_spill]] (%p3671_p11) }
 0x8b2   : > { %s2975_s16 = sshll.u32 (%p3671_p11), %s2488_s6, 2 }
 0x8b5   : > { %v2507_v56 = vld [vmem:[%s3752_s30] sm:$0xf]  ;;  %v2509_v57 = vld [vmem:[%s3752_s30 + $0x4] sm:$0xf] }
 0x8b6   : > { %v2519_v11 = vld [vmem:[%s3752_s30 + $0x18] sm:$0xf]  ;;  %v2521_v12 = vld [vmem:[%s3752_s30 + $0x1c] sm:$0xf] }
 0x8b7   : > { %s2490_s24 = scalar_lea.vmem %s4590_s19, %s2975_s16 }
 0x8b8   : > { %2508 = vst [vmem:[%s2490_s24] sm:$0xf] %v2507_v56  ;;  %2510 = vst [vmem:[%s2490_s24 + $0x8] sm:$0xf] %v2509_v57 }
 0x8b9   : > { %2512 = vst [vmem:[%s2490_s24 + $0x10] sm:$0xf] %v2511_v58  ;;  %2514 = vst [vmem:[%s2490_s24 + $0x18] sm:$0xf] %v2513_v59 }
 0x8ba   : > { %2516 = vst [vmem:[%s2490_s24 + $0x20] sm:$0xf] %v2515_v9  ;;  %2518 = vst [vmem:[%s2490_s24 + $0x28] sm:$0xf] %v2517_v10 }
 0x8bb   : > { %2520 = vst [vmem:[%s2490_s24 + $0x30] sm:$0xf] %v2519_v11  ;;  %2522 = vst [vmem:[%s2490_s24 + $0x38] sm:$0xf] %v2521_v12 }
 0x8bc PF: > { %s22_s14 = sadd.s32 1, %s3537_s14   ;;  %s4591_s29 = sld [smem:[#allocation10_spill]] }
 0x8bd   : > { %p19_p11 = scmp.ge.s32.totalorder %s22_s14, 8   ;;  %s4592_s30 = sld [smem:[#allocation11_spill]] }
 0x8be   : > { %s4593_s9 = sld [smem:[#allocation16_spill]]  ;;  %s4598_s27 = smov %s3505_s28 }
 0x8bf   : > { %s4594_s10 = sld [smem:[#allocation12_spill]]  ;;  %s4599_s28 = smov %s3678_s25 }
 0x8c0   : > { %s4595_s11 = sld [smem:[#allocation13_spill]]  ;;  %21 = sbr.rel (!%p19_p11) target bundleno = 16 (0x10), region = 188 }
 0x8c1   : > { %s4596_s12 = sld [smem:[#allocation14_spill]] }
 0x8c2   : > { %s4597_s13 = sld [smem:[#allocation15_spill]] }
 0x8c5   :  { %2592 = vsyncpa [#allocation7], 1 }
 0x8c6   :  { %2594 = vsyncpa [#allocation7 + $0x1], 1 }

</bundles_post_ra>
